<compile_context>
chip_gen: v6e
topology: v6e:2x2x1
jax: 0.10.0
libtpu: 0.0.40
codegen_flags: <defaults>
</compile_context>

<pallas_src>
import jax
import jax.numpy as jnp
from jax.experimental import pallas as pl
from jax.experimental.pallas import tpu as pltpu

EPS = 1e-5
DIM = 2      # `dim` argument of OurBasicBlock (batch is split into DIM groups)
LANE = 128   # TPU lane width; channels are padded to a multiple of this


def _round_up(x, m):
    return (x + m - 1) // m * m


# ----------------------------------------------------------------------------- #
# Kernel 1: fused 3x3 conv (stride 1, pad 1) — 9 accumulated MXU matmuls over a
# VMEM-resident, spatially padded NHWC sample, plus a per-channel sum-of-squares
# epilogue that feeds our_bn without a second pass over y.
# ----------------------------------------------------------------------------- #
def _make_conv_kernel(H, W, Cp):
    HW = H * W

    def kernel(xp_ref, w_ref, y_ref, ss_ref):
        # xp_ref: [H+2, W+2, Cp] f32   (one batch sample, halo included)
        # w_ref : [9*Cp, Cp]     bf16  (tap-major conv weights, resident across grid)
        # y_ref : [H*W, Cp]      f32   (conv output rows for this sample)
        # ss_ref: [8, Cp]        f32   (partial per-channel sum of squares)
        for dh in range(3):
            for dw in range(3):
                t = dh * 3 + dw
                a = xp_ref[dh:dh + H, dw:dw + W, :].reshape(HW, Cp)
                a = a.astype(jnp.bfloat16)
                part = jnp.dot(a, w_ref[t * Cp:(t + 1) * Cp, :],
                               preferred_element_type=jnp.float32)
                if t == 0:
                    y_ref[...] = part
                else:
                    y_ref[...] += part
        y = y_ref[...]
        ss_ref[...] = jnp.sum((y * y).reshape(HW // 8, 8, Cp), axis=0)

    return kernel


def conv3x3(xp, w_mat):
    """xp: [N, H+2, W+2, Cp] f32 (spatially padded NHWC), w_mat: [9*Cp, Cp] bf16.
    Returns y: [N*H*W, Cp] f32 and ss: [N, 8, Cp] f32 partial sum-of-squares."""
    N, Hp, Wp, Cp = xp.shape
    H, W = Hp - 2, Wp - 2
    HW = H * W
    assert HW % 8 == 0 and Cp % LANE == 0
    return pl.pallas_call(
        _make_conv_kernel(H, W, Cp),
        out_shape=(jax.ShapeDtypeStruct((N * HW, Cp), jnp.float32),
                   jax.ShapeDtypeStruct((N, 8, Cp), jnp.float32)),
        grid=(N,),
        in_specs=[pl.BlockSpec((None, Hp, Wp, Cp), lambda n: (n, 0, 0, 0)),
                  pl.BlockSpec((9 * Cp, Cp), lambda n: (0, 0))],
        out_specs=[pl.BlockSpec((HW, Cp), lambda n: (n, 0)),
                   pl.BlockSpec((None, 8, Cp), lambda n: (n, 0, 0))],
        compiler_params=pltpu.CompilerParams(
            dimension_semantics=("parallel",)),
    )(xp, w_mat)


# ----------------------------------------------------------------------------- #
# Kernel 2: tiled fused  our_bn-scale -> (+ residual) -> our_relu
#   our_bn : z = y * rsqrt(mean_rows(y^2)+eps)   (scale is precomputed per channel)
#   our_relu: rows split into DIM batch groups; mod = sqrt(sum_d z_d^2);
#             coef = min(mod, 1); z_d *= coef
# Operates on a [dim, M/dim, Cp] view, tiled over the row axis (pipelined).
# ----------------------------------------------------------------------------- #
def _post_kernel(scale_ref, y_ref, o_ref):
    z = y_ref[...] * scale_ref[...]
    mod = jnp.sqrt(jnp.sum(z * z, axis=0, keepdims=True))
    o_ref[...] = (jnp.minimum(mod, 1.0) * z).astype(o_ref.dtype)


def _post_res_kernel(scale_ref, y_ref, r_ref, o_ref):
    z = y_ref[...] * scale_ref[...] + r_ref[...]
    mod = jnp.sqrt(jnp.sum(z * z, axis=0, keepdims=True))
    o_ref[...] = (jnp.minimum(mod, 1.0) * z).astype(o_ref.dtype)


def bn_add_relu(y, scale, res=None, *, dim=DIM):
    """y: [M, Cp] f32, scale: [1, Cp] f32, optional res: [M, Cp] f32."""
    M, Cp = y.shape
    assert M % dim == 0
    h = M // dim
    tr = 1024 if h > 1024 else h          # rows per tile per group (1024 % 8 == 0)
    blk = pl.BlockSpec((dim, tr, Cp), lambda i: (0, i, 0))
    in_specs = [pl.BlockSpec((1, Cp), lambda i: (0, 0)), blk]
    args = [scale, y.reshape(dim, h, Cp)]
    kernel = _post_kernel
    if res is not None:
        in_specs.append(blk)
        args.append(res.reshape(dim, h, Cp))
        kernel = _post_res_kernel
    out = pl.pallas_call(
        kernel,
        out_shape=jax.ShapeDtypeStruct((dim, h, Cp), jnp.float32),
        grid=(pl.cdiv(h, tr),),
        in_specs=in_specs,
        out_specs=blk,
        compiler_params=pltpu.CompilerParams(
            dimension_semantics=("parallel",)),
    )(*args)
    return out.reshape(M, Cp)


# ----------------------------------------------------------------------------- #
# Glue: weight reshaping / channel padding / bn scale (tiny per-channel vector)
# ----------------------------------------------------------------------------- #
def _weight_to_matrix(w_oihw, Cp):
    """PyTorch conv weight [Cout, Cin, 3, 3] -> [9*Cp, Cp] bf16 (tap-major rows)."""
    Cout, Cin, _, _ = w_oihw.shape
    w = jnp.transpose(w_oihw, (2, 3, 1, 0))                       # [3,3,Cin,Cout]
    w = jnp.pad(w, ((0, 0), (0, 0), (0, Cp - Cin), (0, Cp - Cout)))
    return w.reshape(9 * Cp, Cp).astype(jnp.bfloat16)


def _bn_scale(ss, M, eps):
    mean2 = jnp.sum(ss, axis=(0, 1)) / M                           # [Cp]
    return jax.lax.rsqrt(mean2 + eps)[None, :]                     # [1, Cp] f32


# ----------------------------------------------------------------------------- #
# Full OurBasicBlock forward (double_layer=False, stride=1, identity shortcut)
# ----------------------------------------------------------------------------- #
def our_basic_block(x_nchw, w1, w2, *, dim=DIM, eps=EPS):
    N, Cin, H, W = x_nchw.shape
    Cout = w1.shape[0]
    assert Cin == Cout, "identity shortcut path requires in_planes == planes"
    assert N % dim == 0
    # TODO(synk): stride-2 / option-'A' padded shortcut, double_layer branch and the
    # ResNet_part1 stem (conv1 3->16 + BatchNorm2d + ReLU) + group stacking are not
    # exercised here; only the stride-1 identity-shortcut block is implemented.
    Cp = _round_up(Cout, LANE)
    M = N * H * W

    x_nhwc = jnp.transpose(x_nchw, (0, 2, 3, 1)).astype(jnp.float32)      # NHWC
    x_cp = jnp.pad(x_nhwc, ((0, 0), (0, 0), (0, 0), (0, Cp - Cin)))       # [N,H,W,Cp]
    wm1 = _weight_to_matrix(w1, Cp)
    wm2 = _weight_to_matrix(w2, Cp)

    # conv1 -> our_bn -> our_relu   (no residual: dedicated kernel variant)
    xp1 = jnp.pad(x_cp, ((0, 0), (1, 1), (1, 1), (0, 0)))
    y1, ss1 = conv3x3(xp1, wm1)                                           # [M, Cp]
    out1 = bn_add_relu(y1, _bn_scale(ss1, M, eps), dim=dim)

    # conv2 -> our_bn -> (+ identity shortcut) -> our_relu
    xp2 = jnp.pad(out1.reshape(N, H, W, Cp), ((0, 0), (1, 1), (1, 1), (0, 0)))
    y2, ss2 = conv3x3(xp2, wm2)
    out2 = bn_add_relu(y2, _bn_scale(ss2, M, eps),
                       res=x_cp.reshape(M, Cp), dim=dim)

    out = out2.reshape(N, H, W, Cp)[..., :Cout]
    return jnp.transpose(out, (0, 3, 1, 2))                               # back to NCHW


# ----------------------------------------------------------------------------- #
# Pure-JAX reference (for correctness check)
# ----------------------------------------------------------------------------- #
def _reference(x, w1, w2, *, dim=DIM, eps=EPS):
    def conv(z, w):
        return jax.lax.conv_general_dilated(
            z, w, (1, 1), ((1, 1), (1, 1)),
            dimension_numbers=("NCHW", "OIHW", "NCHW"),
            precision=jax.lax.Precision.HIGHEST)

    def bn(z):
        m2 = jnp.mean(z * z, axis=(0, 2, 3))
        return z / jnp.sqrt(m2 + eps)[None, :, None, None]

    def relu(z):
        bs = z.shape[0] // dim
        mod2 = sum(z[d * bs:(d + 1) * bs] ** 2 for d in range(dim))
        mod = jnp.sqrt(mod2)
        coef = mod / jnp.maximum(1.0, mod)
        coef = jnp.concatenate([coef] * dim, axis=0)
        return coef * z

    out = relu(bn(conv(x, w1)))
    out = bn(conv(out, w2))
    out = out + x                      # identity shortcut
    return relu(out)


if __name__ == "__main__":
    key = jax.random.PRNGKey(0)
    k1, k2, k3 = jax.random.split(key, 3)

    N, C, H, W = 2, 16, 16, 16         # batch divisible by dim=2; planes=16 (group1)
    x = jax.random.normal(k1, (N, C, H, W), jnp.float32)
    scale = 1.0 / (9 * C) ** 0.5       # deterministic synthetic conv weights
    w1 = jax.random.normal(k2, (C, C, 3, 3), jnp.float32) * scale
    w2 = jax.random.normal(k3, (C, C, 3, 3), jnp.float32) * scale

    out = jax.jit(our_basic_block)(x, w1, w2)
    out = jax.block_until_ready(out)

    ref = _reference(x, w1, w2)
    assert out.shape == (N, C, H, W)
    if not bool(jnp.allclose(out, ref, rtol=2e-2, atol=2e-2)):
        err = float(jnp.max(jnp.abs(out - ref)))
        raise SystemExit(f"Pallas output does not match reference (max abs err {err:.3e})")

    print("KERNEL_OK")
</pallas_src>

<mosaic_0001>
module attributes {stable_mosaic.version = 11 : i64} {
  func.func @kernel(%arg0: i32, %arg1: memref<1x18x18x128xf32, #tpu.memory_space<vmem>>, %arg2: memref<1152x128xbf16, #tpu.memory_space<vmem>>, %arg3: memref<256x128xf32, #tpu.memory_space<vmem>>, %arg4: memref<1x8x128xf32, #tpu.memory_space<vmem>>) attributes {dimension_semantics = [#tpu.dimension_semantics<parallel>], iteration_bounds = array<i64: 2>, scalar_prefetch = 0 : i64, scratch_operands = 0 : i64, tpu.core_type = #tpu.core_type<tc>, window_params = [{transform_indices = @transform_0, window_bounds = array<i64: 1, 18, 18, 128>}, {pipeline_mode = #tpu.pipeline_mode<synchronous>, transform_indices = @transform_1, window_bounds = array<i64: 1152, 128>}, {transform_indices = @transform_2, window_bounds = array<i64: 256, 128>}, {transform_indices = @transform_3, window_bounds = array<i64: 1, 8, 128>}]} {
    %c0 = arith.constant 0 : index
    %c0_0 = arith.constant 0 : index
    %c0_1 = arith.constant 0 : index
    %c0_2 = arith.constant 0 : index
    %0 = vector.load %arg1[%c0, %c0_0, %c0_1, %c0_2] : memref<1x18x18x128xf32, #tpu.memory_space<vmem>>, vector<1x16x16x128xf32>
    %1 = vector.shape_cast %0 : vector<1x16x16x128xf32> to vector<16x16x128xf32>
    %2 = vector.shape_cast %1 : vector<16x16x128xf32> to vector<256x128xf32>
    %3 = arith.truncf %2 : vector<256x128xf32> to vector<256x128xbf16>
    %c0_3 = arith.constant 0 : index
    %c0_4 = arith.constant 0 : index
    %4 = vector.load %arg2[%c0_3, %c0_4] : memref<1152x128xbf16, #tpu.memory_space<vmem>>, vector<128x128xbf16>
    %cst = arith.constant dense<0.000000e+00> : vector<256x128xf32>
    %5 = tpu.matmul %3, %4, %cst {dimension_numbers = #tpu.dot_dimension_numbers<[1], [0], [0], [1], [0, 0, 1, 1], [], []>} : vector<256x128xbf16>, vector<128x128xbf16>, vector<256x128xf32> -> vector<256x128xf32>
    %c0_5 = arith.constant 0 : index
    %c0_6 = arith.constant 0 : index
    %6 = vector.load %arg3[%c0_5, %c0_6] : memref<256x128xf32, #tpu.memory_space<vmem>>, vector<256x128xf32>
    tpu.vector_store %arg3[%c0_5, %c0_6], %5 {strides = array<i32>} : memref<256x128xf32, #tpu.memory_space<vmem>>, vector<256x128xf32>,
    %c0_7 = arith.constant 0 : index
    %c0_8 = arith.constant 0 : index
    %c1 = arith.constant 1 : index
    %c0_9 = arith.constant 0 : index
    %7 = vector.load %arg1[%c0_7, %c0_8, %c1, %c0_9] : memref<1x18x18x128xf32, #tpu.memory_space<vmem>>, vector<1x16x16x128xf32>
    %8 = vector.shape_cast %7 : vector<1x16x16x128xf32> to vector<16x16x128xf32>
    %9 = vector.shape_cast %8 : vector<16x16x128xf32> to vector<256x128xf32>
    %10 = arith.truncf %9 : vector<256x128xf32> to vector<256x128xbf16>
    %c128 = arith.constant 128 : index
    %c0_10 = arith.constant 0 : index
    %11 = vector.load %arg2[%c128, %c0_10] : memref<1152x128xbf16, #tpu.memory_space<vmem>>, vector<128x128xbf16>
    %cst_11 = arith.constant dense<0.000000e+00> : vector<256x128xf32>
    %12 = tpu.matmul %10, %11, %cst_11 {dimension_numbers = #tpu.dot_dimension_numbers<[1], [0], [0], [1], [0, 0, 1, 1], [], []>} : vector<256x128xbf16>, vector<128x128xbf16>, vector<256x128xf32> -> vector<256x128xf32>
    %c0_12 = arith.constant 0 : index
    %c0_13 = arith.constant 0 : index
    %13 = vector.load %arg3[%c0_12, %c0_13] : memref<256x128xf32, #tpu.memory_space<vmem>>, vector<256x128xf32>
    %14 = arith.addf %13, %12 : vector<256x128xf32>
    %c0_14 = arith.constant 0 : index
    %c0_15 = arith.constant 0 : index
    %15 = vector.load %arg3[%c0_14, %c0_15] : memref<256x128xf32, #tpu.memory_space<vmem>>, vector<256x128xf32>
    tpu.vector_store %arg3[%c0_14, %c0_15], %14 {strides = array<i32>} : memref<256x128xf32, #tpu.memory_space<vmem>>, vector<256x128xf32>,
    %c0_16 = arith.constant 0 : index
    %c0_17 = arith.constant 0 : index
    %c2 = arith.constant 2 : index
    %c0_18 = arith.constant 0 : index
    %16 = vector.load %arg1[%c0_16, %c0_17, %c2, %c0_18] : memref<1x18x18x128xf32, #tpu.memory_space<vmem>>, vector<1x16x16x128xf32>
    %17 = vector.shape_cast %16 : vector<1x16x16x128xf32> to vector<16x16x128xf32>
    %18 = vector.shape_cast %17 : vector<16x16x128xf32> to vector<256x128xf32>
    %19 = arith.truncf %18 : vector<256x128xf32> to vector<256x128xbf16>
    %c256 = arith.constant 256 : index
    %c0_19 = arith.constant 0 : index
    %20 = vector.load %arg2[%c256, %c0_19] : memref<1152x128xbf16, #tpu.memory_space<vmem>>, vector<128x128xbf16>
    %cst_20 = arith.constant dense<0.000000e+00> : vector<256x128xf32>
    %21 = tpu.matmul %19, %20, %cst_20 {dimension_numbers = #tpu.dot_dimension_numbers<[1], [0], [0], [1], [0, 0, 1, 1], [], []>} : vector<256x128xbf16>, vector<128x128xbf16>, vector<256x128xf32> -> vector<256x128xf32>
    %c0_21 = arith.constant 0 : index
    %c0_22 = arith.constant 0 : index
    %22 = vector.load %arg3[%c0_21, %c0_22] : memref<256x128xf32, #tpu.memory_space<vmem>>, vector<256x128xf32>
    %23 = arith.addf %22, %21 : vector<256x128xf32>
    %c0_23 = arith.constant 0 : index
    %c0_24 = arith.constant 0 : index
    %24 = vector.load %arg3[%c0_23, %c0_24] : memref<256x128xf32, #tpu.memory_space<vmem>>, vector<256x128xf32>
    tpu.vector_store %arg3[%c0_23, %c0_24], %23 {strides = array<i32>} : memref<256x128xf32, #tpu.memory_space<vmem>>, vector<256x128xf32>,
    %c0_25 = arith.constant 0 : index
    %c1_26 = arith.constant 1 : index
    %c0_27 = arith.constant 0 : index
    %c0_28 = arith.constant 0 : index
    %25 = vector.load %arg1[%c0_25, %c1_26, %c0_27, %c0_28] : memref<1x18x18x128xf32, #tpu.memory_space<vmem>>, vector<1x16x16x128xf32>
    %26 = vector.shape_cast %25 : vector<1x16x16x128xf32> to vector<16x16x128xf32>
    %27 = vector.shape_cast %26 : vector<16x16x128xf32> to vector<256x128xf32>
    %28 = arith.truncf %27 : vector<256x128xf32> to vector<256x128xbf16>
    %c384 = arith.constant 384 : index
    %c0_29 = arith.constant 0 : index
    %29 = vector.load %arg2[%c384, %c0_29] : memref<1152x128xbf16, #tpu.memory_space<vmem>>, vector<128x128xbf16>
    %cst_30 = arith.constant dense<0.000000e+00> : vector<256x128xf32>
    %30 = tpu.matmul %28, %29, %cst_30 {dimension_numbers = #tpu.dot_dimension_numbers<[1], [0], [0], [1], [0, 0, 1, 1], [], []>} : vector<256x128xbf16>, vector<128x128xbf16>, vector<256x128xf32> -> vector<256x128xf32>
    %c0_31 = arith.constant 0 : index
    %c0_32 = arith.constant 0 : index
    %31 = vector.load %arg3[%c0_31, %c0_32] : memref<256x128xf32, #tpu.memory_space<vmem>>, vector<256x128xf32>
    %32 = arith.addf %31, %30 : vector<256x128xf32>
    %c0_33 = arith.constant 0 : index
    %c0_34 = arith.constant 0 : index
    %33 = vector.load %arg3[%c0_33, %c0_34] : memref<256x128xf32, #tpu.memory_space<vmem>>, vector<256x128xf32>
    tpu.vector_store %arg3[%c0_33, %c0_34], %32 {strides = array<i32>} : memref<256x128xf32, #tpu.memory_space<vmem>>, vector<256x128xf32>,
    %c0_35 = arith.constant 0 : index
    %c1_36 = arith.constant 1 : index
    %c1_37 = arith.constant 1 : index
    %c0_38 = arith.constant 0 : index
    %34 = vector.load %arg1[%c0_35, %c1_36, %c1_37, %c0_38] : memref<1x18x18x128xf32, #tpu.memory_space<vmem>>, vector<1x16x16x128xf32>
    %35 = vector.shape_cast %34 : vector<1x16x16x128xf32> to vector<16x16x128xf32>
    %36 = vector.shape_cast %35 : vector<16x16x128xf32> to vector<256x128xf32>
    %37 = arith.truncf %36 : vector<256x128xf32> to vector<256x128xbf16>
    %c512 = arith.constant 512 : index
    %c0_39 = arith.constant 0 : index
    %38 = vector.load %arg2[%c512, %c0_39] : memref<1152x128xbf16, #tpu.memory_space<vmem>>, vector<128x128xbf16>
    %cst_40 = arith.constant dense<0.000000e+00> : vector<256x128xf32>
    %39 = tpu.matmul %37, %38, %cst_40 {dimension_numbers = #tpu.dot_dimension_numbers<[1], [0], [0], [1], [0, 0, 1, 1], [], []>} : vector<256x128xbf16>, vector<128x128xbf16>, vector<256x128xf32> -> vector<256x128xf32>
    %c0_41 = arith.constant 0 : index
    %c0_42 = arith.constant 0 : index
    %40 = vector.load %arg3[%c0_41, %c0_42] : memref<256x128xf32, #tpu.memory_space<vmem>>, vector<256x128xf32>
    %41 = arith.addf %40, %39 : vector<256x128xf32>
    %c0_43 = arith.constant 0 : index
    %c0_44 = arith.constant 0 : index
    %42 = vector.load %arg3[%c0_43, %c0_44] : memref<256x128xf32, #tpu.memory_space<vmem>>, vector<256x128xf32>
    tpu.vector_store %arg3[%c0_43, %c0_44], %41 {strides = array<i32>} : memref<256x128xf32, #tpu.memory_space<vmem>>, vector<256x128xf32>,
    %c0_45 = arith.constant 0 : index
    %c1_46 = arith.constant 1 : index
    %c2_47 = arith.constant 2 : index
    %c0_48 = arith.constant 0 : index
    %43 = vector.load %arg1[%c0_45, %c1_46, %c2_47, %c0_48] : memref<1x18x18x128xf32, #tpu.memory_space<vmem>>, vector<1x16x16x128xf32>
    %44 = vector.shape_cast %43 : vector<1x16x16x128xf32> to vector<16x16x128xf32>
    %45 = vector.shape_cast %44 : vector<16x16x128xf32> to vector<256x128xf32>
    %46 = arith.truncf %45 : vector<256x128xf32> to vector<256x128xbf16>
    %c640 = arith.constant 640 : index
    %c0_49 = arith.constant 0 : index
    %47 = vector.load %arg2[%c640, %c0_49] : memref<1152x128xbf16, #tpu.memory_space<vmem>>, vector<128x128xbf16>
    %cst_50 = arith.constant dense<0.000000e+00> : vector<256x128xf32>
    %48 = tpu.matmul %46, %47, %cst_50 {dimension_numbers = #tpu.dot_dimension_numbers<[1], [0], [0], [1], [0, 0, 1, 1], [], []>} : vector<256x128xbf16>, vector<128x128xbf16>, vector<256x128xf32> -> vector<256x128xf32>
    %c0_51 = arith.constant 0 : index
    %c0_52 = arith.constant 0 : index
    %49 = vector.load %arg3[%c0_51, %c0_52] : memref<256x128xf32, #tpu.memory_space<vmem>>, vector<256x128xf32>
    %50 = arith.addf %49, %48 : vector<256x128xf32>
    %c0_53 = arith.constant 0 : index
    %c0_54 = arith.constant 0 : index
    %51 = vector.load %arg3[%c0_53, %c0_54] : memref<256x128xf32, #tpu.memory_space<vmem>>, vector<256x128xf32>
    tpu.vector_store %arg3[%c0_53, %c0_54], %50 {strides = array<i32>} : memref<256x128xf32, #tpu.memory_space<vmem>>, vector<256x128xf32>,
    %c0_55 = arith.constant 0 : index
    %c2_56 = arith.constant 2 : index
    %c0_57 = arith.constant 0 : index
    %c0_58 = arith.constant 0 : index
    %52 = vector.load %arg1[%c0_55, %c2_56, %c0_57, %c0_58] : memref<1x18x18x128xf32, #tpu.memory_space<vmem>>, vector<1x16x16x128xf32>
    %53 = vector.shape_cast %52 : vector<1x16x16x128xf32> to vector<16x16x128xf32>
    %54 = vector.shape_cast %53 : vector<16x16x128xf32> to vector<256x128xf32>
    %55 = arith.truncf %54 : vector<256x128xf32> to vector<256x128xbf16>
    %c768 = arith.constant 768 : index
    %c0_59 = arith.constant 0 : index
    %56 = vector.load %arg2[%c768, %c0_59] : memref<1152x128xbf16, #tpu.memory_space<vmem>>, vector<128x128xbf16>
    %cst_60 = arith.constant dense<0.000000e+00> : vector<256x128xf32>
    %57 = tpu.matmul %55, %56, %cst_60 {dimension_numbers = #tpu.dot_dimension_numbers<[1], [0], [0], [1], [0, 0, 1, 1], [], []>} : vector<256x128xbf16>, vector<128x128xbf16>, vector<256x128xf32> -> vector<256x128xf32>
    %c0_61 = arith.constant 0 : index
    %c0_62 = arith.constant 0 : index
    %58 = vector.load %arg3[%c0_61, %c0_62] : memref<256x128xf32, #tpu.memory_space<vmem>>, vector<256x128xf32>
    %59 = arith.addf %58, %57 : vector<256x128xf32>
    %c0_63 = arith.constant 0 : index
    %c0_64 = arith.constant 0 : index
    %60 = vector.load %arg3[%c0_63, %c0_64] : memref<256x128xf32, #tpu.memory_space<vmem>>, vector<256x128xf32>
    tpu.vector_store %arg3[%c0_63, %c0_64], %59 {strides = array<i32>} : memref<256x128xf32, #tpu.memory_space<vmem>>, vector<256x128xf32>,
    %c0_65 = arith.constant 0 : index
    %c2_66 = arith.constant 2 : index
    %c1_67 = arith.constant 1 : index
    %c0_68 = arith.constant 0 : index
    %61 = vector.load %arg1[%c0_65, %c2_66, %c1_67, %c0_68] : memref<1x18x18x128xf32, #tpu.memory_space<vmem>>, vector<1x16x16x128xf32>
    %62 = vector.shape_cast %61 : vector<1x16x16x128xf32> to vector<16x16x128xf32>
    %63 = vector.shape_cast %62 : vector<16x16x128xf32> to vector<256x128xf32>
    %64 = arith.truncf %63 : vector<256x128xf32> to vector<256x128xbf16>
    %c896 = arith.constant 896 : index
    %c0_69 = arith.constant 0 : index
    %65 = vector.load %arg2[%c896, %c0_69] : memref<1152x128xbf16, #tpu.memory_space<vmem>>, vector<128x128xbf16>
    %cst_70 = arith.constant dense<0.000000e+00> : vector<256x128xf32>
    %66 = tpu.matmul %64, %65, %cst_70 {dimension_numbers = #tpu.dot_dimension_numbers<[1], [0], [0], [1], [0, 0, 1, 1], [], []>} : vector<256x128xbf16>, vector<128x128xbf16>, vector<256x128xf32> -> vector<256x128xf32>
    %c0_71 = arith.constant 0 : index
    %c0_72 = arith.constant 0 : index
    %67 = vector.load %arg3[%c0_71, %c0_72] : memref<256x128xf32, #tpu.memory_space<vmem>>, vector<256x128xf32>
    %68 = arith.addf %67, %66 : vector<256x128xf32>
    %c0_73 = arith.constant 0 : index
    %c0_74 = arith.constant 0 : index
    %69 = vector.load %arg3[%c0_73, %c0_74] : memref<256x128xf32, #tpu.memory_space<vmem>>, vector<256x128xf32>
    tpu.vector_store %arg3[%c0_73, %c0_74], %68 {strides = array<i32>} : memref<256x128xf32, #tpu.memory_space<vmem>>, vector<256x128xf32>,
    %c0_75 = arith.constant 0 : index
    %c2_76 = arith.constant 2 : index
    %c2_77 = arith.constant 2 : index
    %c0_78 = arith.constant 0 : index
    %70 = vector.load %arg1[%c0_75, %c2_76, %c2_77, %c0_78] : memref<1x18x18x128xf32, #tpu.memory_space<vmem>>, vector<1x16x16x128xf32>
    %71 = vector.shape_cast %70 : vector<1x16x16x128xf32> to vector<16x16x128xf32>
    %72 = vector.shape_cast %71 : vector<16x16x128xf32> to vector<256x128xf32>
    %73 = arith.truncf %72 : vector<256x128xf32> to vector<256x128xbf16>
    %c1024 = arith.constant 1024 : index
    %c0_79 = arith.constant 0 : index
    %74 = vector.load %arg2[%c1024, %c0_79] : memref<1152x128xbf16, #tpu.memory_space<vmem>>, vector<128x128xbf16>
    %cst_80 = arith.constant dense<0.000000e+00> : vector<256x128xf32>
    %75 = tpu.matmul %73, %74, %cst_80 {dimension_numbers = #tpu.dot_dimension_numbers<[1], [0], [0], [1], [0, 0, 1, 1], [], []>} : vector<256x128xbf16>, vector<128x128xbf16>, vector<256x128xf32> -> vector<256x128xf32>
    %c0_81 = arith.constant 0 : index
    %c0_82 = arith.constant 0 : index
    %76 = vector.load %arg3[%c0_81, %c0_82] : memref<256x128xf32, #tpu.memory_space<vmem>>, vector<256x128xf32>
    %77 = arith.addf %76, %75 : vector<256x128xf32>
    %c0_83 = arith.constant 0 : index
    %c0_84 = arith.constant 0 : index
    %78 = vector.load %arg3[%c0_83, %c0_84] : memref<256x128xf32, #tpu.memory_space<vmem>>, vector<256x128xf32>
    tpu.vector_store %arg3[%c0_83, %c0_84], %77 {strides = array<i32>} : memref<256x128xf32, #tpu.memory_space<vmem>>, vector<256x128xf32>,
    %c0_85 = arith.constant 0 : index
    %c0_86 = arith.constant 0 : index
    %79 = vector.load %arg3[%c0_85, %c0_86] : memref<256x128xf32, #tpu.memory_space<vmem>>, vector<256x128xf32>
    %80 = arith.mulf %79, %79 : vector<256x128xf32>
    %81 = vector.shape_cast %80 : vector<256x128xf32> to vector<32x8x128xf32>
    %cst_87 = arith.constant dense<0.000000e+00> : vector<8x128xf32>
    %82 = vector.multi_reduction <add>, %81, %cst_87 [0] : vector<32x8x128xf32> to vector<8x128xf32>
    %c0_88 = arith.constant 0 : index
    %c0_89 = arith.constant 0 : index
    %c0_90 = arith.constant 0 : index
    %83 = vector.load %arg4[%c0_88, %c0_89, %c0_90] : memref<1x8x128xf32, #tpu.memory_space<vmem>>, vector<1x8x128xf32>
    %84 = vector.shape_cast %83 : vector<1x8x128xf32> to vector<8x128xf32>
    %85 = vector.shape_cast %82 : vector<8x128xf32> to vector<1x8x128xf32>
    tpu.vector_store %arg4[%c0_88, %c0_89, %c0_90], %85 {strides = array<i32>} : memref<1x8x128xf32, #tpu.memory_space<vmem>>, vector<1x8x128xf32>,
    return
  }
  func.func @transform_0(%arg0: i32) -> (i32, i32, i32, i32) {
    %c0_i32 = arith.constant 0 : i32
    %c0_i32_0 = arith.constant 0 : i32
    %c0_i32_1 = arith.constant 0 : i32
    %c0_i32_2 = arith.constant 0 : i32
    return %arg0, %c0_i32, %c0_i32_0, %c0_i32_1 : i32, i32, i32, i32
  }
  func.func @transform_1(%arg0: i32) -> (i32, i32) {
    %c0_i32 = arith.constant 0 : i32
    %c0_i32_0 = arith.constant 0 : i32
    %c0_i32_1 = arith.constant 0 : i32
    return %c0_i32, %c0_i32_0 : i32, i32
  }
  func.func @transform_2(%arg0: i32) -> (i32, i32) {
    %c0_i32 = arith.constant 0 : i32
    %c0_i32_0 = arith.constant 0 : i32
    return %arg0, %c0_i32 : i32, i32
  }
  func.func @transform_3(%arg0: i32) -> (i32, i32, i32) {
    %c0_i32 = arith.constant 0 : i32
    %c0_i32_0 = arith.constant 0 : i32
    %c0_i32_1 = arith.constant 0 : i32
    return %arg0, %c0_i32, %c0_i32_0 : i32, i32, i32
  }
}

module attributes {stable_mosaic.version = 11 : i64} {
  func.func @_post_kernel(%arg0: i32, %arg1: memref<1x128xf32, #tpu.memory_space<vmem>>, %arg2: memref<2x256x128xf32, #tpu.memory_space<vmem>>, %arg3: memref<2x256x128xf32, #tpu.memory_space<vmem>>) attributes {dimension_semantics = [#tpu.dimension_semantics<parallel>], iteration_bounds = array<i64: 1>, scalar_prefetch = 0 : i64, scratch_operands = 0 : i64, tpu.core_type = #tpu.core_type<tc>, window_params = [{pipeline_mode = #tpu.pipeline_mode<synchronous>, transform_indices = @transform_0, window_bounds = array<i64: 1, 128>}, {transform_indices = @transform_1, window_bounds = array<i64: 2, 256, 128>}, {transform_indices = @transform_2, window_bounds = array<i64: 2, 256, 128>}]} {
    %c0 = arith.constant 0 : index
    %c0_0 = arith.constant 0 : index
    %c0_1 = arith.constant 0 : index
    %0 = vector.load %arg2[%c0, %c0_0, %c0_1] : memref<2x256x128xf32, #tpu.memory_space<vmem>>, vector<2x256x128xf32>
    %c0_2 = arith.constant 0 : index
    %c0_3 = arith.constant 0 : index
    %1 = vector.load %arg1[%c0_2, %c0_3] : memref<1x128xf32, #tpu.memory_space<vmem>>, vector<1x128xf32>
    %2 = vector.shape_cast %1 : vector<1x128xf32> to vector<1x1x128xf32>
    %3 = vector.broadcast %2 : vector<1x1x128xf32> to vector<2x256x128xf32>
    %4 = arith.mulf %0, %3 : vector<2x256x128xf32>
    %5 = arith.mulf %4, %4 : vector<2x256x128xf32>
    %cst = arith.constant dense<0.000000e+00> : vector<256x128xf32>
    %6 = vector.multi_reduction <add>, %5, %cst [0] : vector<2x256x128xf32> to vector<256x128xf32>
    %7 = vector.shape_cast %6 : vector<256x128xf32> to vector<1x256x128xf32>
    %8 = math.sqrt %7 : vector<1x256x128xf32>
    %cst_4 = arith.constant 1.000000e+00 : f32
    %9 = vector.broadcast %cst_4 : f32 to vector<1x256x128xf32>
    %10 = arith.minimumf %8, %9 : vector<1x256x128xf32>
    %11 = vector.broadcast %10 : vector<1x256x128xf32> to vector<2x256x128xf32>
    %12 = arith.mulf %11, %4 : vector<2x256x128xf32>
    %c0_5 = arith.constant 0 : index
    %c0_6 = arith.constant 0 : index
    %c0_7 = arith.constant 0 : index
    %13 = vector.load %arg3[%c0_5, %c0_6, %c0_7] : memref<2x256x128xf32, #tpu.memory_space<vmem>>, vector<2x256x128xf32>
    tpu.vector_store %arg3[%c0_5, %c0_6, %c0_7], %12 {strides = array<i32>} : memref<2x256x128xf32, #tpu.memory_space<vmem>>, vector<2x256x128xf32>,
    return
  }
  func.func @transform_0(%arg0: i32) -> (i32, i32) {
    %c0_i32 = arith.constant 0 : i32
    %c0_i32_0 = arith.constant 0 : i32
    %c0_i32_1 = arith.constant 0 : i32
    return %c0_i32, %c0_i32_0 : i32, i32
  }
  func.func @transform_1(%arg0: i32) -> (i32, i32, i32) {
    %c0_i32 = arith.constant 0 : i32
    %c0_i32_0 = arith.constant 0 : i32
    %c0_i32_1 = arith.constant 0 : i32
    return %c0_i32, %arg0, %c0_i32_0 : i32, i32, i32
  }
  func.func @transform_2(%arg0: i32) -> (i32, i32, i32) {
    %c0_i32 = arith.constant 0 : i32
    %c0_i32_0 = arith.constant 0 : i32
    %c0_i32_1 = arith.constant 0 : i32
    return %c0_i32, %arg0, %c0_i32_0 : i32, i32, i32
  }
}

module attributes {stable_mosaic.version = 11 : i64} {
  func.func @_post_res_kernel(%arg0: i32, %arg1: memref<1x128xf32, #tpu.memory_space<vmem>>, %arg2: memref<2x256x128xf32, #tpu.memory_space<vmem>>, %arg3: memref<2x256x128xf32, #tpu.memory_space<vmem>>, %arg4: memref<2x256x128xf32, #tpu.memory_space<vmem>>) attributes {dimension_semantics = [#tpu.dimension_semantics<parallel>], iteration_bounds = array<i64: 1>, scalar_prefetch = 0 : i64, scratch_operands = 0 : i64, tpu.core_type = #tpu.core_type<tc>, window_params = [{pipeline_mode = #tpu.pipeline_mode<synchronous>, transform_indices = @transform_0, window_bounds = array<i64: 1, 128>}, {transform_indices = @transform_1, window_bounds = array<i64: 2, 256, 128>}, {transform_indices = @transform_2, window_bounds = array<i64: 2, 256, 128>}, {transform_indices = @transform_3, window_bounds = array<i64: 2, 256, 128>}]} {
    %c0 = arith.constant 0 : index
    %c0_0 = arith.constant 0 : index
    %c0_1 = arith.constant 0 : index
    %0 = vector.load %arg2[%c0, %c0_0, %c0_1] : memref<2x256x128xf32, #tpu.memory_space<vmem>>, vector<2x256x128xf32>
    %c0_2 = arith.constant 0 : index
    %c0_3 = arith.constant 0 : index
    %1 = vector.load %arg1[%c0_2, %c0_3] : memref<1x128xf32, #tpu.memory_space<vmem>>, vector<1x128xf32>
    %2 = vector.shape_cast %1 : vector<1x128xf32> to vector<1x1x128xf32>
    %3 = vector.broadcast %2 : vector<1x1x128xf32> to vector<2x256x128xf32>
    %4 = arith.mulf %0, %3 : vector<2x256x128xf32>
    %c0_4 = arith.constant 0 : index
    %c0_5 = arith.constant 0 : index
    %c0_6 = arith.constant 0 : index
    %5 = vector.load %arg3[%c0_4, %c0_5, %c0_6] : memref<2x256x128xf32, #tpu.memory_space<vmem>>, vector<2x256x128xf32>
    %6 = arith.addf %4, %5 : vector<2x256x128xf32>
    %7 = arith.mulf %6, %6 : vector<2x256x128xf32>
    %cst = arith.constant dense<0.000000e+00> : vector<256x128xf32>
    %8 = vector.multi_reduction <add>, %7, %cst [0] : vector<2x256x128xf32> to vector<256x128xf32>
    %9 = vector.shape_cast %8 : vector<256x128xf32> to vector<1x256x128xf32>
    %10 = math.sqrt %9 : vector<1x256x128xf32>
    %cst_7 = arith.constant 1.000000e+00 : f32
    %11 = vector.broadcast %cst_7 : f32 to vector<1x256x128xf32>
    %12 = arith.minimumf %10, %11 : vector<1x256x128xf32>
    %13 = vector.broadcast %12 : vector<1x256x128xf32> to vector<2x256x128xf32>
    %14 = arith.mulf %13, %6 : vector<2x256x128xf32>
    %c0_8 = arith.constant 0 : index
    %c0_9 = arith.constant 0 : index
    %c0_10 = arith.constant 0 : index
    %15 = vector.load %arg4[%c0_8, %c0_9, %c0_10] : memref<2x256x128xf32, #tpu.memory_space<vmem>>, vector<2x256x128xf32>
    tpu.vector_store %arg4[%c0_8, %c0_9, %c0_10], %14 {strides = array<i32>} : memref<2x256x128xf32, #tpu.memory_space<vmem>>, vector<2x256x128xf32>,
    return
  }
  func.func @transform_0(%arg0: i32) -> (i32, i32) {
    %c0_i32 = arith.constant 0 : i32
    %c0_i32_0 = arith.constant 0 : i32
    %c0_i32_1 = arith.constant 0 : i32
    return %c0_i32, %c0_i32_0 : i32, i32
  }
  func.func @transform_1(%arg0: i32) -> (i32, i32, i32) {
    %c0_i32 = arith.constant 0 : i32
    %c0_i32_0 = arith.constant 0 : i32
    %c0_i32_1 = arith.constant 0 : i32
    return %c0_i32, %arg0, %c0_i32_0 : i32, i32, i32
  }
  func.func @transform_2(%arg0: i32) -> (i32, i32, i32) {
    %c0_i32 = arith.constant 0 : i32
    %c0_i32_0 = arith.constant 0 : i32
    %c0_i32_1 = arith.constant 0 : i32
    return %c0_i32, %arg0, %c0_i32_0 : i32, i32, i32
  }
  func.func @transform_3(%arg0: i32) -> (i32, i32, i32) {
    %c0_i32 = arith.constant 0 : i32
    %c0_i32_0 = arith.constant 0 : i32
    %c0_i32_1 = arith.constant 0 : i32
    return %c0_i32, %arg0, %c0_i32_0 : i32, i32, i32
  }
}

</mosaic_0001>

<bundles_post_ra>
// kernel: our_basic_block.7
= control target key start
LH: loop header
LB: loop body
LE: loop exit
PB: predicated region body
PF: predicated region fallthrough
CT: control target
= control target key end

     0   :  { %s2380_s0 = inlined_call_operand.vmem [shape: f32[1,128], index: 0, kind: input, shape index: {}]   ;;  %s2381_s1 = inlined_call_operand.vmem [shape: f32[2,256,128], index: 1, kind: input, shape index: {}]   ;;  %s2382_s2 = inlined_call_operand.vmem [shape: f32[2,256,128], index: 2, kind: input, shape index: {}]   ;;  %s2383_s3 = inlined_call_operand.vmem [shape: f32[2,256,128], index: 3, kind: output, shape index: {}]  }
   0x1   :  { %v14_v0 = vld [vmem:[%s2381_s1] sm:$0xff]  ;;  %v15_v7 = vld [vmem:[%s2381_s1 + $0x8] sm:$0xff]  ;;  %v16_v15 = vld [vmem:[%s2381_s1 + $0x10] sm:$0xff] }
   0x2   :  { %v46_v1 = vld [vmem:[%s2381_s1 + $0x100] sm:$0xff]  ;;  %v47_v8 = vld [vmem:[%s2381_s1 + $0x108] sm:$0xff]  ;;  %v48_v16 = vld [vmem:[%s2381_s1 + $0x110] sm:$0xff] }
   0x3   :  { %v856_v2 = vld [vmem:[%s2380_s0] ss:$0 sm:$0xff]  ;;  %v150_v10 = vld [vmem:[%s2382_s2 + $0x8] sm:$0xff]  ;;  %v151_v17 = vld [vmem:[%s2382_s2 + $0x10] sm:$0xff] }
   0x4   :  { %v85_v3 = vmul.f32 %v856_v2, %v14_v0  ;;  %v117_v4 = vmul.f32 %v856_v2, %v46_v1  ;;  %v149_v5 = vld [vmem:[%s2382_s2] sm:$0xff]  ;;  %v86_v9 = vmul.f32 %v856_v2, %v15_v7  ;;  %v182_v11 = vld [vmem:[%s2382_s2 + $0x108] sm:$0xff]  ;;  %v118_v14 = vmul.f32 %v856_v2, %v47_v8  ;;  %v183_v21 = vld [vmem:[%s2382_s2 + $0x110] sm:$0xff] }
   0x5   :  { %v181_v6 = vld [vmem:[%s2382_s2 + $0x100] sm:$0xff]  ;;  %v87_v19 = vmul.f32 %v856_v2, %v16_v15  ;;  %v119_v20 = vmul.f32 %v856_v2, %v48_v16  ;;  %v17_v22 = vld [vmem:[%s2381_s1 + $0x18] sm:$0xff]  ;;  %v19_v46 = vld [vmem:[%s2381_s1 + $0x28] sm:$0xff] }
   0x6   :  { %v879_v12 = vadd.f32 %v149_v5, %v85_v3  ;;  %v881_v13 = vadd.f32 %v181_v6, %v117_v4  ;;  %v893_v18 = vadd.f32 %v150_v10, %v86_v9  ;;  %v49_v23 = vld [vmem:[%s2381_s1 + $0x118] sm:$0xff]  ;;  %v910_v26 = vadd.f32 %v182_v11, %v118_v14  ;;  %v18_v30 = vld [vmem:[%s2381_s1 + $0x20] sm:$0xff]  ;;  %v51_v47 = vld [vmem:[%s2381_s1 + $0x128] sm:$0xff] }
   0x7   :  { %v88_v27 = vmul.f32 %v856_v2, %v17_v22  ;;  %v152_v28 = vld [vmem:[%s2382_s2 + $0x18] sm:$0xff]  ;;  %v924_v32 = vadd.f32 %v151_v17, %v87_v19  ;;  %v926_v33 = vadd.f32 %v183_v21, %v119_v20  ;;  %v120_v34 = vmul.f32 %v856_v2, %v49_v23  ;;  %v50_v35 = vld [vmem:[%s2381_s1 + $0x120] sm:$0xff]  ;;  %v154_v56 = vld [vmem:[%s2382_s2 + $0x28] sm:$0xff] }
   0x8   :  { %v277_v24 = vmul.f32 %v879_v12, %v879_v12  ;;  %v309_v25 = vmul.f32 %v881_v13, %v881_v13  ;;  %v184_v29 = vld [vmem:[%s2382_s2 + $0x118] sm:$0xff]  ;;  %v278_v31 = vmul.f32 %v893_v18, %v893_v18  ;;  %v310_v37 = vmul.f32 %v910_v26, %v910_v26  ;;  %v153_v40 = vld [vmem:[%s2382_s2 + $0x20] sm:$0xff]  ;;  %v186_v57 = vld [vmem:[%s2382_s2 + $0x128] sm:$0xff] }
   0x9   :  { %v936_v38 = vadd.f32 %v152_v28, %v88_v27  ;;  %v89_v39 = vmul.f32 %v856_v2, %v18_v30  ;;  %v279_v41 = vmul.f32 %v924_v32, %v924_v32  ;;  %v311_v42 = vmul.f32 %v926_v33, %v926_v33  ;;  %v185_v45 = vld [vmem:[%s2382_s2 + $0x120] sm:$0xff]  ;;  %v20_v58 = vld [vmem:[%s2381_s1 + $0x30] sm:$0xff]  ;;  %v21_v60 = vld [vmem:[%s2381_s1 + $0x38] sm:$0xff] }
   0xa   :  { %v932_v36 = vadd.f32 %v309_v25, %v277_v24  ;;  %v946_v43 = vadd.f32 %v184_v29, %v120_v34  ;;  %v121_v44 = vmul.f32 %v856_v2, %v50_v35  ;;  %v959_v48 = vadd.f32 %v310_v37, %v278_v31  ;;  %v52_v59 = vld [vmem:[%s2381_s1 + $0x130] sm:$0xff]  ;;  %v53_v7 = vld [vmem:[%s2381_s1 + $0x138] sm:$0xff]  ;;  %v22_v10 = vld [vmem:[%s2381_s1 + $0x40] sm:$0xff] }
   0xb   :  { %v961_v49 = vadd.f32 %v311_v42, %v279_v41  ;;  %v280_v50 = vmul.f32 %v936_v38, %v936_v38  ;;  %v967_v52 = vadd.f32 %v153_v40, %v89_v39  ;;  %v90_v54 = vmul.f32 %v856_v2, %v19_v46  ;;  %v155_v1 = vld [vmem:[%s2382_s2 + $0x30] sm:$0xff]  ;;  %v156_v9 = vld [vmem:[%s2382_s2 + $0x38] sm:$0xff]  ;;  %v54_v23 = vld [vmem:[%s2381_s1 + $0x140] sm:$0xff] }
   0xc   :  { %762 = vrsqrt.f32 %v932_v36  ;;  %v312_v51 = vmul.f32 %v946_v43, %v946_v43  ;;  %v969_v53 = vadd.f32 %v185_v45, %v121_v44  ;;  %v122_v55 = vmul.f32 %v856_v2, %v51_v47  ;;  %v187_v3 = vld [vmem:[%s2382_s2 + $0x130] sm:$0xff]  ;;  %v188_v19 = vld [vmem:[%s2382_s2 + $0x138] sm:$0xff]  ;;  %v157_v25 = vld [vmem:[%s2382_s2 + $0x40] sm:$0xff] }
   0xd   :  { %764 = vrsqrt.f32 %v959_v48  ;;  %v281_v62 = vmul.f32 %v967_v52, %v967_v52  ;;  %v996_v0 = vadd.f32 %v154_v56, %v90_v54  ;;  %v91_v5 = vmul.f32 %v856_v2, %v20_v58  ;;  %v23_v28 = vld [vmem:[%s2381_s1 + $0x48] sm:$0xff]  ;;  %v189_v35 = vld [vmem:[%s2382_s2 + $0x140] sm:$0xff] }
   0xe   :  { %766 = vrsqrt.f32 %v961_v49  ;;  %v990_v61 = vadd.f32 %v312_v51, %v280_v50  ;;  %v313_v63 = vmul.f32 %v969_v53, %v969_v53  ;;  %v1004_v4 = vadd.f32 %v186_v57, %v122_v55  ;;  %v55_v41 = vld [vmem:[%s2381_s1 + $0x148] sm:$0xff] }
   0xf   :  { %v123_v6 = vmul.f32 %v856_v2, %v52_v59  ;;  %v92_v8 = vmul.f32 %v856_v2, %v21_v60  ;;  %vm375_vm0 = vcmp.eq.f32.partialorder %v932_v36, inf  ;;  %vm377_vm1 = vcmp.eq.f32.partialorder %v932_v36, 0.0  ;;  %v158_v54 = vld [vmem:[%s2382_s2 + $0x48] sm:$0xff] }
  0x10   :  { %v378_v11 = vand.u32 2147483648, %v932_v36  ;;  %768 = vrsqrt.f32 %v990_v61  ;;  %vm382_vm2 = vcmp.eq.f32.partialorder %v959_v48, inf  ;;  %v1023_v14 = vadd.f32 %v313_v63, %v281_v62  ;;  %v190_v57 = vld [vmem:[%s2382_s2 + $0x148] sm:$0xff] }
  0x11   :  { %v282_v15 = vmul.f32 %v996_v0, %v996_v0  ;;  %v314_v16 = vmul.f32 %v1004_v4, %v1004_v4  ;;  %v1029_v17 = vadd.f32 %v155_v1, %v91_v5  ;;  %v1034_v20 = vadd.f32 %v187_v3, %v123_v6 }
  0x12   :  { %v124_v21 = vmul.f32 %v856_v2, %v53_v7  ;;  %v1037_v22 = vadd.f32 %v156_v9, %v92_v8  ;;  %v93_v24 = vmul.f32 %v856_v2, %v22_v10  ;;  %vm384_vm3 = vcmp.eq.f32.partialorder %v959_v48, 0.0  ;;  %v24_v7 = vld [vmem:[%s2381_s1 + $0x50] sm:$0xff] }
  0x13   :  { %v385_v27 = vand.u32 2147483648, %v959_v48  ;;  %vm389_vm4 = vcmp.eq.f32.partialorder %v961_v49, inf  ;;  %770 = vrsqrt.f32 %v1023_v14  ;;  %v1053_v29 = vadd.f32 %v314_v16, %v282_v15  ;;  %v56_v16 = vld [vmem:[%s2381_s1 + $0x150] sm:$0xff] }
  0x14   :  { %v283_v30 = vmul.f32 %v1029_v17, %v1029_v17  ;;  %v315_v31 = vmul.f32 %v1034_v20, %v1034_v20  ;;  %v1059_v34 = vadd.f32 %v188_v19, %v124_v21  ;;  %vm391_vm5 = vcmp.eq.f32.partialorder %v961_v49, 0.0 }
  0x15   :  { %v392_v37 = vand.u32 2147483648, %v961_v49  ;;  %v125_v39 = vmul.f32 %v856_v2, %v54_v23  ;;  %v1067_v40 = vadd.f32 %v157_v25, %v93_v24  ;;  %vm396_vm6 = vcmp.eq.f32.partialorder %v990_v61, inf }
  0x16   :  { %772 = vrsqrt.f32 %v1053_v29  ;;  %v284_v44 = vmul.f32 %v1037_v22, %v1037_v22  ;;  %v94_v45 = vmul.f32 %v856_v2, %v23_v28  ;;  %v1078_v47 = vadd.f32 %v315_v31, %v283_v30 }
  0x17   :  { %v316_v50 = vmul.f32 %v1059_v34, %v1059_v34  ;;  %v1082_v51 = vadd.f32 %v189_v35, %v125_v39  ;;  %vm398_vm7 = vcmp.eq.f32.partialorder %v990_v61, 0.0  ;;  %v399_v55 = vand.u32 2147483648, %v990_v61 }
  0x18   :  { %vm403_vm8 = vcmp.eq.f32.partialorder %v1023_v14, inf  ;;  %v126_v56 = vmul.f32 %v856_v2, %v55_v41  ;;  %vm405_vm9 = vcmp.eq.f32.partialorder %v1023_v14, 0.0  ;;  %v406_v60 = vand.u32 2147483648, %v1023_v14 }
  0x19   :  { %v763_v42 = vpop.eup %762  ;;  %774 = vrsqrt.f32 %v1078_v47  ;;  %v285_v62 = vmul.f32 %v1067_v40, %v1067_v40  ;;  %v1107_v5 = vadd.f32 %v316_v50, %v284_v44  ;;  %v1109_v6 = vadd.f32 %v158_v54, %v94_v45  ;;  %v191_v44 = vld [vmem:[%s2382_s2 + $0x150] sm:$0xff]  ;;  %v25_v45 = vld [vmem:[%s2381_s1 + $0x58] sm:$0xff] }
  0x1a   :  { %v374_v46 = vmul.f32 %v763_v42, %v932_v36  ;;  %v765_v58 = vpop.eup %764  ;;  %vm410_vm10 = vcmp.eq.f32.partialorder %v1053_v29, inf  ;;  %v1119_v10 = vadd.f32 %v190_v57, %v126_v56  ;;  %vm412_vm11 = vcmp.eq.f32.partialorder %v1053_v29, 0.0 }
  0x1b   :  { %v767_v63 = vpop.eup %766  ;;  %v381_v3 = vmul.f32 %v765_v58, %v959_v48  ;;  %v413_v15 = vand.u32 2147483648, %v1053_v29  ;;  %776 = vrsqrt.f32 %v1107_v5  ;;  %v95_v25 = vmul.f32 %v856_v2, %v24_v7 }
  0x1c   :  { %v376_v59 = vsel %vm375_vm0, %v932_v36, %v374_v46  ;;  %v388_v9 = vmul.f32 %v767_v63, %v961_v49  ;;  %v317_v36 = vmul.f32 %v1082_v51, %v1082_v51  ;;  %vm417_vm12 = vcmp.eq.f32.partialorder %v1078_v47, inf }
  0x1d   :  { %v1104_v1 = vsel %vm377_vm1, %v378_v11, %v376_v59  ;;  %v383_v11 = vsel %vm382_vm2, %v959_v48, %v381_v3  ;;  %v769_v19 = vpop.eup %768  ;;  %v286_v48 = vmul.f32 %v1109_v6, %v1109_v6  ;;  %vm419_vm13 = vcmp.eq.f32.partialorder %v1078_v47, 0.0  ;;  %v160_v3 = vld [vmem:[%s2382_s2 + $0x58] sm:$0xff] }
  0x1e   :  { %v2394_v8 = vmin.f32 %v1104_v1, 1.0  ;;  %v1135_v23 = vsel %vm384_vm3, %v385_v27, %v383_v11  ;;  %v390_v24 = vsel %vm389_vm4, %v961_v49, %v388_v9  ;;  %v395_v31 = vmul.f32 %v769_v19, %v990_v61  ;;  %v192_v11 = vld [vmem:[%s2382_s2 + $0x158] sm:$0xff] }
  0x1f   :  { %v2393_v28 = vmin.f32 %v1135_v23, 1.0  ;;  %v1144_v30 = vsel %vm391_vm5, %v392_v37, %v390_v24  ;;  %v1147_v35 = vadd.f32 %v317_v36, %v285_v62  ;;  %v318_v27 = vmul.f32 %v1119_v10, %v1119_v10  ;;  %v159_v37 = vld [vmem:[%s2382_s2 + $0x50] sm:$0xff] }
  0x20   :  { %v629_v21 = vmul.f32 %v2394_v8, %v879_v12  ;;  %v2392_v12 = vmin.f32 %v1144_v30, 1.0  ;;  %v127_v49 = vmul.f32 %v856_v2, %v56_v16  ;;  %v771_v39 = vpop.eup %770  ;;  %v397_v42 = vsel %vm396_vm6, %v990_v61, %v395_v31  ;;  %v58_v31 = vld [vmem:[%s2381_s1 + $0x160] sm:$0xff] }
  0x21   :  { %v630_v41 = vmul.f32 %v2393_v28, %v893_v18  ;;  %778 = vrsqrt.f32 %v1147_v35  ;;  %v57_v18 = vld [vmem:[%s2381_s1 + $0x158] sm:$0xff]  ;;  %v1183_v50 = vsel %vm398_vm7, %v399_v55, %v397_v42  ;;  %v402_v54 = vmul.f32 %v771_v39, %v1023_v14 }
  0x22   :  { %693 = vst [vmem:[%s2383_s3] sm:$0xff] %v629_v21  ;;  %v631_v46 = vmul.f32 %v2392_v12, %v924_v32  ;;  %v2391_v56 = vmin.f32 %v1183_v50, 1.0  ;;  %v420_v57 = vand.u32 2147483648, %v1078_v47  ;;  %v1192_v58 = vadd.f32 %v318_v27, %v286_v48  ;;  %v27_v48 = vld [vmem:[%s2381_s1 + $0x68] sm:$0xff] }
  0x23   :  { %694 = vst [vmem:[%s2383_s3 + $0x8] sm:$0xff] %v630_v41  ;;  %v1194_v59 = vadd.f32 %v159_v37, %v95_v25  ;;  %v773_v32 = vpop.eup %772  ;;  %v404_v61 = vsel %vm403_vm8, %v1023_v14, %v402_v54  ;;  %v1202_v55 = vadd.f32 %v191_v44, %v127_v49  ;;  %v96_v62 = vmul.f32 %v856_v2, %v25_v45  ;;  %v26_v14 = vld [vmem:[%s2381_s1 + $0x60] sm:$0xff] }
  0x24   :  { %695 = vst [vmem:[%s2383_s3 + $0x10] sm:$0xff] %v631_v46  ;;  %v128_v63 = vmul.f32 %v856_v2, %v57_v18  ;;  %v632_v7 = vmul.f32 %v2391_v56, %v936_v38  ;;  %v1214_v9 = vsel %vm405_vm9, %v406_v60, %v404_v61  ;;  %v409_v36 = vmul.f32 %v773_v32, %v1053_v29  ;;  %v161_v46 = vld [vmem:[%s2382_s2 + $0x60] sm:$0xff] }
  0x25   :  { %780 = vrsqrt.f32 %v1192_v58  ;;  %v2389_v16 = vmin.f32 %v1214_v9, 1.0  ;;  %vm424_vm14 = vcmp.eq.f32.partialorder %v1107_v5, inf  ;;  %vm426_vm15 = vcmp.eq.f32.partialorder %v1107_v5, 0.0  ;;  %v193_v54 = vld [vmem:[%s2382_s2 + $0x160] sm:$0xff] }
  0x26   :  { %v427_v38 = vand.u32 2147483648, %v1107_v5  ;;  %v775_v60 = vpop.eup %774  ;;  %696 = vst [vmem:[%s2383_s3 + $0x18] sm:$0xff] %v632_v7  ;;  %v411_v19 = vsel %vm410_vm10, %v1053_v29, %v409_v36  ;;  %v287_v21 = vmul.f32 %v1194_v59, %v1194_v59  ;;  %v319_v24 = vmul.f32 %v1202_v55, %v1202_v55  ;;  %v162_v7 = vld [vmem:[%s2382_s2 + $0x68] sm:$0xff] }
  0x27   :  { %v1238_v25 = vadd.f32 %v160_v3, %v96_v62  ;;  %v633_v27 = vmul.f32 %v2389_v16, %v967_v52  ;;  %v1251_v49 = vsel %vm412_vm11, %v413_v15, %v411_v19  ;;  %v416_v37 = vmul.f32 %v775_v60, %v1078_v47  ;;  %v59_v3 = vld [vmem:[%s2381_s1 + $0x168] sm:$0xff]  ;;  %v64_v16 = vld [vmem:[%s2381_s1 + $0x190] sm:$0xff] }
  0x28   :  { %v1254_v39 = vadd.f32 %v192_v11, %v128_v63  ;;  %v2388_v41 = vmin.f32 %v1251_v49, 1.0  ;;  %v1257_v42 = vadd.f32 %v319_v24, %v287_v21  ;;  %v97_v45 = vmul.f32 %v856_v2, %v26_v14  ;;  %v777_v18 = vpop.eup %776 }
  0x29   :  { %v288_v44 = vmul.f32 %v1238_v25, %v1238_v25  ;;  %697 = vst [vmem:[%s2383_s3 + $0x20] sm:$0xff] %v633_v27  ;;  %v418_v52 = vsel %vm417_vm12, %v1078_v47, %v416_v37  ;;  %v129_v15 = vmul.f32 %v856_v2, %v58_v31  ;;  %v98_v32 = vmul.f32 %v856_v2, %v27_v48  ;;  %v194_v31 = vld [vmem:[%s2382_s2 + $0x168] sm:$0xff] }
  0x2a   :  { %v320_v29 = vmul.f32 %v1254_v39, %v1254_v39  ;;  %v634_v61 = vmul.f32 %v2388_v41, %v996_v0  ;;  %v1283_v62 = vsel %vm419_vm13, %v420_v57, %v418_v52  ;;  %v423_v63 = vmul.f32 %v777_v18, %v1107_v5  ;;  %v29_v18 = vld [vmem:[%s2381_s1 + $0x78] sm:$0xff] }
  0x2b   :  { %782 = vrsqrt.f32 %v1257_v42  ;;  %v2387_v36 = vmin.f32 %v1283_v62, 1.0  ;;  %vm431_vm0 = vcmp.eq.f32.partialorder %v1147_v35, inf  ;;  %vm433_vm1 = vcmp.eq.f32.partialorder %v1147_v35, 0.0 }
  0x2c   :  { %v434_v0 = vand.u32 2147483648, %v1147_v35  ;;  %698 = vst [vmem:[%s2383_s3 + $0x28] sm:$0xff] %v634_v61  ;;  %v425_v47 = vsel %vm424_vm14, %v1107_v5, %v423_v63  ;;  %v1303_v57 = vadd.f32 %v320_v29, %v288_v44  ;;  %v1305_v11 = vadd.f32 %v161_v46, %v97_v45  ;;  %v60_v5 = vld [vmem:[%s2381_s1 + $0x170] sm:$0xff] }
  0x2d   :  { %v1307_v14 = vadd.f32 %v193_v54, %v129_v15  ;;  %v635_v19 = vmul.f32 %v2387_v36, %v1029_v17  ;;  %v1314_v21 = vsel %vm426_vm15, %v427_v38, %v425_v47  ;;  %v130_v24 = vmul.f32 %v856_v2, %v59_v3  ;;  %v28_v17 = vld [vmem:[%s2381_s1 + $0x70] sm:$0xff] }
  0x2e   :  { %v779_v60 = vpop.eup %778  ;;  %v1320_v48 = vadd.f32 %v162_v7, %v98_v32  ;;  %v2385_v27 = vmin.f32 %v1314_v21, 1.0  ;;  %vm438_vm2 = vcmp.eq.f32.partialorder %v1192_v58, inf  ;;  %784 = vrsqrt.f32 %v1303_v57  ;;  %v163_v3 = vld [vmem:[%s2382_s2 + $0x70] sm:$0xff] }
  0x2f   :  { %v430_v37 = vmul.f32 %v779_v60, %v1147_v35  ;;  %699 = vst [vmem:[%s2383_s3 + $0x30] sm:$0xff] %v635_v19  ;;  %vm440_vm3 = vcmp.eq.f32.partialorder %v1192_v58, 0.0  ;;  %v441_v38 = vand.u32 2147483648, %v1192_v58  ;;  %v289_v44 = vmul.f32 %v1305_v11, %v1305_v11  ;;  %v195_v47 = vld [vmem:[%s2382_s2 + $0x170] sm:$0xff]  ;;  %v61_v60 = vld [vmem:[%s2381_s1 + $0x178] sm:$0xff] }
  0x30   :  { %v321_v45 = vmul.f32 %v1307_v14, %v1307_v14  ;;  %v636_v52 = vmul.f32 %v2385_v27, %v1037_v22  ;;  %v1350_v15 = vadd.f32 %v194_v31, %v130_v24  ;;  %v290_v46 = vmul.f32 %v1320_v48, %v1320_v48  ;;  %v164_v24 = vld [vmem:[%s2382_s2 + $0x78] sm:$0xff] }
  0x31   :  { %v432_v29 = vsel %vm431_vm0, %v1147_v35, %v430_v37  ;;  %v99_v63 = vmul.f32 %v856_v2, %v28_v17  ;;  %v131_v22 = vmul.f32 %v856_v2, %v60_v5  ;;  %v100_v19 = vmul.f32 %v856_v2, %v29_v18 }
  0x32   :  { %v781_v54 = vpop.eup %780  ;;  %v1356_v32 = vsel %vm433_vm1, %v434_v0, %v432_v29  ;;  %v1358_v61 = vadd.f32 %v321_v45, %v289_v44  ;;  %700 = vst [vmem:[%s2383_s3 + $0x38] sm:$0xff] %v636_v52  ;;  %v322_v0 = vmul.f32 %v1350_v15, %v1350_v15  ;;  %vm445_vm4 = vcmp.eq.f32.partialorder %v1257_v42, inf  ;;  %v196_v45 = vld [vmem:[%s2382_s2 + $0x178] sm:$0xff] }
  0x33   :  { %v2384_v7 = vmin.f32 %v1356_v32, 1.0  ;;  %v437_v35 = vmul.f32 %v781_v54, %v1192_v58  ;;  %vm447_vm5 = vcmp.eq.f32.partialorder %v1257_v42, 0.0  ;;  %v448_v31 = vand.u32 2147483648, %v1257_v42 }
  0x34   :  { %786 = vrsqrt.f32 %v1358_v61  ;;  %v1392_v5 = vadd.f32 %v322_v0, %v290_v46  ;;  %v1394_v44 = vadd.f32 %v163_v3, %v99_v63  ;;  %v1403_v52 = vadd.f32 %v195_v47, %v131_v22  ;;  %v30_v46 = vld [vmem:[%s2381_s1 + $0x80] sm:$0xff] }
  0x35   :  { %v637_v37 = vmul.f32 %v2384_v7, %v1067_v40  ;;  %v439_v17 = vsel %vm438_vm2, %v1192_v58, %v437_v35  ;;  %v132_v40 = vmul.f32 %v856_v2, %v61_v60  ;;  %v1406_v29 = vadd.f32 %v164_v24, %v100_v19  ;;  %v62_v58 = vld [vmem:[%s2381_s1 + $0x180] sm:$0xff]  ;;  %v63_v60 = vld [vmem:[%s2381_s1 + $0x188] sm:$0xff] }
  0x36   :  { %v1401_v18 = vsel %vm440_vm3, %v441_v38, %v439_v17  ;;  %2427 = vst [vmem:[#allocation2_spill] sm:$0xff] %v1403_v52  ;;  %vm452_vm6 = vcmp.eq.f32.partialorder %v1303_v57, inf  ;;  %vm454_vm7 = vcmp.eq.f32.partialorder %v1303_v57, 0.0  ;;  %788 = vrsqrt.f32 %v1392_v5  ;;  %v31_v38 = vld [vmem:[%s2381_s1 + $0x88] sm:$0xff]  ;;  %v165_v47 = vld [vmem:[%s2382_s2 + $0x80] sm:$0xff] }
  0x37   :  { %701 = vst [vmem:[%s2383_s3 + $0x40] sm:$0xff] %v637_v37  ;;  %v2386_v54 = vmin.f32 %v1401_v18, 1.0  ;;  %v455_v22 = vand.u32 2147483648, %v1303_v57  ;;  %v291_v3 = vmul.f32 %v1394_v44, %v1394_v44  ;;  %v323_v35 = vmul.f32 %v1403_v52, %v1403_v52 }
  0x38   :  { %v783_v63 = vpop.eup %782  ;;  %v1429_v0 = vadd.f32 %v196_v45, %v132_v40  ;;  %v292_v37 = vmul.f32 %v1406_v29, %v1406_v29  ;;  %v101_v17 = vmul.f32 %v856_v2, %v30_v46  ;;  %v133_v7 = vmul.f32 %v856_v2, %v62_v58  ;;  %v197_v58 = vld [vmem:[%s2382_s2 + $0x180] sm:$0xff] }
  0x39   :  { %v638_v19 = vmul.f32 %v2386_v54, %v1109_v6  ;;  %v444_v24 = vmul.f32 %v783_v63, %v1257_v42  ;;  %v1444_v45 = vadd.f32 %v323_v35, %v291_v3  ;;  %v102_v27 = vmul.f32 %v856_v2, %v31_v38  ;;  %v32_v6 = vld [vmem:[%s2381_s1 + $0x90] sm:$0xff]  ;;  %v166_v3 = vld [vmem:[%s2382_s2 + $0x88] sm:$0xff] }
  0x3a   :  { %2428 = vst [vmem:[#allocation3_spill] sm:$0xff] %v1429_v0  ;;  %v324_v40 = vmul.f32 %v1429_v0, %v1429_v0  ;;  %vm459_vm8 = vcmp.eq.f32.partialorder %v1358_v61, inf  ;;  %v1463_v63 = vadd.f32 %v165_v47, %v101_v17  ;;  %v134_v38 = vmul.f32 %v856_v2, %v63_v60  ;;  %v198_v35 = vld [vmem:[%s2382_s2 + $0x188] sm:$0xff] }
  0x3b   :  { %702 = vst [vmem:[%s2383_s3 + $0x48] sm:$0xff] %v638_v19  ;;  %v446_v46 = vsel %vm445_vm4, %v1257_v42, %v444_v24  ;;  %v785_v19 = vpop.eup %784  ;;  %vm461_vm9 = vcmp.eq.f32.partialorder %v1358_v61, 0.0  ;;  %v462_v47 = vand.u32 2147483648, %v1358_v61  ;;  %790 = vrsqrt.f32 %v1444_v45 }
  0x3c   :  { %v1474_v24 = vsel %vm447_vm5, %v448_v31, %v446_v46  ;;  %v451_v17 = vmul.f32 %v785_v19, %v1303_v57  ;;  %v1481_v54 = vadd.f32 %v324_v40, %v292_v37  ;;  %v103_v36 = vmul.f32 %v856_v2, %v32_v6 }
  0x3d   :  { %v2390_v60 = vmin.f32 %v1474_v24, 1.0  ;;  %v1484_v41 = vadd.f32 %v197_v58, %v133_v7  ;;  %v293_v42 = vmul.f32 %v1463_v63, %v1463_v63  ;;  %v1488_v31 = vadd.f32 %v166_v3, %v102_v27  ;;  %v167_v27 = vld [vmem:[%s2382_s2 + $0x90] sm:$0xff] }
  0x3e   :  { %v1490_v46 = vadd.f32 %v198_v35, %v134_v38  ;;  %v453_v7 = vsel %vm452_vm6, %v1303_v57, %v451_v17  ;;  %vm466_vm10 = vcmp.eq.f32.partialorder %v1392_v5, inf  ;;  %792 = vrsqrt.f32 %v1481_v54  ;;  %v199_v58 = vld [vmem:[%s2382_s2 + $0x190] sm:$0xff]  ;;  %v33_v38 = vld [vmem:[%s2381_s1 + $0x98] sm:$0xff] }
  0x3f   :  { %2429 = vst [vmem:[#allocation4_spill] sm:$0xff] %v1484_v41  ;;  %v639_v37 = vmul.f32 %v2390_v60, %v1194_v59  ;;  %v1508_v40 = vsel %vm454_vm7, %v455_v22, %v453_v7  ;;  %vm468_vm11 = vcmp.eq.f32.partialorder %v1392_v5, 0.0  ;;  %v469_v59 = vand.u32 2147483648, %v1392_v5  ;;  %v65_v17 = vld [vmem:[%s2381_s1 + $0x198] sm:$0xff] }
  0x40   :  { %2430 = vst [vmem:[#allocation5_spill] sm:$0xff] %v1490_v46  ;;  %v325_v6 = vmul.f32 %v1484_v41, %v1484_v41  ;;  %v2395_v57 = vmin.f32 %v1508_v40, 1.0  ;;  %v294_v22 = vmul.f32 %v1488_v31, %v1488_v31  ;;  %v326_v35 = vmul.f32 %v1490_v46, %v1490_v46 }
  0x41   :  { %v787_v3 = vpop.eup %786  ;;  %703 = vst [vmem:[%s2383_s3 + $0x50] sm:$0xff] %v639_v37  ;;  %v135_v19 = vmul.f32 %v856_v2, %v64_v16  ;;  %vm473_vm12 = vcmp.eq.f32.partialorder %v1444_v45, inf  ;;  %v1536_v37 = vadd.f32 %v167_v27, %v103_v36  ;;  %v104_v16 = vmul.f32 %v856_v2, %v33_v38  ;;  %v34_v38 = vld [vmem:[%s2381_s1 + $0xa0] sm:$0xff] }
  0x42   :  { %v458_v7 = vmul.f32 %v787_v3, %v1358_v61  ;;  %v1534_v60 = vadd.f32 %v325_v6, %v293_v42  ;;  %v640_v56 = vmul.f32 %v2395_v57, %v1238_v25  ;;  %v1541_v12 = vadd.f32 %v326_v35, %v294_v22  ;;  %v168_v25 = vld [vmem:[%s2382_s2 + $0x98] sm:$0xff] }
  0x43   :  { %v1543_v28 = vadd.f32 %v199_v58, %v135_v19  ;;  %v789_v8 = vpop.eup %788  ;;  %vm475_vm13 = vcmp.eq.f32.partialorder %v1444_v45, 0.0  ;;  %v136_v36 = vmul.f32 %v856_v2, %v65_v17  ;;  %v476_v6 = vand.u32 2147483648, %v1444_v45  ;;  %v200_v58 = vld [vmem:[%s2382_s2 + $0x198] sm:$0xff]  ;;  %v169_v17 = vld [vmem:[%s2382_s2 + $0xa0] sm:$0xff] }
  0x44   :  { %v460_v3 = vsel %vm459_vm8, %v1358_v61, %v458_v7  ;;  %794 = vrsqrt.f32 %v1534_v60  ;;  %704 = vst [vmem:[%s2383_s3 + $0x58] sm:$0xff] %v640_v56  ;;  %v465_v27 = vmul.f32 %v789_v8, %v1392_v5  ;;  %vm480_vm14 = vcmp.eq.f32.partialorder %v1481_v54, inf  ;;  %v66_v61 = vld [vmem:[%s2381_s1 + $0x1a0] sm:$0xff] }
  0x45   :  { %2431 = vst [vmem:[#allocation6_spill] sm:$0xff] %v1543_v28  ;;  %v1560_v42 = vsel %vm461_vm9, %v462_v47, %v460_v3  ;;  %796 = vrsqrt.f32 %v1541_v12  ;;  %vm482_vm15 = vcmp.eq.f32.partialorder %v1481_v54, 0.0  ;;  %v483_v8 = vand.u32 2147483648, %v1481_v54 }
  0x46   :  { %v2399_v56 = vmin.f32 %v1560_v42, 1.0  ;;  %v467_v47 = vsel %vm466_vm10, %v1392_v5, %v465_v27  ;;  %v295_v22 = vmul.f32 %v1536_v37, %v1536_v37  ;;  %v327_v35 = vmul.f32 %v1543_v28, %v1543_v28 }
  0x47   :  { %v1585_v19 = vadd.f32 %v168_v25, %v104_v16  ;;  %v1595_v3 = vsel %vm468_vm11, %v469_v59, %v467_v47  ;;  %v1597_v27 = vadd.f32 %v200_v58, %v136_v36  ;;  %v105_v57 = vmul.f32 %v856_v2, %v34_v38  ;;  %v35_v16 = vld [vmem:[%s2381_s1 + $0xa8] sm:$0xff]  ;;  %v201_v59 = vld [vmem:[%s2382_s2 + $0x1a0] sm:$0xff] }
  0x48   :  { %v641_v7 = vmul.f32 %v2399_v56, %v1305_v11  ;;  %2432 = vst [vmem:[#allocation7_spill] sm:$0xff] %v1595_v3  ;;  %v791_v25 = vpop.eup %790  ;;  %v2398_v28 = vmin.f32 %v1595_v3, 1.0  ;;  %v1604_v46 = vadd.f32 %v327_v35, %v295_v22  ;;  %v137_v5 = vmul.f32 %v856_v2, %v66_v61  ;;  %v67_v61 = vld [vmem:[%s2381_s1 + $0x1a8] sm:$0xff] }
  0x49   :  { %2433 = vst [vmem:[#allocation8_spill] sm:$0xff] %v1597_v27  ;;  %v296_v11 = vmul.f32 %v1585_v19, %v1585_v19  ;;  %v472_v36 = vmul.f32 %v791_v25, %v1444_v45  ;;  %vm487_vm0 = vcmp.eq.f32.partialorder %v1534_v60, inf  ;;  %v328_v58 = vmul.f32 %v1597_v27, %v1597_v27 }
  0x4a   :  { %705 = vst [vmem:[%s2383_s3 + $0x60] sm:$0xff] %v641_v7  ;;  %v1619_v38 = vadd.f32 %v169_v17, %v105_v57  ;;  %v642_v47 = vmul.f32 %v2398_v28, %v1320_v48  ;;  %vm489_vm1 = vcmp.eq.f32.partialorder %v1534_v60, 0.0  ;;  %798 = vrsqrt.f32 %v1604_v46  ;;  %v170_v48 = vld [vmem:[%s2382_s2 + $0xa8] sm:$0xff]  ;;  %v171_v28 = vld [vmem:[%s2382_s2 + $0xb0] sm:$0xff] }
  0x4b   :  { %v106_v22 = vmul.f32 %v856_v2, %v35_v16  ;;  %v793_v35 = vpop.eup %792  ;;  %v474_v57 = vsel %vm473_vm12, %v1444_v45, %v472_v36  ;;  %v490_v17 = vand.u32 2147483648, %v1534_v60  ;;  %v1634_v7 = vadd.f32 %v328_v58, %v296_v11  ;;  %v36_v58 = vld [vmem:[%s2381_s1 + $0xb0] sm:$0xff] }
  0x4c   :  { %v1636_v25 = vadd.f32 %v201_v59, %v137_v5  ;;  %706 = vst [vmem:[%s2383_s3 + $0x68] sm:$0xff] %v642_v47  ;;  %v1646_v16 = vsel %vm475_vm13, %v476_v6, %v474_v57  ;;  %v479_v36 = vmul.f32 %v793_v35, %v1481_v54  ;;  %v297_v11 = vmul.f32 %v1619_v38, %v1619_v38  ;;  %v202_v59 = vld [vmem:[%s2382_s2 + $0x1a8] sm:$0xff]  ;;  %v68_v45 = vld [vmem:[%s2381_s1 + $0x1b0] sm:$0xff] }
  0x4d   :  { %2435 = vst [vmem:[#allocation10_spill] sm:$0xff] %v1646_v16  ;;  %v138_v5 = vmul.f32 %v856_v2, %v67_v61  ;;  %v2406_v47 = vmin.f32 %v1646_v16, 1.0  ;;  %vm494_vm2 = vcmp.eq.f32.partialorder %v1541_v12, inf  ;;  %vm496_vm3 = vcmp.eq.f32.partialorder %v1541_v12, 0.0 }
  0x4e   :  { %2434 = vst [vmem:[#allocation9_spill] sm:$0xff] %v1636_v25  ;;  %800 = vrsqrt.f32 %v1634_v7  ;;  %v481_v6 = vsel %vm480_vm14, %v1481_v54, %v479_v36  ;;  %v497_v61 = vand.u32 2147483648, %v1541_v12  ;;  %v329_v35 = vmul.f32 %v1636_v25, %v1636_v25 }
  0x4f   :  { %v1671_v57 = vadd.f32 %v170_v48, %v106_v22  ;;  %v643_v56 = vmul.f32 %v2406_v47, %v1394_v44  ;;  %v1681_v27 = vsel %vm482_vm15, %v483_v8, %v481_v6  ;;  %v1683_v36 = vadd.f32 %v202_v59, %v138_v5  ;;  %v37_v44 = vld [vmem:[%s2381_s1 + $0xb8] sm:$0xff]  ;;  %v203_v5 = vld [vmem:[%s2382_s2 + $0x1b0] sm:$0xff] }
  0x50   :  { %2436 = vst [vmem:[#allocation11_spill] sm:$0xff] %v1681_v27  ;;  %v107_v41 = vmul.f32 %v856_v2, %v36_v58  ;;  %v2405_v22 = vmin.f32 %v1681_v27, 1.0  ;;  %v1687_v48 = vadd.f32 %v329_v35, %v297_v11  ;;  %v139_v52 = vmul.f32 %v856_v2, %v68_v45 }
  0x51   :  { %2437 = vst [vmem:[#allocation12_spill] sm:$0xff] %v1683_v36  ;;  %v795_v0 = vpop.eup %794  ;;  %v298_v25 = vmul.f32 %v1671_v57, %v1671_v57  ;;  %707 = vst [vmem:[%s2383_s3 + $0x70] sm:$0xff] %v643_v56  ;;  %vm501_vm4 = vcmp.eq.f32.partialorder %v1604_v46, inf  ;;  %v330_v11 = vmul.f32 %v1683_v36, %v1683_v36  ;;  %vm503_vm5 = vcmp.eq.f32.partialorder %v1604_v46, 0.0 }
  0x52   :  { %v797_v54 = vpop.eup %796  ;;  %v486_v8 = vmul.f32 %v795_v0, %v1534_v60  ;;  %v1705_v59 = vadd.f32 %v171_v28, %v107_v41  ;;  %v644_v58 = vmul.f32 %v2405_v22, %v1406_v29  ;;  %802 = vrsqrt.f32 %v1687_v48 }
  0x53   :  { %v493_v45 = vmul.f32 %v797_v54, %v1541_v12  ;;  %v504_v56 = vand.u32 2147483648, %v1604_v46  ;;  %v1717_v6 = vadd.f32 %v330_v11, %v298_v25  ;;  %v108_v28 = vmul.f32 %v856_v2, %v37_v44  ;;  %v69_v44 = vld [vmem:[%s2381_s1 + $0x1b8] sm:$0xff] }
  0x54   :  { %v488_v0 = vsel %vm487_vm0, %v1534_v60, %v486_v8  ;;  %708 = vst [vmem:[%s2383_s3 + $0x78] sm:$0xff] %v644_v58  ;;  %v1730_v35 = vadd.f32 %v203_v5, %v139_v52  ;;  %v299_v25 = vmul.f32 %v1705_v59, %v1705_v59  ;;  %v172_v54 = vld [vmem:[%s2382_s2 + $0xb8] sm:$0xff]  ;;  %v38_v60 = vld [vmem:[%s2381_s1 + $0xc0] sm:$0xff]  ;;  %vm508_vm6 = vcmp.eq.f32.partialorder %v1634_v7, inf }
  0x55   :  { %v1725_v41 = vsel %vm489_vm1, %v490_v17, %v488_v0  ;;  %v495_v29 = vsel %vm494_vm2, %v1541_v12, %v493_v45  ;;  %804 = vrsqrt.f32 %v1717_v6  ;;  %v70_v8 = vld [vmem:[%s2381_s1 + $0x1c0] sm:$0xff]  ;;  %vm510_vm7 = vcmp.eq.f32.partialorder %v1634_v7, 0.0  ;;  %v204_v12 = vld [vmem:[%s2382_s2 + $0x1b8] sm:$0xff]  ;;  %v39_v45 = vld [vmem:[%s2381_s1 + $0xc8] sm:$0xff] }
  0x56   :  { %2438 = vst [vmem:[#allocation13_spill] sm:$0xff] %v1730_v35  ;;  %v2412_v17 = vmin.f32 %v1725_v41, 1.0  ;;  %v1746_v52 = vsel %vm496_vm3, %v497_v61, %v495_v29  ;;  %v511_v5 = vand.u32 2147483648, %v1634_v7  ;;  %v331_v58 = vmul.f32 %v1730_v35, %v1730_v35  ;;  %v173_v61 = vld [vmem:[%s2382_s2 + $0xc0] sm:$0xff] }
  0x57   :  { %v799_v0 = vpop.eup %798  ;;  %v140_v22 = vmul.f32 %v856_v2, %v69_v44  ;;  %v1771_v47 = vadd.f32 %v172_v54, %v108_v28  ;;  %v109_v11 = vmul.f32 %v856_v2, %v38_v60  ;;  %v2439_v35 = vmin.f32 %v1746_v52, 1.0  ;;  %v205_v44 = vld [vmem:[%s2382_s2 + $0x1c0] sm:$0xff]  ;;  %v174_v60 = vld [vmem:[%s2382_s2 + $0xc8] sm:$0xff] }
  0x58   :  { %v645_v29 = vmul.f32 %v2412_v17, %v1463_v63  ;;  %v500_v27 = vmul.f32 %v799_v0, %v1604_v46  ;;  %v1778_v16 = vadd.f32 %v331_v58, %v299_v25  ;;  %v141_v3 = vmul.f32 %v856_v2, %v70_v8  ;;  %v40_v8 = vld [vmem:[%s2381_s1 + $0xd0] sm:$0xff] }
  0x59   :  { %v646_v36 = vmul.f32 %v2439_v35, %v1488_v31  ;;  %v1784_v63 = vadd.f32 %v204_v12, %v140_v22  ;;  %v300_v28 = vmul.f32 %v1771_v47, %v1771_v47  ;;  %v1791_v31 = vadd.f32 %v173_v61, %v109_v11  ;;  %v71_v35 = vld [vmem:[%s2381_s1 + $0x1c8] sm:$0xff] }
  0x5a   :  { %709 = vst [vmem:[%s2383_s3 + $0x80] sm:$0xff] %v645_v29  ;;  %v110_v25 = vmul.f32 %v856_v2, %v39_v45  ;;  %v502_v22 = vsel %vm501_vm4, %v1604_v46, %v500_v27  ;;  %vm515_vm8 = vcmp.eq.f32.partialorder %v1687_v48, inf  ;;  %vm517_vm9 = vcmp.eq.f32.partialorder %v1687_v48, 0.0  ;;  %v206_v12 = vld [vmem:[%s2382_s2 + $0x1c8] sm:$0xff] }
  0x5b   :  { %2440 = vst [vmem:[#allocation14_spill] sm:$0xff] %v1784_v63  ;;  %v801_v54 = vpop.eup %800  ;;  %710 = vst [vmem:[%s2383_s3 + $0x88] sm:$0xff] %v646_v36  ;;  %806 = vrsqrt.f32 %v1778_v16  ;;  %v1814_v36 = vsel %vm503_vm5, %v504_v56, %v502_v22  ;;  %v518_v11 = vand.u32 2147483648, %v1687_v48  ;;  %v332_v58 = vmul.f32 %v1784_v63, %v1784_v63 }
  0x5c   :  { %v507_v27 = vmul.f32 %v801_v54, %v1634_v7  ;;  %v2414_v61 = vmin.f32 %v1814_v36, 1.0  ;;  %v1824_v45 = vadd.f32 %v205_v44, %v141_v3  ;;  %v301_v46 = vmul.f32 %v1791_v31, %v1791_v31 }
  0x5d   :  { %v142_v56 = vmul.f32 %v856_v2, %v71_v35  ;;  %v1832_v29 = vadd.f32 %v332_v58, %v300_v28  ;;  %v1834_v54 = vadd.f32 %v174_v60, %v110_v25  ;;  %v111_v22 = vmul.f32 %v856_v2, %v40_v8  ;;  %v72_v28 = vld [vmem:[%s2381_s1 + $0x1d0] sm:$0xff] }
  0x5e   :  { %2441 = vst [vmem:[#allocation15_spill] sm:$0xff] %v1824_v45  ;;  %v509_v0 = vsel %vm508_vm6, %v1634_v7, %v507_v27  ;;  %v647_v3 = vmul.f32 %v2414_v61, %v1536_v37  ;;  %v333_v35 = vmul.f32 %v1824_v45, %v1824_v45  ;;  %v175_v2 = vld [vmem:[%s2382_s2 + $0xd0] sm:$0xff]  ;;  %vm522_vm10 = vcmp.eq.f32.partialorder %v1717_v6, inf  ;;  %v177_v45 = vld [vmem:[%s2382_s2 + $0xe0] sm:$0xff] }
  0x5f   :  { %v1842_v44 = vsel %vm510_vm7, %v511_v5, %v509_v0  ;;  %v1846_v17 = vadd.f32 %v206_v12, %v142_v56  ;;  %v803_v25 = vpop.eup %802  ;;  %vm524_vm11 = vcmp.eq.f32.partialorder %v1717_v6, 0.0  ;;  %808 = vrsqrt.f32 %v1832_v29  ;;  %v1875_v12 = vld [vmem:[%s2380_s0] ss:$0 sm:$0xff] }
  0x60   :  { %v2413_v37 = vmin.f32 %v1842_v44, 1.0  ;;  %711 = vst [vmem:[%s2383_s3 + $0x90] sm:$0xff] %v647_v3  ;;  %v514_v7 = vmul.f32 %v803_v25, %v1687_v48  ;;  %v525_v5 = vand.u32 2147483648, %v1717_v6  ;;  %v1863_v60 = vadd.f32 %v333_v35, %v301_v46  ;;  %v207_v46 = vld [vmem:[%s2382_s2 + $0x1d0] sm:$0xff] }
  0x61   :  { %2442 = vst [vmem:[#allocation16_spill] sm:$0xff] %v1846_v17  ;;  %v302_v8 = vmul.f32 %v1834_v54, %v1834_v54  ;;  %v334_v58 = vmul.f32 %v1846_v17, %v1846_v17  ;;  %v143_v56 = vmul.f32 %v1875_v12, %v72_v28  ;;  %v1881_v0 = vadd.f32 %v175_v2, %v111_v22  ;;  %v208_v17 = vld [vmem:[%s2382_s2 + $0x1d8] sm:$0xff] }
  0x62   :  { %v648_v27 = vmul.f32 %v2413_v37, %v1585_v19  ;;  %v41_v19 = vld [vmem:[%s2381_s1 + $0xd8] sm:$0xff]  ;;  %v805_v3 = vpop.eup %804  ;;  %v516_v35 = vsel %vm515_vm8, %v1687_v48, %v514_v7  ;;  %vm529_vm12 = vcmp.eq.f32.partialorder %v1778_v16, inf  ;;  %vm531_vm13 = vcmp.eq.f32.partialorder %v1778_v16, 0.0 }
  0x63   :  { %810 = vrsqrt.f32 %v1863_v60  ;;  %v1897_v22 = vsel %vm517_vm9, %v518_v11, %v516_v35  ;;  %v521_v28 = vmul.f32 %v805_v3, %v1717_v6  ;;  %v532_v2 = vand.u32 2147483648, %v1778_v16  ;;  %v176_v11 = vld [vmem:[%s2382_s2 + $0xd8] sm:$0xff] }
  0x64   :  { %712 = vst [vmem:[%s2383_s3 + $0x98] sm:$0xff] %v648_v27  ;;  %2443 = vst [vmem:[#allocation17_spill] sm:$0xff] %v1897_v22  ;;  %v1901_v25 = vadd.f32 %v334_v58, %v302_v8  ;;  %v2418_v7 = vmin.f32 %v1897_v22, 1.0  ;;  %v1904_v37 = vadd.f32 %v207_v46, %v143_v56  ;;  %v303_v61 = vmul.f32 %v1881_v0, %v1881_v0  ;;  %v73_v27 = vld [vmem:[%s2381_s1 + $0x1d8] sm:$0xff]  ;;  %v42_v8 = vld [vmem:[%s2381_s1 + $0xe0] sm:$0xff] }
  0x65   :  { %v112_v48 = vmul.f32 %v1875_v12, %v41_v19  ;;  %v523_v58 = vsel %vm522_vm10, %v1717_v6, %v521_v28  ;;  %vm536_vm14 = vcmp.eq.f32.partialorder %v1832_v29, inf  ;;  %vm538_vm15 = vcmp.eq.f32.partialorder %v1832_v29, 0.0  ;;  %v74_v56 = vld [vmem:[%s2381_s1 + $0x1e0] sm:$0xff]  ;;  %v43_v46 = vld [vmem:[%s2381_s1 + $0xe8] sm:$0xff] }
  0x66   :  { %2444 = vst [vmem:[#allocation18_spill] sm:$0xff] %v1904_v37  ;;  %812 = vrsqrt.f32 %v1901_v25  ;;  %v649_v19 = vmul.f32 %v2418_v7, %v1619_v38  ;;  %v1935_v3 = vsel %vm524_vm11, %v525_v5, %v523_v58  ;;  %v539_v35 = vand.u32 2147483648, %v1832_v29  ;;  %v209_v38 = vld [vmem:[%s2382_s2 + $0x1e0] sm:$0xff] }
  0x67   :  { %2445 = vst [vmem:[#allocation19_spill] sm:$0xff] %v1935_v3  ;;  %v335_v28 = vmul.f32 %v1904_v37, %v1904_v37  ;;  %v144_v6 = vmul.f32 %v1875_v12, %v73_v27  ;;  %v1948_v5 = vadd.f32 %v176_v11, %v112_v48  ;;  %v113_v58 = vmul.f32 %v1875_v12, %v42_v8 }
  0x68   :  { %v807_v63 = vpop.eup %806  ;;  %713 = vst [vmem:[%s2383_s3 + $0xa0] sm:$0xff] %v649_v19  ;;  %v145_v22 = vmul.f32 %v1875_v12, %v74_v56  ;;  %v114_v27 = vmul.f32 %v1875_v12, %v43_v46  ;;  %v2447_v48 = vmin.f32 %v1935_v3, 1.0  ;;  %v178_v56 = vld [vmem:[%s2382_s2 + $0xe8] sm:$0xff]  ;;  %vm543_vm0 = vcmp.eq.f32.partialorder %v1863_v60, inf }
  0x69   :  { %2446 = vst [vmem:[#allocation20_spill] sm:$0xff] %v1948_v5  ;;  %v528_v7 = vmul.f32 %v807_v63, %v1778_v16  ;;  %v1955_v37 = vadd.f32 %v335_v28, %v303_v61  ;;  %v1965_v8 = vadd.f32 %v208_v17, %v144_v6  ;;  %v304_v19 = vmul.f32 %v1948_v5, %v1948_v5  ;;  %v75_v61 = vld [vmem:[%s2381_s1 + $0x1e8] sm:$0xff] }
  0x6a   :  { %v650_v11 = vmul.f32 %v2447_v48, %v1671_v57  ;;  %v1969_v63 = vadd.f32 %v177_v45, %v113_v58  ;;  %vm545_vm1 = vcmp.eq.f32.partialorder %v1863_v60, 0.0  ;;  %v44_v57 = vld [vmem:[%s2381_s1 + $0xf0] sm:$0xff]  ;;  %v546_v45 = vand.u32 2147483648, %v1863_v60  ;;  %v210_v6 = vld [vmem:[%s2382_s2 + $0x1e8] sm:$0xff] }
  0x6b   :  { %2448 = vst [vmem:[#allocation21_spill] sm:$0xff] %v1965_v8  ;;  %v530_v46 = vsel %vm529_vm12, %v1778_v16, %v528_v7  ;;  %814 = vrsqrt.f32 %v1955_v37  ;;  %v336_v7 = vmul.f32 %v1965_v8, %v1965_v8  ;;  %v1996_v28 = vadd.f32 %v209_v38, %v145_v22  ;;  %v76_v58 = vld [vmem:[%s2381_s1 + $0x1f0] sm:$0xff] }
  0x6c   :  { %2449 = vst [vmem:[#allocation22_spill] sm:$0xff] %v1969_v63  ;;  %714 = vst [vmem:[%s2383_s3 + $0xa8] sm:$0xff] %v650_v11  ;;  %v1991_v17 = vsel %vm531_vm13, %v532_v2, %v530_v46  ;;  %v809_v48 = vpop.eup %808  ;;  %v305_v2 = vmul.f32 %v1969_v63, %v1969_v63  ;;  %v146_v11 = vmul.f32 %v1875_v12, %v75_v61  ;;  %vm550_vm2 = vcmp.eq.f32.partialorder %v1901_v25, inf  ;;  %v211_v61 = vld [vmem:[%s2382_s2 + $0x1f0] sm:$0xff] }
  0x6d   :  { %2450 = vst [vmem:[#allocation23_spill] sm:$0xff] %v1996_v28  ;;  %v2425_v16 = vmin.f32 %v1991_v17, 1.0  ;;  %v2008_v46 = vadd.f32 %v178_v56, %v114_v27  ;;  %v535_v22 = vmul.f32 %v809_v48, %v1832_v29  ;;  %v2011_v38 = vadd.f32 %v336_v7, %v304_v19  ;;  %v179_v19 = vld [vmem:[%s2382_s2 + $0xf0] sm:$0xff] }
  0x6e   :  { %v337_v8 = vmul.f32 %v1996_v28, %v1996_v28  ;;  %v115_v3 = vmul.f32 %v1875_v12, %v44_v57  ;;  %v2020_v63 = vadd.f32 %v210_v6, %v146_v11  ;;  %v147_v27 = vmul.f32 %v1875_v12, %v76_v58 }
  0x6f   :  { %v651_v5 = vmul.f32 %v2425_v16, %v1705_v59  ;;  %v537_v57 = vsel %vm536_vm14, %v1832_v29, %v535_v22  ;;  %vm552_vm3 = vcmp.eq.f32.partialorder %v1901_v25, 0.0  ;;  %v553_v59 = vand.u32 2147483648, %v1901_v25 }
  0x70   :  { %v811_v56 = vpop.eup %810  ;;  %816 = vrsqrt.f32 %v2011_v38  ;;  %v2040_v7 = vsel %vm538_vm15, %v539_v35, %v537_v57  ;;  %v2043_v58 = vadd.f32 %v337_v8, %v305_v2  ;;  %v306_v48 = vmul.f32 %v2008_v46, %v2008_v46  ;;  %v45_v35 = vld [vmem:[%s2381_s1 + $0xf8] sm:$0xff] }
  0x71   :  { %715 = vst [vmem:[%s2383_s3 + $0xb0] sm:$0xff] %v651_v5  ;;  %v542_v6 = vmul.f32 %v811_v56, %v1863_v60  ;;  %v620_v11 = vmin.f32 %v2040_v7, 1.0  ;;  %v338_v22 = vmul.f32 %v2020_v63, %v2020_v63  ;;  %v2050_v16 = vadd.f32 %v179_v19, %v115_v3  ;;  %v77_v3 = vld [vmem:[%s2381_s1 + $0x1f8] sm:$0xff] }
  0x72   :  { %v2052_v28 = vadd.f32 %v211_v61, %v147_v27  ;;  %vm557_vm4 = vcmp.eq.f32.partialorder %v1955_v37, inf  ;;  %vm559_vm5 = vcmp.eq.f32.partialorder %v1955_v37, 0.0  ;;  %818 = vrsqrt.f32 %v2043_v58 }
  0x73   :  { %v813_v5 = vpop.eup %812  ;;  %v544_v29 = vsel %vm543_vm0, %v1863_v60, %v542_v6  ;;  %v652_v8 = vmul.f32 %v620_v11, %v1771_v47  ;;  %v560_v19 = vand.u32 2147483648, %v1955_v37  ;;  %v2076_v56 = vadd.f32 %v338_v22, %v306_v48  ;;  %v180_v48 = vld [vmem:[%s2382_s2 + $0xf8] sm:$0xff] }
  0x74   :  { %v2071_v2 = vsel %vm545_vm1, %v546_v45, %v544_v29  ;;  %v549_v27 = vmul.f32 %v813_v5, %v1901_v25  ;;  %v307_v57 = vmul.f32 %v2050_v16, %v2050_v16  ;;  %v339_v6 = vmul.f32 %v2052_v28, %v2052_v28  ;;  %v212_v22 = vld [vmem:[%s2382_s2 + $0x1f8] sm:$0xff] }
  0x75   :  { %v621_v61 = vmin.f32 %v2071_v2, 1.0  ;;  %716 = vst [vmem:[%s2383_s3 + $0xb8] sm:$0xff] %v652_v8  ;;  %v116_v60 = vmul.f32 %v1875_v12, %v45_v35  ;;  %v148_v45 = vmul.f32 %v1875_v12, %v77_v3  ;;  %v2451_v5 = vmin.f32 %v1104_v1, 1.0  ;;  %v2495_v2 = vld [vmem:[#allocation23_spill] sm:$0xff] }
  0x76   :  { %v551_v47 = vsel %vm550_vm2, %v1901_v25, %v549_v27  ;;  %vm564_vm6 = vcmp.eq.f32.partialorder %v2011_v38, inf  ;;  %820 = vrsqrt.f32 %v2076_v56  ;;  %vm566_vm7 = vcmp.eq.f32.partialorder %v2011_v38, 0.0 }
  0x77   :  { %v661_v29 = vmul.f32 %v2451_v5, %v881_v13  ;;  %v653_v8 = vmul.f32 %v621_v61, %v1791_v31  ;;  %v2104_v35 = vsel %vm552_vm3, %v553_v59, %v551_v47  ;;  %v567_v1 = vand.u32 2147483648, %v2011_v38 }
  0x78   :  { %v815_v12 = vpop.eup %814  ;;  %v622_v3 = vmin.f32 %v2104_v35, 1.0  ;;  %v2111_v13 = vadd.f32 %v339_v6, %v307_v57  ;;  %v2120_v25 = vadd.f32 %v180_v48, %v116_v60  ;;  %v2122_v59 = vadd.f32 %v212_v22, %v148_v45 }
  0x79   :  { %725 = vst [vmem:[%s2383_s3 + $0x100] sm:$0xff] %v661_v29  ;;  %717 = vst [vmem:[%s2383_s3 + $0xc0] sm:$0xff] %v653_v8  ;;  %v556_v31 = vmul.f32 %v815_v12, %v1955_v37  ;;  %v2452_v27 = vmin.f32 %v1135_v23, 1.0  ;;  %vm571_vm8 = vcmp.eq.f32.partialorder %v2043_v58, inf  ;;  %vm573_vm9 = vcmp.eq.f32.partialorder %v2043_v58, 0.0 }
  0x7a   :  { %v654_v57 = vmul.f32 %v622_v3, %v1834_v54  ;;  %822 = vrsqrt.f32 %v2111_v13  ;;  %v574_v60 = vand.u32 2147483648, %v2043_v58  ;;  %v308_v23 = vmul.f32 %v2120_v25, %v2120_v25 }
  0x7b   :  { %v662_v47 = vmul.f32 %v2452_v27, %v910_v26  ;;  %v558_v6 = vsel %vm557_vm4, %v1955_v37, %v556_v31  ;;  %v340_v26 = vmul.f32 %v2122_v59, %v2122_v59  ;;  %vm578_vm10 = vcmp.eq.f32.partialorder %v2076_v56, inf }
  0x7c   :  { %718 = vst [vmem:[%s2383_s3 + $0xc8] sm:$0xff] %v654_v57  ;;  %v2149_v54 = vsel %vm559_vm5, %v560_v19, %v558_v6  ;;  %v2453_v45 = vmin.f32 %v1144_v30, 1.0  ;;  %v2454_v22 = vmin.f32 %v1183_v50, 1.0  ;;  %v2455_v29 = vmin.f32 %v1214_v9, 1.0 }
  0x7d   :  { %726 = vst [vmem:[%s2383_s3 + $0x108] sm:$0xff] %v662_v47  ;;  %v817_v12 = vpop.eup %816  ;;  %v623_v31 = vmin.f32 %v2149_v54, 1.0  ;;  %v2162_v37 = vadd.f32 %v340_v26, %v308_v23  ;;  %v2456_v19 = vmin.f32 %v1251_v49, 1.0  ;;  %v2460_v9 = vmin.f32 %v1401_v18, 1.0 }
  0x7e   :  { %v663_v48 = vmul.f32 %v2453_v45, %v926_v33  ;;  %v664_v5 = vmul.f32 %v2454_v22, %v946_v43  ;;  %v665_v8 = vmul.f32 %v2455_v29, %v969_v53  ;;  %v2457_v33 = vmin.f32 %v1283_v62, 1.0  ;;  %v2469_v45 = vld [vmem:[#allocation3_spill] sm:$0xff]  ;;  %v2472_v22 = vld [vmem:[#allocation4_spill] sm:$0xff] }
  0x7f   :  { %v666_v27 = vmul.f32 %v2456_v19, %v1004_v4  ;;  %v563_v50 = vmul.f32 %v817_v12, %v2011_v38  ;;  %v2458_v43 = vmin.f32 %v1314_v21, 1.0  ;;  %v2459_v4 = vmin.f32 %v1356_v32, 1.0 }
  0x80   :  { %v667_v30 = vmul.f32 %v2457_v33, %v1034_v20  ;;  %727 = vst [vmem:[%s2383_s3 + $0x110] sm:$0xff] %v663_v48  ;;  %728 = vst [vmem:[%s2383_s3 + $0x118] sm:$0xff] %v664_v5  ;;  %v670_v49 = vmul.f32 %v2460_v9, %v1119_v10  ;;  %v655_v62 = vmul.f32 %v623_v31, %v1881_v0  ;;  %vm580_vm11 = vcmp.eq.f32.partialorder %v2076_v56, 0.0 }
  0x81   :  { %729 = vst [vmem:[%s2383_s3 + $0x120] sm:$0xff] %v665_v8  ;;  %v668_v53 = vmul.f32 %v2458_v43, %v1059_v34  ;;  %v669_v20 = vmul.f32 %v2459_v4, %v1082_v51  ;;  %v581_v47 = vand.u32 2147483648, %v2076_v56  ;;  %824 = vrsqrt.f32 %v2162_v37  ;;  %730 = vst [vmem:[%s2383_s3 + $0x128] sm:$0xff] %v666_v27  ;;  %v819_v34 = vpop.eup %818  ;;  %v2474_v8 = vld [vmem:[#allocation5_spill] sm:$0xff]  ;;  %v2476_v27 = vld [vmem:[#allocation6_spill] sm:$0xff] }
  0x82   :  { %731 = vst [vmem:[%s2383_s3 + $0x130] sm:$0xff] %v667_v30  ;;  %v565_v51 = vsel %vm564_vm6, %v2011_v38, %v563_v50  ;;  %vm585_vm12 = vcmp.eq.f32.partialorder %v2111_v13, inf  ;;  %734 = vst [vmem:[%s2383_s3 + $0x148] sm:$0xff] %v670_v49  ;;  %v2461_v10 = vmin.f32 %v1474_v24, 1.0  ;;  %v2462_v32 = vmin.f32 %v1508_v40, 1.0  ;;  %v2464_v24 = vld [vmem:[#allocation7_spill] sm:$0xff] }
  0x83   :  { %732 = vst [vmem:[%s2383_s3 + $0x138] sm:$0xff] %v668_v53  ;;  %733 = vst [vmem:[%s2383_s3 + $0x140] sm:$0xff] %v669_v20  ;;  %v568_v0 = vsel %vm566_vm7, %v567_v1, %v565_v51  ;;  %v570_v57 = vmul.f32 %v819_v34, %v2043_v58  ;;  %v2463_v6 = vmin.f32 %v1560_v42, 1.0  ;;  %v2467_v40 = vld [vmem:[#allocation10_spill] sm:$0xff]  ;;  %v2470_v42 = vld [vmem:[#allocation11_spill] sm:$0xff]  ;;  %v2475_v12 = vmin.f32 %v1746_v52, 1.0  ;;  %v821_v53 = vpop.eup %820 }
  0x84   :  { %v671_v21 = vmul.f32 %v2461_v10, %v1202_v55  ;;  %v672_v18 = vmul.f32 %v2462_v32, %v1254_v39  ;;  %719 = vst [vmem:[%s2383_s3 + $0xd0] sm:$0xff] %v655_v62  ;;  %v2465_v55 = vmin.f32 %v2464_v24, 1.0  ;;  %v624_v54 = vmin.f32 %v568_v0, 1.0  ;;  %v2466_v39 = vld [vmem:[#allocation2_spill] sm:$0xff]  ;;  %v2478_v30 = vld [vmem:[#allocation8_spill] sm:$0xff]  ;;  %v2481_v52 = vld [vmem:[#allocation9_spill] sm:$0xff] }
  0x85   :  { %v673_v23 = vmul.f32 %v2463_v6, %v1307_v14  ;;  %v2468_v38 = vmin.f32 %v2467_v40, 1.0  ;;  %v2471_v14 = vmin.f32 %v2470_v42, 1.0  ;;  %v572_v29 = vsel %vm571_vm8, %v2043_v58, %v570_v57  ;;  %v2480_v4 = vld [vmem:[#allocation20_spill] sm:$0xff]  ;;  %v2485_v34 = vld [vmem:[#allocation19_spill] sm:$0xff]  ;;  %v2489_v0 = vld [vmem:[#allocation14_spill] sm:$0xff] }
  0x86   :  { %v674_v26 = vmul.f32 %v2465_v55, %v1350_v15  ;;  %735 = vst [vmem:[%s2383_s3 + $0x150] sm:$0xff] %v671_v21  ;;  %736 = vst [vmem:[%s2383_s3 + $0x158] sm:$0xff] %v672_v18  ;;  %v2473_v15 = vmin.f32 %v1725_v41, 1.0  ;;  %v678_v19 = vmul.f32 %v2475_v12, %v2474_v8  ;;  %v2477_v41 = vmin.f32 %v1814_v36, 1.0  ;;  %v2482_v36 = vld [vmem:[#allocation17_spill] sm:$0xff]  ;;  %v2484_v62 = vld [vmem:[#allocation12_spill] sm:$0xff] }
  0x87   :  { %v675_v1 = vmul.f32 %v2468_v38, %v2466_v39  ;;  %v676_v48 = vmul.f32 %v2471_v14, %v2469_v45  ;;  %737 = vst [vmem:[%s2383_s3 + $0x160] sm:$0xff] %v673_v23  ;;  %v2479_v50 = vmin.f32 %v1842_v44, 1.0  ;;  %v656_v20 = vmul.f32 %v624_v54, %v2480_v4  ;;  %v2487_v21 = vld [vmem:[#allocation13_spill] sm:$0xff]  ;;  %v2490_v6 = vld [vmem:[#allocation15_spill] sm:$0xff]  ;;  %v2491_v23 = vld [vmem:[#allocation16_spill] sm:$0xff]  ;;  %v823_v39 = vpop.eup %822 }
  0x88   :  { %v677_v5 = vmul.f32 %v2473_v15, %v2472_v22  ;;  %738 = vst [vmem:[%s2383_s3 + $0x168] sm:$0xff] %v674_v26  ;;  %v679_v33 = vmul.f32 %v2477_v41, %v2476_v27  ;;  %v575_v9 = vsel %vm573_vm9, %v574_v60, %v572_v29  ;;  %v2483_v44 = vmin.f32 %v2482_v36, 1.0  ;;  %742 = vst [vmem:[%s2383_s3 + $0x188] sm:$0xff] %v678_v19  ;;  %v2493_v55 = vld [vmem:[#allocation21_spill] sm:$0xff]  ;;  %v2494_v40 = vld [vmem:[#allocation22_spill] sm:$0xff] }
  0x89   :  { %v680_v43 = vmul.f32 %v2479_v50, %v2478_v30  ;;  %739 = vst [vmem:[%s2383_s3 + $0x170] sm:$0xff] %v675_v1  ;;  %740 = vst [vmem:[%s2383_s3 + $0x178] sm:$0xff] %v676_v48  ;;  %v2486_v58 = vmin.f32 %v2485_v34, 1.0  ;;  %v625_v51 = vmin.f32 %v575_v9, 1.0  ;;  %v577_v10 = vmul.f32 %v821_v53, %v2076_v56 }
  0x8a   :  { %741 = vst [vmem:[%s2383_s3 + $0x180] sm:$0xff] %v677_v5  ;;  %v681_v49 = vmul.f32 %v2483_v44, %v2481_v52  ;;  %743 = vst [vmem:[%s2383_s3 + $0x190] sm:$0xff] %v679_v33  ;;  %v2488_v32 = vmin.f32 %v1991_v17, 1.0  ;;  %v684_v57 = vmul.f32 %v620_v11, %v2489_v0  ;;  %v685_v17 = vmul.f32 %v621_v61, %v2490_v6  ;;  %v2492_v11 = vld [vmem:[#allocation18_spill] sm:$0xff] }
  0x8b   :  { %v682_v60 = vmul.f32 %v2486_v58, %v2484_v62  ;;  %744 = vst [vmem:[%s2383_s3 + $0x198] sm:$0xff] %v680_v43  ;;  %720 = vst [vmem:[%s2383_s3 + $0xd8] sm:$0xff] %v656_v20  ;;  %v686_v7 = vmul.f32 %v622_v3, %v2491_v23  ;;  %v687_v24 = vmul.f32 %v623_v31, %v2492_v11  ;;  %v588_v45 = vand.u32 2147483648, %v2111_v13 }
  0x8c   :  { %v683_v18 = vmul.f32 %v2488_v32, %v2487_v21  ;;  %745 = vst [vmem:[%s2383_s3 + $0x1a0] sm:$0xff] %v681_v49  ;;  %v688_v26 = vmul.f32 %v624_v54, %v2493_v55  ;;  %v657_v38 = vmul.f32 %v625_v51, %v2494_v40  ;;  %v579_v1 = vsel %vm578_vm10, %v2076_v56, %v577_v10 }
  0x8d   :  { %746 = vst [vmem:[%s2383_s3 + $0x1a8] sm:$0xff] %v682_v60  ;;  %748 = vst [vmem:[%s2383_s3 + $0x1b8] sm:$0xff] %v684_v57  ;;  %v689_v61 = vmul.f32 %v625_v51, %v2495_v2  ;;  %v582_v35 = vsel %vm580_vm11, %v581_v47, %v579_v1  ;;  %v584_v3 = vmul.f32 %v823_v39, %v2111_v13  ;;  %vm587_vm13 = vcmp.eq.f32.partialorder %v2111_v13, 0.0 }
  0x8e   :  { %747 = vst [vmem:[%s2383_s3 + $0x1b0] sm:$0xff] %v683_v18  ;;  %749 = vst [vmem:[%s2383_s3 + $0x1c0] sm:$0xff] %v685_v17  ;;  %v626_v56 = vmin.f32 %v582_v35, 1.0  ;;  %v825_v14 = vpop.eup %824  ;;  %vm592_vm14 = vcmp.eq.f32.partialorder %v2162_v37, inf  ;;  %v595_v22 = vand.u32 2147483648, %v2162_v37  ;;  %vm594_vm15 = vcmp.eq.f32.partialorder %v2162_v37, 0.0 }
  0x8f   :  { %750 = vst [vmem:[%s2383_s3 + $0x1c8] sm:$0xff] %v686_v7  ;;  %751 = vst [vmem:[%s2383_s3 + $0x1d0] sm:$0xff] %v687_v24  ;;  %v586_v31 = vsel %vm585_vm12, %v2111_v13, %v584_v3  ;;  %v591_v15 = vmul.f32 %v825_v14, %v2162_v37 }
  0x90   :  { %752 = vst [vmem:[%s2383_s3 + $0x1d8] sm:$0xff] %v688_v26  ;;  %721 = vst [vmem:[%s2383_s3 + $0xe0] sm:$0xff] %v657_v38  ;;  %v658_v47 = vmul.f32 %v626_v56, %v2008_v46  ;;  %v589_v54 = vsel %vm587_vm13, %v588_v45, %v586_v31  ;;  %v690_v42 = vmul.f32 %v626_v56, %v2020_v63 }
  0x91   :  { %753 = vst [vmem:[%s2383_s3 + $0x1e0] sm:$0xff] %v689_v61  ;;  %v627_v48 = vmin.f32 %v589_v54, 1.0  ;;  %v593_v13 = vsel %vm592_vm14, %v2162_v37, %v591_v15 }
  0x92   :  { %722 = vst [vmem:[%s2383_s3 + $0xe8] sm:$0xff] %v658_v47  ;;  %754 = vst [vmem:[%s2383_s3 + $0x1e8] sm:$0xff] %v690_v42  ;;  %v596_v5 = vsel %vm594_vm15, %v595_v22, %v593_v13 }
  0x93   :  { %v659_v63 = vmul.f32 %v627_v48, %v2050_v16  ;;  %v691_v46 = vmul.f32 %v627_v48, %v2052_v28  ;;  %v628_v29 = vmin.f32 %v596_v5, 1.0 }
  0x95   :  { %723 = vst [vmem:[%s2383_s3 + $0xf0] sm:$0xff] %v659_v63  ;;  %755 = vst [vmem:[%s2383_s3 + $0x1f0] sm:$0xff] %v691_v46  ;;  %v660_v8 = vmul.f32 %v628_v29, %v2120_v25  ;;  %v692_v12 = vmul.f32 %v628_v29, %v2122_v59 }
  0x97   :  { %724 = vst [vmem:[%s2383_s3 + $0xf8] sm:$0xff] %v660_v8  ;;  %756 = vst [vmem:[%s2383_s3 + $0x1f8] sm:$0xff] %v692_v12 }

// kernel: our_basic_block.5
= control target key start
LH: loop header
LB: loop body
LE: loop exit
PB: predicated region body
PF: predicated region fallthrough
CT: control target
= control target key end

     0   :  { %s2062_s0 = inlined_call_operand.vmem [shape: f32[1,128], index: 0, kind: input, shape index: {}]   ;;  %s2063_s1 = inlined_call_operand.vmem [shape: f32[2,256,128], index: 1, kind: input, shape index: {}]   ;;  %s2064_s2 = inlined_call_operand.vmem [shape: f32[2,256,128], index: 2, kind: output, shape index: {}]  }
   0x1   :  { %v11_v0 = vld [vmem:[%s2063_s1] sm:$0xff]  ;;  %v12_v5 = vld [vmem:[%s2063_s1 + $0x8] sm:$0xff]  ;;  %v13_v7 = vld [vmem:[%s2063_s1 + $0x10] sm:$0xff] }
   0x2   :  { %v43_v1 = vld [vmem:[%s2063_s1 + $0x100] sm:$0xff]  ;;  %v44_v6 = vld [vmem:[%s2063_s1 + $0x108] sm:$0xff]  ;;  %v45_v10 = vld [vmem:[%s2063_s1 + $0x110] sm:$0xff] }
   0x3   :  { %v719_v2 = vld [vmem:[%s2062_s0] ss:$0 sm:$0xff]  ;;  %v14_v12 = vld [vmem:[%s2063_s1 + $0x18] sm:$0xff]  ;;  %v16_v28 = vld [vmem:[%s2063_s1 + $0x28] sm:$0xff] }
   0x4   :  { %v722_v3 = vmul.f32 %v719_v2, %v11_v0  ;;  %v725_v4 = vmul.f32 %v719_v2, %v43_v1  ;;  %v737_v8 = vmul.f32 %v719_v2, %v12_v5  ;;  %v740_v9 = vmul.f32 %v719_v2, %v44_v6  ;;  %v46_v13 = vld [vmem:[%s2063_s1 + $0x118] sm:$0xff]  ;;  %v15_v18 = vld [vmem:[%s2063_s1 + $0x20] sm:$0xff]  ;;  %v48_v32 = vld [vmem:[%s2063_s1 + $0x128] sm:$0xff] }
   0x5   :  { %v746_v11 = vmul.f32 %v719_v2, %v13_v7  ;;  %v759_v16 = vmul.f32 %v719_v2, %v45_v10  ;;  %v762_v17 = vmul.f32 %v719_v2, %v14_v12  ;;  %v47_v19 = vld [vmem:[%s2063_s1 + $0x120] sm:$0xff]  ;;  %v777_v23 = vmul.f32 %v719_v2, %v46_v13  ;;  %v17_v33 = vld [vmem:[%s2063_s1 + $0x30] sm:$0xff]  ;;  %v18_v43 = vld [vmem:[%s2063_s1 + $0x38] sm:$0xff] }
   0x6   :  { %v146_v14 = vmul.f32 %v722_v3, %v722_v3  ;;  %v178_v15 = vmul.f32 %v725_v4, %v725_v4  ;;  %v147_v20 = vmul.f32 %v737_v8, %v737_v8  ;;  %v179_v21 = vmul.f32 %v740_v9, %v740_v9  ;;  %v49_v34 = vld [vmem:[%s2063_s1 + $0x130] sm:$0xff]  ;;  %v50_v44 = vld [vmem:[%s2063_s1 + $0x138] sm:$0xff]  ;;  %v19_v45 = vld [vmem:[%s2063_s1 + $0x40] sm:$0xff] }
   0x7   :  { %v148_v22 = vmul.f32 %v746_v11, %v746_v11  ;;  %v180_v25 = vmul.f32 %v759_v16, %v759_v16  ;;  %v149_v26 = vmul.f32 %v762_v17, %v762_v17  ;;  %v786_v27 = vmul.f32 %v719_v2, %v15_v18  ;;  %v51_v46 = vld [vmem:[%s2063_s1 + $0x140] sm:$0xff]  ;;  %v20_v56 = vld [vmem:[%s2063_s1 + $0x48] sm:$0xff]  ;;  %v21_v10 = vld [vmem:[%s2063_s1 + $0x50] sm:$0xff] }
   0x8   :  { %v779_v24 = vadd.f32 %v178_v15, %v146_v14  ;;  %v791_v29 = vadd.f32 %v179_v21, %v147_v20  ;;  %v181_v30 = vmul.f32 %v777_v23, %v777_v23  ;;  %v796_v31 = vmul.f32 %v719_v2, %v47_v19  ;;  %v52_v57 = vld [vmem:[%s2063_s1 + $0x148] sm:$0xff]  ;;  %v53_v12 = vld [vmem:[%s2063_s1 + $0x150] sm:$0xff] }
   0x9   :  { %v810_v35 = vmul.f32 %v719_v2, %v16_v28  ;;  %v812_v36 = vadd.f32 %v180_v25, %v148_v22  ;;  %v150_v38 = vmul.f32 %v786_v27, %v786_v27  ;;  %v821_v40 = vmul.f32 %v719_v2, %v48_v32 }
   0xa   :  { %631 = vrsqrt.f32 %v779_v24  ;;  %v814_v37 = vadd.f32 %v181_v30, %v149_v26  ;;  %v182_v39 = vmul.f32 %v796_v31, %v796_v31  ;;  %v824_v41 = vmul.f32 %v719_v2, %v17_v33  ;;  %v22_v26 = vld [vmem:[%s2063_s1 + $0x58] sm:$0xff] }
   0xb   :  { %633 = vrsqrt.f32 %v791_v29  ;;  %v827_v42 = vmul.f32 %v719_v2, %v49_v34  ;;  %vm244_vm0 = vcmp.eq.f32.partialorder %v779_v24, inf  ;;  %v151_v47 = vmul.f32 %v810_v35, %v810_v35 }
   0xc   :  { %635 = vrsqrt.f32 %v812_v36  ;;  %vm246_vm1 = vcmp.eq.f32.partialorder %v779_v24, 0.0  ;;  %v847_v48 = vadd.f32 %v182_v39, %v150_v38  ;;  %v183_v49 = vmul.f32 %v821_v40, %v821_v40 }
   0xd   :  { %637 = vrsqrt.f32 %v814_v37  ;;  %v152_v50 = vmul.f32 %v824_v41, %v824_v41  ;;  %v184_v51 = vmul.f32 %v827_v42, %v827_v42  ;;  %v856_v52 = vmul.f32 %v719_v2, %v18_v43 }
   0xe   :  { %v859_v53 = vmul.f32 %v719_v2, %v50_v44  ;;  %v862_v54 = vmul.f32 %v719_v2, %v19_v45  ;;  %v865_v55 = vmul.f32 %v719_v2, %v51_v46  ;;  %v247_v58 = vand.u32 2147483648, %v779_v24 }
   0xf   :  { %vm251_vm2 = vcmp.eq.f32.partialorder %v791_v29, inf  ;;  %vm253_vm3 = vcmp.eq.f32.partialorder %v791_v29, 0.0  ;;  %639 = vrsqrt.f32 %v847_v48  ;;  %v877_v59 = vadd.f32 %v183_v49, %v151_v47 }
  0x10   :  { %v879_v60 = vadd.f32 %v184_v51, %v152_v50  ;;  %v153_v61 = vmul.f32 %v856_v52, %v856_v52  ;;  %v185_v62 = vmul.f32 %v859_v53, %v859_v53  ;;  %v154_v63 = vmul.f32 %v862_v54, %v862_v54 }
  0x11   :  { %v186_v0 = vmul.f32 %v865_v55, %v865_v55  ;;  %v890_v1 = vmul.f32 %v719_v2, %v20_v56  ;;  %v893_v5 = vmul.f32 %v719_v2, %v52_v57  ;;  %v254_v6 = vand.u32 2147483648, %v791_v29 }
  0x12   :  { %vm258_vm4 = vcmp.eq.f32.partialorder %v812_v36, inf  ;;  %vm260_vm5 = vcmp.eq.f32.partialorder %v812_v36, 0.0  ;;  %641 = vrsqrt.f32 %v877_v59  ;;  %v261_v7 = vand.u32 2147483648, %v812_v36 }
  0x13   :  { %vm265_vm6 = vcmp.eq.f32.partialorder %v814_v37, inf  ;;  %vm267_vm7 = vcmp.eq.f32.partialorder %v814_v37, 0.0  ;;  %643 = vrsqrt.f32 %v879_v60  ;;  %v268_v14 = vand.u32 2147483648, %v814_v37 }
  0x14   :  { %vm272_vm8 = vcmp.eq.f32.partialorder %v847_v48, inf  ;;  %v911_v15 = vadd.f32 %v185_v62, %v153_v61  ;;  %v913_v18 = vadd.f32 %v186_v0, %v154_v63  ;;  %vm274_vm9 = vcmp.eq.f32.partialorder %v847_v48, 0.0  ;;  %v54_v62 = vld [vmem:[%s2063_s1 + $0x158] sm:$0xff] }
  0x15   :  { %v275_v21 = vand.u32 2147483648, %v847_v48  ;;  %v155_v22 = vmul.f32 %v890_v1, %v890_v1  ;;  %v187_v25 = vmul.f32 %v893_v5, %v893_v5  ;;  %v928_v30 = vmul.f32 %v719_v2, %v21_v10  ;;  %v23_v10 = vld [vmem:[%s2063_s1 + $0x60] sm:$0xff] }
  0x16   :  { %645 = vrsqrt.f32 %v911_v15  ;;  %v931_v32 = vmul.f32 %v719_v2, %v53_v12  ;;  %vm279_vm10 = vcmp.eq.f32.partialorder %v877_v59, inf  ;;  %v282_v34 = vand.u32 2147483648, %v877_v59  ;;  %v55_v12 = vld [vmem:[%s2063_s1 + $0x160] sm:$0xff] }
  0x17   :  { %v632_v13 = vpop.eup %631  ;;  %647 = vrsqrt.f32 %v913_v18  ;;  %vm281_vm11 = vcmp.eq.f32.partialorder %v877_v59, 0.0  ;;  %vm286_vm12 = vcmp.eq.f32.partialorder %v879_v60, inf  ;;  %v289_v44 = vand.u32 2147483648, %v879_v60 }
  0x18   :  { %v634_v19 = vpop.eup %633  ;;  %v243_v20 = vmul.f32 %v632_v13, %v779_v24  ;;  %v950_v45 = vmul.f32 %v719_v2, %v22_v26  ;;  %vm288_vm13 = vcmp.eq.f32.partialorder %v879_v60, 0.0  ;;  %v959_v50 = vadd.f32 %v187_v25, %v155_v22 }
  0x19   :  { %v250_v28 = vmul.f32 %v634_v19, %v791_v29  ;;  %v636_v38 = vpop.eup %635  ;;  %v156_v57 = vmul.f32 %v928_v30, %v928_v30  ;;  %vm293_vm14 = vcmp.eq.f32.partialorder %v911_v15, inf  ;;  %vm295_vm15 = vcmp.eq.f32.partialorder %v911_v15, 0.0 }
  0x1a   :  { %v245_v33 = vsel %vm244_vm0, %v779_v24, %v243_v20  ;;  %v638_v46 = vpop.eup %637  ;;  %v257_v49 = vmul.f32 %v636_v38, %v812_v36  ;;  %649 = vrsqrt.f32 %v959_v50  ;;  %v296_v13 = vand.u32 2147483648, %v911_v15 }
  0x1b   :  { %v941_v39 = vsel %vm246_vm1, %v247_v58, %v245_v33  ;;  %v252_v43 = vsel %vm251_vm2, %v791_v29, %v250_v28  ;;  %v264_v56 = vmul.f32 %v638_v46, %v814_v37  ;;  %v188_v58 = vmul.f32 %v931_v32, %v931_v32 }
  0x1c   :  { %v2077_v47 = vmin.f32 %v941_v39, 1.0  ;;  %v955_v24 = vsel %vm253_vm3, %v254_v6, %v252_v43  ;;  %v259_v61 = vsel %vm258_vm4, %v812_v36, %v257_v49  ;;  %v640_v63 = vpop.eup %639  ;;  %v1012_v22 = vmul.f32 %v719_v2, %v54_v62 }
  0x1d   :  { %v2076_v51 = vmin.f32 %v955_v24, 1.0  ;;  %v266_v6 = vsel %vm265_vm6, %v814_v37, %v264_v56  ;;  %v1009_v20 = vadd.f32 %v188_v58, %v156_v57  ;;  %v157_v37 = vmul.f32 %v950_v45, %v950_v45 }
  0x1e   :  { %v498_v29 = vmul.f32 %v2077_v47, %v722_v3  ;;  %v983_v3 = vsel %vm260_vm5, %v261_v7, %v259_v61  ;;  %v1001_v36 = vsel %vm267_vm7, %v268_v14, %v266_v6  ;;  %v271_v7 = vmul.f32 %v640_v63, %v847_v48 }
  0x1f   :  { %v499_v0 = vmul.f32 %v2076_v51, %v737_v8  ;;  %v2075_v8 = vmin.f32 %v983_v3, 1.0  ;;  %v2074_v19 = vmin.f32 %v1001_v36, 1.0  ;;  %v642_v14 = vpop.eup %641  ;;  %v1023_v28 = vmul.f32 %v719_v2, %v23_v10 }
  0x20   :  { %562 = vst [vmem:[%s2064_s2] sm:$0xff] %v498_v29  ;;  %v273_v26 = vsel %vm272_vm8, %v847_v48, %v271_v7  ;;  %v1026_v33 = vmul.f32 %v719_v2, %v55_v12  ;;  %v644_v38 = vpop.eup %643  ;;  %651 = vrsqrt.f32 %v1009_v20  ;;  %vm300_vm0 = vcmp.eq.f32.partialorder %v913_v18, inf }
  0x21   :  { %563 = vst [vmem:[%s2064_s2 + $0x8] sm:$0xff] %v499_v0  ;;  %v500_v25 = vmul.f32 %v2075_v8, %v746_v11  ;;  %v501_v43 = vmul.f32 %v2074_v19, %v762_v17  ;;  %v1033_v46 = vsel %vm274_vm9, %v275_v21, %v273_v26  ;;  %v278_v11 = vmul.f32 %v642_v14, %v877_v59  ;;  %v24_v0 = vld [vmem:[%s2063_s1 + $0x68] sm:$0xff] }
  0x22   :  { %v2072_v49 = vmin.f32 %v1033_v46, 1.0  ;;  %v285_v56 = vmul.f32 %v644_v38, %v879_v60  ;;  %vm302_vm1 = vcmp.eq.f32.partialorder %v913_v18, 0.0  ;;  %v303_v48 = vand.u32 2147483648, %v913_v18  ;;  %v56_v38 = vld [vmem:[%s2063_s1 + $0x168] sm:$0xff] }
  0x23   :  { %564 = vst [vmem:[%s2064_s2 + $0x10] sm:$0xff] %v500_v25  ;;  %565 = vst [vmem:[%s2064_s2 + $0x18] sm:$0xff] %v501_v43  ;;  %v280_v17 = vsel %vm279_vm10, %v877_v59, %v278_v11  ;;  %v189_v21 = vmul.f32 %v1012_v22, %v1012_v22  ;;  %v158_v57 = vmul.f32 %v1023_v28, %v1023_v28  ;;  %v646_v58 = vpop.eup %645  ;;  %vm307_vm2 = vcmp.eq.f32.partialorder %v959_v50, inf  ;;  %v25_v11 = vld [vmem:[%s2063_s1 + $0x70] sm:$0xff] }
  0x24   :  { %v502_v29 = vmul.f32 %v2072_v49, %v786_v27  ;;  %v1062_v61 = vsel %vm281_vm11, %v282_v34, %v280_v17  ;;  %v287_v62 = vsel %vm286_vm12, %v879_v60, %v285_v56  ;;  %v190_v63 = vmul.f32 %v1026_v33, %v1026_v33  ;;  %v648_v6 = vpop.eup %647  ;;  %v57_v56 = vld [vmem:[%s2063_s1 + $0x170] sm:$0xff] }
  0x25   :  { %v2070_v27 = vmin.f32 %v1062_v61, 1.0  ;;  %v1077_v59 = vsel %vm288_vm13, %v289_v44, %v287_v62  ;;  %v292_v34 = vmul.f32 %v646_v58, %v911_v15  ;;  %v1080_v10 = vadd.f32 %v189_v21, %v157_v37  ;;  %v58_v21 = vld [vmem:[%s2063_s1 + $0x178] sm:$0xff] }
  0x26   :  { %566 = vst [vmem:[%s2064_s2 + $0x20] sm:$0xff] %v502_v29  ;;  %v2069_v12 = vmin.f32 %v1077_v59, 1.0  ;;  %v299_v7 = vmul.f32 %v648_v6, %v913_v18  ;;  %v1088_v14 = vadd.f32 %v190_v63, %v158_v57  ;;  %v1098_v37 = vmul.f32 %v719_v2, %v24_v0  ;;  %v27_v63 = vld [vmem:[%s2063_s1 + $0x80] sm:$0xff] }
  0x27   :  { %v503_v60 = vmul.f32 %v2070_v27, %v810_v35  ;;  %v294_v44 = vsel %vm293_vm14, %v911_v15, %v292_v34  ;;  %653 = vrsqrt.f32 %v1080_v10  ;;  %vm309_vm3 = vcmp.eq.f32.partialorder %v959_v50, 0.0  ;;  %v650_v43 = vpop.eup %649 }
  0x28   :  { %v504_v25 = vmul.f32 %v2069_v12, %v824_v41  ;;  %v1105_v26 = vsel %vm295_vm15, %v296_v13, %v294_v44  ;;  %v301_v35 = vsel %vm300_vm0, %v913_v18, %v299_v7  ;;  %v310_v13 = vand.u32 2147483648, %v959_v50 }
  0x29   :  { %567 = vst [vmem:[%s2064_s2 + $0x28] sm:$0xff] %v503_v60  ;;  %v2067_v41 = vmin.f32 %v1105_v26, 1.0  ;;  %v1120_v15 = vsel %vm302_vm1, %v303_v48, %v301_v35  ;;  %655 = vrsqrt.f32 %v1088_v14  ;;  %v306_v17 = vmul.f32 %v650_v43, %v959_v50  ;;  %v26_v48 = vld [vmem:[%s2063_s1 + $0x78] sm:$0xff] }
  0x2a   :  { %568 = vst [vmem:[%s2064_s2 + $0x30] sm:$0xff] %v504_v25  ;;  %v2066_v18 = vmin.f32 %v1120_v15, 1.0  ;;  %vm314_vm4 = vcmp.eq.f32.partialorder %v1009_v20, inf  ;;  %vm316_vm5 = vcmp.eq.f32.partialorder %v1009_v20, 0.0  ;;  %v317_v58 = vand.u32 2147483648, %v1009_v20  ;;  %v59_v25 = vld [vmem:[%s2063_s1 + $0x180] sm:$0xff] }
  0x2b   :  { %v505_v57 = vmul.f32 %v2067_v41, %v856_v52  ;;  %v1148_v29 = vmul.f32 %v719_v2, %v56_v38  ;;  %v159_v62 = vmul.f32 %v1098_v37, %v1098_v37  ;;  %v308_v52 = vsel %vm307_vm2, %v959_v50, %v306_v17 }
  0x2c   :  { %v506_v0 = vmul.f32 %v2066_v18, %v862_v54  ;;  %v1162_v6 = vmul.f32 %v719_v2, %v25_v11  ;;  %v1165_v34 = vmul.f32 %v719_v2, %v57_v56  ;;  %v1172_v7 = vsel %vm309_vm3, %v310_v13, %v308_v52 }
  0x2d   :  { %569 = vst [vmem:[%s2064_s2 + $0x38] sm:$0xff] %v505_v57  ;;  %v191_v54 = vmul.f32 %v1148_v29, %v1148_v29  ;;  %v1177_v60 = vmul.f32 %v719_v2, %v26_v48  ;;  %v1180_v44 = vmul.f32 %v719_v2, %v58_v21  ;;  %v652_v35 = vpop.eup %651  ;;  %v2065_v50 = vmin.f32 %v1172_v7, 1.0 }
  0x2e   :  { %570 = vst [vmem:[%s2064_s2 + $0x40] sm:$0xff] %v506_v0  ;;  %v160_v38 = vmul.f32 %v1162_v6, %v1162_v6  ;;  %v192_v43 = vmul.f32 %v1165_v34, %v1165_v34  ;;  %v1194_v13 = vmul.f32 %v719_v2, %v27_v63  ;;  %v313_v11 = vmul.f32 %v652_v35, %v1009_v20  ;;  %v28_v63 = vld [vmem:[%s2063_s1 + $0x88] sm:$0xff] }
  0x2f   :  { %v1197_v56 = vadd.f32 %v191_v54, %v159_v62  ;;  %v161_v17 = vmul.f32 %v1177_v60, %v1177_v60  ;;  %v193_v48 = vmul.f32 %v1180_v44, %v1180_v44  ;;  %v507_v21 = vmul.f32 %v2065_v50, %v890_v1  ;;  %v60_v1 = vld [vmem:[%s2063_s1 + $0x188] sm:$0xff] }
  0x30   :  { %v1206_v57 = vadd.f32 %v192_v43, %v160_v38  ;;  %v1209_v0 = vmul.f32 %v719_v2, %v59_v25  ;;  %v315_v62 = vsel %vm314_vm4, %v1009_v20, %v313_v11  ;;  %vm321_vm6 = vcmp.eq.f32.partialorder %v1080_v10, inf  ;;  %v29_v20 = vld [vmem:[%s2063_s1 + $0x90] sm:$0xff] }
  0x31   :  { %657 = vrsqrt.f32 %v1197_v56  ;;  %571 = vst [vmem:[%s2064_s2 + $0x48] sm:$0xff] %v507_v21  ;;  %v1227_v52 = vsel %vm316_vm5, %v317_v58, %v315_v62  ;;  %vm323_vm7 = vcmp.eq.f32.partialorder %v1080_v10, 0.0  ;;  %v162_v54 = vmul.f32 %v1194_v13, %v1194_v13 }
  0x32   :  { %2110 = vst [vmem:[#allocation2_spill] sm:$0xff] %v1209_v0  ;;  %659 = vrsqrt.f32 %v1206_v57  ;;  %v2068_v25 = vmin.f32 %v1227_v52, 1.0  ;;  %v324_v35 = vand.u32 2147483648, %v1080_v10  ;;  %vm328_vm8 = vcmp.eq.f32.partialorder %v1088_v14, inf }
  0x33   :  { %v1236_v38 = vadd.f32 %v193_v48, %v161_v17  ;;  %vm330_vm9 = vcmp.eq.f32.partialorder %v1088_v14, 0.0  ;;  %v194_v43 = vmul.f32 %v1209_v0, %v1209_v0  ;;  %v1245_v11 = vmul.f32 %v719_v2, %v28_v63  ;;  %v61_v17 = vld [vmem:[%s2063_s1 + $0x190] sm:$0xff] }
  0x34   :  { %v654_v58 = vpop.eup %653  ;;  %v1248_v21 = vmul.f32 %v719_v2, %v60_v1  ;;  %v508_v48 = vmul.f32 %v2068_v25, %v928_v30  ;;  %v331_v50 = vand.u32 2147483648, %v1088_v14  ;;  %vm335_vm10 = vcmp.eq.f32.partialorder %v1197_v56, inf }
  0x35   :  { %v320_v62 = vmul.f32 %v654_v58, %v1080_v10  ;;  %661 = vrsqrt.f32 %v1236_v38  ;;  %v1260_v63 = vadd.f32 %v194_v43, %v162_v54  ;;  %v163_v1 = vmul.f32 %v1245_v11, %v1245_v11 }
  0x36   :  { %2111 = vst [vmem:[#allocation3_spill] sm:$0xff] %v1248_v21  ;;  %v656_v18 = vpop.eup %655  ;;  %v1265_v41 = vmul.f32 %v719_v2, %v29_v20  ;;  %572 = vst [vmem:[%s2064_s2 + $0x50] sm:$0xff] %v508_v48  ;;  %v195_v54 = vmul.f32 %v1248_v21, %v1248_v21  ;;  %v1277_v43 = vmul.f32 %v719_v2, %v61_v17  ;;  %v30_v20 = vld [vmem:[%s2063_s1 + $0x98] sm:$0xff]  ;;  %vm337_vm11 = vcmp.eq.f32.partialorder %v1197_v56, 0.0 }
  0x37   :  { %v322_v30 = vsel %vm321_vm6, %v1080_v10, %v320_v62  ;;  %v327_v58 = vmul.f32 %v656_v18, %v1088_v14  ;;  %v338_v48 = vand.u32 2147483648, %v1197_v56  ;;  %663 = vrsqrt.f32 %v1260_v63  ;;  %v62_v10 = vld [vmem:[%s2063_s1 + $0x198] sm:$0xff] }
  0x38   :  { %2112 = vst [vmem:[#allocation4_spill] sm:$0xff] %v1277_v43  ;;  %v1284_v25 = vsel %vm323_vm7, %v324_v35, %v322_v30  ;;  %vm342_vm12 = vcmp.eq.f32.partialorder %v1206_v57, inf  ;;  %v1294_v62 = vadd.f32 %v195_v54, %v163_v1  ;;  %v164_v30 = vmul.f32 %v1265_v41, %v1265_v41  ;;  %v31_v1 = vld [vmem:[%s2063_s1 + $0xa0] sm:$0xff] }
  0x39   :  { %v2071_v18 = vmin.f32 %v1284_v25, 1.0  ;;  %v329_v17 = vsel %vm328_vm8, %v1088_v14, %v327_v58  ;;  %v196_v12 = vmul.f32 %v1277_v43, %v1277_v43  ;;  %v1308_v58 = vmul.f32 %v719_v2, %v30_v20  ;;  %v63_v54 = vld [vmem:[%s2063_s1 + $0x1a0] sm:$0xff] }
  0x3a   :  { %v1301_v35 = vsel %vm330_vm9, %v331_v50, %v329_v17  ;;  %vm344_vm13 = vcmp.eq.f32.partialorder %v1206_v57, 0.0  ;;  %665 = vrsqrt.f32 %v1294_v62  ;;  %v345_v20 = vand.u32 2147483648, %v1206_v57 }
  0x3b   :  { %v509_v14 = vmul.f32 %v2071_v18, %v950_v45  ;;  %v2073_v50 = vmin.f32 %v1301_v35, 1.0  ;;  %vm349_vm14 = vcmp.eq.f32.partialorder %v1236_v38, inf  ;;  %v1324_v17 = vadd.f32 %v196_v12, %v164_v30  ;;  %v64_v30 = vld [vmem:[%s2063_s1 + $0x1a8] sm:$0xff] }
  0x3c   :  { %v1327_v27 = vmul.f32 %v719_v2, %v62_v10  ;;  %v165_v18 = vmul.f32 %v1308_v58, %v1308_v58  ;;  %v1338_v49 = vmul.f32 %v719_v2, %v31_v1  ;;  %v1341_v12 = vmul.f32 %v719_v2, %v63_v54  ;;  %v32_v10 = vld [vmem:[%s2063_s1 + $0xa8] sm:$0xff]  ;;  %v33_v1 = vld [vmem:[%s2063_s1 + $0xb0] sm:$0xff] }
  0x3d   :  { %573 = vst [vmem:[%s2064_s2 + $0x58] sm:$0xff] %v509_v14  ;;  %v510_v45 = vmul.f32 %v2073_v50, %v1023_v28  ;;  %vm351_vm15 = vcmp.eq.f32.partialorder %v1236_v38, 0.0  ;;  %v352_v28 = vand.u32 2147483648, %v1236_v38  ;;  %vm356_vm0 = vcmp.eq.f32.partialorder %v1260_v63, inf }
  0x3e   :  { %2113 = vst [vmem:[#allocation5_spill] sm:$0xff] %v1327_v27  ;;  %2114 = vst [vmem:[#allocation6_spill] sm:$0xff] %v1341_v12  ;;  %v658_v14 = vpop.eup %657  ;;  %667 = vrsqrt.f32 %v1324_v17  ;;  %v197_v19 = vmul.f32 %v1327_v27, %v1327_v27  ;;  %v166_v8 = vmul.f32 %v1338_v49, %v1338_v49  ;;  %v198_v51 = vmul.f32 %v1341_v12, %v1341_v12 }
  0x3f   :  { %v660_v54 = vpop.eup %659  ;;  %574 = vst [vmem:[%s2064_s2 + $0x60] sm:$0xff] %v510_v45  ;;  %v334_v50 = vmul.f32 %v658_v14, %v1197_v56  ;;  %vm358_vm1 = vcmp.eq.f32.partialorder %v1260_v63, 0.0  ;;  %v1369_v43 = vmul.f32 %v719_v2, %v32_v10  ;;  %v1372_v45 = vmul.f32 %v719_v2, %v64_v30 }
  0x40   :  { %v341_v47 = vmul.f32 %v660_v54, %v1206_v57  ;;  %v1377_v27 = vadd.f32 %v197_v19, %v165_v18  ;;  %v1379_v21 = vadd.f32 %v198_v51, %v166_v8  ;;  %v65_v54 = vld [vmem:[%s2063_s1 + $0x1b0] sm:$0xff]  ;;  %v1385_v12 = vmul.f32 %v719_v2, %v33_v1 }
  0x41   :  { %2115 = vst [vmem:[#allocation7_spill] sm:$0xff] %v1372_v45  ;;  %v336_v14 = vsel %vm335_vm10, %v1197_v56, %v334_v50  ;;  %v167_v51 = vmul.f32 %v1369_v43, %v1369_v43  ;;  %v199_v8 = vmul.f32 %v1372_v45, %v1372_v45  ;;  %vm363_vm2 = vcmp.eq.f32.partialorder %v1294_v62, inf }
  0x42   :  { %v662_v10 = vpop.eup %661  ;;  %v1389_v30 = vsel %vm337_vm11, %v338_v48, %v336_v14  ;;  %v343_v50 = vsel %vm342_vm12, %v1206_v57, %v341_v47  ;;  %669 = vrsqrt.f32 %v1377_v27  ;;  %v359_v47 = vand.u32 2147483648, %v1260_v63 }
  0x43   :  { %v2082_v19 = vmin.f32 %v1389_v30, 1.0  ;;  %v1401_v18 = vsel %vm344_vm13, %v345_v20, %v343_v50  ;;  %v348_v56 = vmul.f32 %v662_v10, %v1236_v38  ;;  %v1409_v1 = vmul.f32 %v719_v2, %v65_v54  ;;  %v34_v10 = vld [vmem:[%s2063_s1 + $0xb8] sm:$0xff] }
  0x44   :  { %v2086_v48 = vmin.f32 %v1401_v18, 1.0  ;;  %v664_v14 = vpop.eup %663  ;;  %vm365_vm3 = vcmp.eq.f32.partialorder %v1294_v62, 0.0  ;;  %671 = vrsqrt.f32 %v1379_v21  ;;  %v66_v54 = vld [vmem:[%s2063_s1 + $0x1b8] sm:$0xff]  ;;  %vm370_vm4 = vcmp.eq.f32.partialorder %v1324_v17, inf }
  0x45   :  { %2116 = vst [vmem:[#allocation8_spill] sm:$0xff] %v1409_v1  ;;  %v511_v57 = vmul.f32 %v2082_v19, %v1098_v37  ;;  %v350_v20 = vsel %vm349_vm14, %v1236_v38, %v348_v56  ;;  %v355_v56 = vmul.f32 %v664_v14, %v1260_v63  ;;  %v366_v19 = vand.u32 2147483648, %v1294_v62 }
  0x46   :  { %v512_v37 = vmul.f32 %v2086_v48, %v1162_v6  ;;  %v1430_v50 = vsel %vm351_vm15, %v352_v28, %v350_v20  ;;  %v1439_v0 = vadd.f32 %v199_v8, %v167_v51  ;;  %v168_v6 = vmul.f32 %v1385_v12, %v1385_v12 }
  0x47   :  { %2117 = vst [vmem:[#allocation9_spill] sm:$0xff] %v1430_v50  ;;  %575 = vst [vmem:[%s2064_s2 + $0x68] sm:$0xff] %v511_v57  ;;  %v2085_v45 = vmin.f32 %v1430_v50, 1.0  ;;  %v666_v38 = vpop.eup %665  ;;  %v357_v28 = vsel %vm356_vm0, %v1260_v63, %v355_v56  ;;  %v200_v14 = vmul.f32 %v1409_v1, %v1409_v1  ;;  %v1452_v57 = vmul.f32 %v719_v2, %v34_v10  ;;  %v35_v10 = vld [vmem:[%s2063_s1 + $0xc0] sm:$0xff] }
  0x48   :  { %576 = vst [vmem:[%s2064_s2 + $0x70] sm:$0xff] %v512_v37  ;;  %v1455_v51 = vmul.f32 %v719_v2, %v66_v54  ;;  %v1462_v20 = vsel %vm358_vm1, %v359_v47, %v357_v28  ;;  %v362_v37 = vmul.f32 %v666_v38, %v1294_v62  ;;  %673 = vrsqrt.f32 %v1439_v0 }
  0x49   :  { %v513_v8 = vmul.f32 %v2085_v45, %v1177_v60  ;;  %2119 = vst [vmem:[#allocation11_spill] sm:$0xff] %v1462_v20  ;;  %v2090_v56 = vmin.f32 %v1462_v20, 1.0  ;;  %vm372_vm5 = vcmp.eq.f32.partialorder %v1324_v17, 0.0  ;;  %v373_v54 = vand.u32 2147483648, %v1324_v17  ;;  %v67_v45 = vld [vmem:[%s2063_s1 + $0x1c0] sm:$0xff] }
  0x4a   :  { %2118 = vst [vmem:[#allocation10_spill] sm:$0xff] %v1455_v51  ;;  %vm377_vm6 = vcmp.eq.f32.partialorder %v1377_v27, inf  ;;  %v364_v63 = vsel %vm363_vm2, %v1294_v62, %v362_v37  ;;  %v1479_v47 = vadd.f32 %v200_v14, %v168_v6  ;;  %v169_v38 = vmul.f32 %v1452_v57, %v1452_v57  ;;  %v36_v37 = vld [vmem:[%s2063_s1 + $0xc8] sm:$0xff] }
  0x4b   :  { %v668_v60 = vpop.eup %667  ;;  %577 = vst [vmem:[%s2064_s2 + $0x78] sm:$0xff] %v513_v8  ;;  %v201_v28 = vmul.f32 %v1455_v51, %v1455_v51  ;;  %v514_v8 = vmul.f32 %v2090_v56, %v1194_v13  ;;  %v1493_v48 = vsel %vm365_vm3, %v366_v19, %v364_v63  ;;  %v1497_v14 = vmul.f32 %v719_v2, %v35_v10  ;;  %v68_v10 = vld [vmem:[%s2063_s1 + $0x1c8] sm:$0xff] }
  0x4c   :  { %2120 = vst [vmem:[#allocation12_spill] sm:$0xff] %v1493_v48  ;;  %v369_v6 = vmul.f32 %v668_v60, %v1324_v17  ;;  %v2089_v51 = vmin.f32 %v1493_v48, 1.0  ;;  %vm379_vm7 = vcmp.eq.f32.partialorder %v1377_v27, 0.0  ;;  %v380_v1 = vand.u32 2147483648, %v1377_v27 }
  0x4d   :  { %675 = vrsqrt.f32 %v1479_v47  ;;  %578 = vst [vmem:[%s2064_s2 + $0x80] sm:$0xff] %v514_v8  ;;  %vm384_vm8 = vcmp.eq.f32.partialorder %v1379_v21, inf  ;;  %v1513_v62 = vadd.f32 %v201_v28, %v169_v38  ;;  %v1516_v19 = vmul.f32 %v719_v2, %v67_v45  ;;  %v37_v45 = vld [vmem:[%s2063_s1 + $0xd0] sm:$0xff] }
  0x4e   :  { %v371_v13 = vsel %vm370_vm4, %v1324_v17, %v369_v6  ;;  %v515_v60 = vmul.f32 %v2089_v51, %v1245_v11  ;;  %v170_v8 = vmul.f32 %v1497_v14, %v1497_v14  ;;  %v1531_v38 = vmul.f32 %v719_v2, %v36_v37  ;;  %v69_v28 = vld [vmem:[%s2063_s1 + $0x1d0] sm:$0xff] }
  0x4f   :  { %2121 = vst [vmem:[#allocation13_spill] sm:$0xff] %v1516_v19  ;;  %v1526_v63 = vsel %vm372_vm5, %v373_v54, %v371_v13  ;;  %v670_v6 = vpop.eup %669  ;;  %vm386_vm9 = vcmp.eq.f32.partialorder %v1379_v21, 0.0  ;;  %v387_v17 = vand.u32 2147483648, %v1379_v21  ;;  %677 = vrsqrt.f32 %v1513_v62 }
  0x50   :  { %2122 = vst [vmem:[#allocation14_spill] sm:$0xff] %v1526_v63  ;;  %v2094_v11 = vmin.f32 %v1526_v63, 1.0  ;;  %579 = vst [vmem:[%s2064_s2 + $0x88] sm:$0xff] %v515_v60  ;;  %v376_v54 = vmul.f32 %v670_v6, %v1377_v27  ;;  %vm391_vm10 = vcmp.eq.f32.partialorder %v1439_v0, inf  ;;  %v202_v37 = vmul.f32 %v1516_v19, %v1516_v19 }
  0x51   :  { %v1551_v13 = vmul.f32 %v719_v2, %v68_v10  ;;  %v672_v51 = vpop.eup %671  ;;  %v171_v48 = vmul.f32 %v1531_v38, %v1531_v38  ;;  %v1559_v60 = vmul.f32 %v719_v2, %v37_v45  ;;  %v1562_v6 = vmul.f32 %v719_v2, %v69_v28 }
  0x52   :  { %v516_v56 = vmul.f32 %v2094_v11, %v1265_v41  ;;  %v378_v19 = vsel %vm377_vm6, %v1377_v27, %v376_v54  ;;  %v383_v10 = vmul.f32 %v672_v51, %v1379_v21  ;;  %v1568_v20 = vadd.f32 %v202_v37, %v170_v8  ;;  %v38_v11 = vld [vmem:[%s2063_s1 + $0xd8] sm:$0xff] }
  0x53   :  { %2123 = vst [vmem:[#allocation15_spill] sm:$0xff] %v1551_v13  ;;  %2124 = vst [vmem:[#allocation16_spill] sm:$0xff] %v1562_v6  ;;  %v203_v41 = vmul.f32 %v1551_v13, %v1551_v13  ;;  %v1580_v45 = vsel %vm379_vm7, %v380_v1, %v378_v19  ;;  %vm393_vm11 = vcmp.eq.f32.partialorder %v1439_v0, 0.0  ;;  %v172_v51 = vmul.f32 %v1559_v60, %v1559_v60 }
  0x54   :  { %580 = vst [vmem:[%s2064_s2 + $0x90] sm:$0xff] %v516_v56  ;;  %2125 = vst [vmem:[#allocation17_spill] sm:$0xff] %v1580_v45  ;;  %v204_v8 = vmul.f32 %v1562_v6, %v1562_v6  ;;  %v2099_v28 = vmin.f32 %v1580_v45, 1.0  ;;  %v385_v54 = vsel %vm384_vm8, %v1379_v21, %v383_v10  ;;  %v394_v56 = vand.u32 2147483648, %v1439_v0  ;;  %v70_v21 = vld [vmem:[%s2063_s1 + $0x1d8] sm:$0xff] }
  0x55   :  { %679 = vrsqrt.f32 %v1568_v20  ;;  %v674_v27 = vpop.eup %673  ;;  %v1595_v1 = vsel %vm386_vm9, %v387_v17, %v385_v54  ;;  %vm398_vm12 = vcmp.eq.f32.partialorder %v1479_v47, inf  ;;  %v1598_v19 = vadd.f32 %v203_v41, %v171_v48  ;;  %v71_v41 = vld [vmem:[%s2063_s1 + $0x1e0] sm:$0xff] }
  0x56   :  { %2126 = vst [vmem:[#allocation18_spill] sm:$0xff] %v1595_v1  ;;  %v1601_v37 = vmul.f32 %v719_v2, %v38_v11  ;;  %v517_v10 = vmul.f32 %v2099_v28, %v1308_v58  ;;  %v2098_v6 = vmin.f32 %v1595_v1, 1.0  ;;  %v390_v13 = vmul.f32 %v674_v27, %v1439_v0  ;;  %v39_v58 = vld [vmem:[%s2063_s1 + $0xe0] sm:$0xff] }
  0x57   :  { %v1608_v63 = vadd.f32 %v204_v8, %v172_v51  ;;  %vm400_vm13 = vcmp.eq.f32.partialorder %v1479_v47, 0.0  ;;  %v401_v48 = vand.u32 2147483648, %v1479_v47  ;;  %vm405_vm14 = vcmp.eq.f32.partialorder %v1513_v62, inf  ;;  %v40_v51 = vld [vmem:[%s2063_s1 + $0xe8] sm:$0xff] }
  0x58   :  { %2127 = vst [vmem:[#allocation19_spill] sm:$0xff] %v1601_v37  ;;  %681 = vrsqrt.f32 %v1598_v19  ;;  %581 = vst [vmem:[%s2064_s2 + $0x98] sm:$0xff] %v517_v10  ;;  %v518_v11 = vmul.f32 %v2098_v6, %v1338_v49  ;;  %v392_v17 = vsel %vm391_vm10, %v1439_v0, %v390_v13  ;;  %vm407_vm15 = vcmp.eq.f32.partialorder %v1513_v62, 0.0  ;;  %v72_v49 = vld [vmem:[%s2063_s1 + $0x1e8] sm:$0xff]  ;;  %v41_v10 = vld [vmem:[%s2063_s1 + $0xf0] sm:$0xff] }
  0x59   :  { %683 = vrsqrt.f32 %v1608_v63  ;;  %v1642_v13 = vsel %vm393_vm11, %v394_v56, %v392_v17  ;;  %v408_v54 = vand.u32 2147483648, %v1513_v62  ;;  %vm412_vm0 = vcmp.eq.f32.partialorder %v1568_v20, inf }
  0x5a   :  { %v676_v8 = vpop.eup %675  ;;  %v1647_v27 = vmul.f32 %v719_v2, %v70_v21  ;;  %582 = vst [vmem:[%s2064_s2 + $0xa0] sm:$0xff] %v518_v11  ;;  %v173_v56 = vmul.f32 %v1601_v37, %v1601_v37  ;;  %v1660_v17 = vmul.f32 %v719_v2, %v39_v58  ;;  %v1665_v28 = vmul.f32 %v719_v2, %v71_v41 }
  0x5b   :  { %v397_v0 = vmul.f32 %v676_v8, %v1479_v47  ;;  %v1668_v1 = vmul.f32 %v719_v2, %v40_v51  ;;  %v1671_v11 = vmul.f32 %v719_v2, %v72_v49  ;;  %v73_v8 = vld [vmem:[%s2063_s1 + $0x1f0] sm:$0xff]  ;;  %v2131_v58 = vmin.f32 %v1642_v13, 1.0 }
  0x5c   :  { %2128 = vst [vmem:[#allocation20_spill] sm:$0xff] %v1647_v27  ;;  %v205_v21 = vmul.f32 %v1647_v27, %v1647_v27  ;;  %v678_v6 = vpop.eup %677  ;;  %v174_v51 = vmul.f32 %v1660_v17, %v1660_v17  ;;  %v1685_v27 = vmul.f32 %v719_v2, %v41_v10  ;;  %vm414_vm1 = vcmp.eq.f32.partialorder %v1568_v20, 0.0 }
  0x5d   :  { %2129 = vst [vmem:[#allocation21_spill] sm:$0xff] %v1668_v1  ;;  %2130 = vst [vmem:[#allocation22_spill] sm:$0xff] %v1671_v11  ;;  %v519_v37 = vmul.f32 %v2131_v58, %v1369_v43  ;;  %v399_v41 = vsel %vm398_vm12, %v1479_v47, %v397_v0  ;;  %v404_v45 = vmul.f32 %v678_v6, %v1513_v62  ;;  %vm419_vm2 = vcmp.eq.f32.partialorder %v1598_v19, inf }
  0x5e   :  { %v1689_v49 = vsel %vm400_vm13, %v401_v48, %v399_v41  ;;  %v1692_v50 = vadd.f32 %v205_v21, %v173_v56  ;;  %v206_v43 = vmul.f32 %v1665_v28, %v1665_v28  ;;  %v175_v10 = vmul.f32 %v1668_v1, %v1668_v1 }
  0x5f   :  { %583 = vst [vmem:[%s2064_s2 + $0xa8] sm:$0xff] %v519_v37  ;;  %v2108_v0 = vmin.f32 %v1689_v49, 1.0  ;;  %v207_v47 = vmul.f32 %v1671_v11, %v1671_v11  ;;  %v1705_v48 = vmul.f32 %v719_v2, %v73_v8  ;;  %v406_v6 = vsel %vm405_vm14, %v1513_v62, %v404_v45 }
  0x60   :  { %v415_v56 = vand.u32 2147483648, %v1568_v20  ;;  %685 = vrsqrt.f32 %v1692_v50  ;;  %v1718_v21 = vsel %vm407_vm15, %v408_v54, %v406_v6  ;;  %v1721_v8 = vadd.f32 %v206_v43, %v174_v51  ;;  %v42_v54 = vld [vmem:[%s2063_s1 + $0xf8] sm:$0xff] }
  0x61   :  { %v520_v37 = vmul.f32 %v2108_v0, %v1385_v12  ;;  %v2107_v45 = vmin.f32 %v1718_v21, 1.0  ;;  %v1724_v41 = vadd.f32 %v207_v47, %v175_v10  ;;  %v176_v11 = vmul.f32 %v1685_v27, %v1685_v27  ;;  %v74_v51 = vld [vmem:[%s2063_s1 + $0x1f8] sm:$0xff] }
  0x62   :  { %v680_v58 = vpop.eup %679  ;;  %v208_v1 = vmul.f32 %v1705_v48, %v1705_v48  ;;  %vm421_vm3 = vcmp.eq.f32.partialorder %v1598_v19, 0.0  ;;  %v422_v62 = vand.u32 2147483648, %v1598_v19  ;;  %687 = vrsqrt.f32 %v1721_v8 }
  0x63   :  { %584 = vst [vmem:[%s2064_s2 + $0xb0] sm:$0xff] %v520_v37  ;;  %v411_v12 = vmul.f32 %v680_v58, %v1568_v20  ;;  %v521_v43 = vmul.f32 %v2107_v45, %v1452_v57  ;;  %vm426_vm4 = vcmp.eq.f32.partialorder %v1608_v63, inf  ;;  %vm428_vm5 = vcmp.eq.f32.partialorder %v1608_v63, 0.0 }
  0x64   :  { %689 = vrsqrt.f32 %v1724_v41  ;;  %v429_v6 = vand.u32 2147483648, %v1608_v63  ;;  %vm433_vm6 = vcmp.eq.f32.partialorder %v1692_v50, inf  ;;  %v1754_v37 = vadd.f32 %v208_v1, %v176_v11 }
  0x65   :  { %v682_v10 = vpop.eup %681  ;;  %v413_v47 = vsel %vm412_vm0, %v1568_v20, %v411_v12  ;;  %585 = vst [vmem:[%s2064_s2 + $0xb8] sm:$0xff] %v521_v43  ;;  %vm435_vm7 = vcmp.eq.f32.partialorder %v1692_v50, 0.0  ;;  %v1766_v12 = vmul.f32 %v719_v2, %v42_v54  ;;  %v1769_v0 = vmul.f32 %v719_v2, %v74_v51 }
  0x66   :  { %v684_v58 = vpop.eup %683  ;;  %v1761_v57 = vsel %vm414_vm1, %v415_v56, %v413_v47  ;;  %v418_v45 = vmul.f32 %v682_v10, %v1598_v19  ;;  %v436_v43 = vand.u32 2147483648, %v1692_v50  ;;  %691 = vrsqrt.f32 %v1754_v37 }
  0x67   :  { %v2109_v1 = vmin.f32 %v1761_v57, 1.0  ;;  %v425_v11 = vmul.f32 %v684_v58, %v1608_v63  ;;  %vm440_vm8 = vcmp.eq.f32.partialorder %v1721_v8, inf  ;;  %v443_v56 = vand.u32 2147483648, %v1721_v8 }
  0x68   :  { %v420_v20 = vsel %vm419_vm2, %v1598_v19, %v418_v45  ;;  %v177_v2 = vmul.f32 %v1766_v12, %v1766_v12  ;;  %vm442_vm9 = vcmp.eq.f32.partialorder %v1721_v8, 0.0  ;;  %vm447_vm10 = vcmp.eq.f32.partialorder %v1724_v41, inf }
  0x69   :  { %v522_v51 = vmul.f32 %v2109_v1, %v1497_v14  ;;  %v1788_v10 = vsel %vm421_vm3, %v422_v62, %v420_v20  ;;  %v427_v45 = vsel %vm426_vm4, %v1608_v63, %v425_v11  ;;  %v209_v47 = vmul.f32 %v1769_v0, %v1769_v0 }
  0x6a   :  { %v491_v58 = vmin.f32 %v1788_v10, 1.0  ;;  %v1800_v14 = vsel %vm428_vm5, %v429_v6, %v427_v45  ;;  %vm449_vm11 = vcmp.eq.f32.partialorder %v1724_v41, 0.0  ;;  %v2132_v19 = vmin.f32 %v941_v39, 1.0  ;;  %v2177_v10 = vld [vmem:[#allocation21_spill] sm:$0xff] }
  0x6b   :  { %v2133_v11 = vmin.f32 %v955_v24, 1.0  ;;  %586 = vst [vmem:[%s2064_s2 + $0xc0] sm:$0xff] %v522_v51  ;;  %v492_v1 = vmin.f32 %v1800_v14, 1.0  ;;  %v1813_v54 = vadd.f32 %v209_v47, %v177_v2  ;;  %v2134_v63 = vmin.f32 %v983_v3, 1.0 }
  0x6c   :  { %v530_v62 = vmul.f32 %v2132_v19, %v725_v4  ;;  %v2135_v39 = vmin.f32 %v1001_v36, 1.0  ;;  %v2136_v24 = vmin.f32 %v1033_v46, 1.0  ;;  %v2137_v3 = vmin.f32 %v1062_v61, 1.0 }
  0x6d   :  { %v531_v20 = vmul.f32 %v2133_v11, %v740_v9  ;;  %v532_v6 = vmul.f32 %v2134_v63, %v759_v16  ;;  %v523_v9 = vmul.f32 %v491_v58, %v1531_v38  ;;  %v2138_v36 = vmin.f32 %v1077_v59, 1.0  ;;  %v686_v2 = vpop.eup %685 }
  0x6e   :  { %v533_v4 = vmul.f32 %v2135_v39, %v777_v23  ;;  %594 = vst [vmem:[%s2064_s2 + $0x100] sm:$0xff] %v530_v62  ;;  %v534_v16 = vmul.f32 %v2136_v24, %v796_v31  ;;  %v535_v23 = vmul.f32 %v2137_v3, %v821_v40  ;;  %v524_v51 = vmul.f32 %v492_v1, %v1559_v60  ;;  %v2156_v24 = vld [vmem:[#allocation14_spill] sm:$0xff] }
  0x6f   :  { %595 = vst [vmem:[%s2064_s2 + $0x108] sm:$0xff] %v531_v20  ;;  %v536_v38 = vmul.f32 %v2138_v36, %v827_v42  ;;  %vm454_vm12 = vcmp.eq.f32.partialorder %v1754_v37, inf  ;;  %vm456_vm13 = vcmp.eq.f32.partialorder %v1754_v37, 0.0  ;;  %693 = vrsqrt.f32 %v1813_v54  ;;  %596 = vst [vmem:[%s2064_s2 + $0x110] sm:$0xff] %v532_v6  ;;  %v688_v62 = vpop.eup %687  ;;  %v2159_v36 = vld [vmem:[#allocation17_spill] sm:$0xff] }
  0x70   :  { %597 = vst [vmem:[%s2064_s2 + $0x118] sm:$0xff] %v533_v4  ;;  %587 = vst [vmem:[%s2064_s2 + $0xc8] sm:$0xff] %v523_v9  ;;  %v432_v31 = vmul.f32 %v686_v2, %v1692_v50  ;;  %v457_v40 = vand.u32 2147483648, %v1754_v37  ;;  %v2139_v42 = vmin.f32 %v1105_v26, 1.0  ;;  %v2140_v61 = vmin.f32 %v1120_v15, 1.0  ;;  %v2155_v9 = vld [vmem:[#allocation4_spill] sm:$0xff] }
  0x71   :  { %598 = vst [vmem:[%s2064_s2 + $0x120] sm:$0xff] %v534_v16  ;;  %599 = vst [vmem:[%s2064_s2 + $0x128] sm:$0xff] %v535_v23  ;;  %v2141_v60 = vmin.f32 %v1172_v7, 1.0  ;;  %v2142_v47 = vmin.f32 %v1227_v52, 1.0  ;;  %v2143_v26 = vmin.f32 %v1284_v25, 1.0  ;;  %v2144_v15 = vmin.f32 %v1301_v35, 1.0  ;;  %v690_v35 = vpop.eup %689 }
  0x72   :  { %600 = vst [vmem:[%s2064_s2 + $0x130] sm:$0xff] %v536_v38  ;;  %v537_v46 = vmul.f32 %v2139_v42, %v859_v53  ;;  %v538_v59 = vmul.f32 %v2140_v61, %v865_v55  ;;  %588 = vst [vmem:[%s2064_s2 + $0xd0] sm:$0xff] %v524_v51  ;;  %v434_v11 = vsel %vm433_vm6, %v1692_v50, %v432_v31  ;;  %v2147_v7 = vld [vmem:[#allocation9_spill] sm:$0xff]  ;;  %v2153_v50 = vld [vmem:[#allocation12_spill] sm:$0xff]  ;;  %v2157_v16 = vmin.f32 %v2156_v24, 1.0 }
  0x73   :  { %v539_v45 = vmul.f32 %v2141_v60, %v893_v5  ;;  %v540_v19 = vmul.f32 %v2142_v47, %v931_v32  ;;  %v541_v53 = vmul.f32 %v2143_v26, %v1012_v22  ;;  %v542_v55 = vmul.f32 %v2144_v15, %v1026_v33  ;;  %v2158_v23 = vld [vmem:[#allocation5_spill] sm:$0xff]  ;;  %v2161_v31 = vld [vmem:[#allocation6_spill] sm:$0xff]  ;;  %v2166_v47 = vld [vmem:[#allocation8_spill] sm:$0xff] }
  0x74   :  { %601 = vst [vmem:[%s2064_s2 + $0x138] sm:$0xff] %v537_v46  ;;  %602 = vst [vmem:[%s2064_s2 + $0x140] sm:$0xff] %v538_v59  ;;  %v2145_v5 = vmin.f32 %v1389_v30, 1.0  ;;  %v2146_v22 = vmin.f32 %v1401_v18, 1.0  ;;  %v2148_v52 = vmin.f32 %v2147_v7, 1.0  ;;  %v437_v20 = vsel %vm435_vm7, %v436_v43, %v434_v11  ;;  %v2152_v18 = vld [vmem:[#allocation3_spill] sm:$0xff] }
  0x75   :  { %v439_v63 = vmul.f32 %v688_v62, %v1721_v8  ;;  %603 = vst [vmem:[%s2064_s2 + $0x148] sm:$0xff] %v539_v45  ;;  %604 = vst [vmem:[%s2064_s2 + $0x150] sm:$0xff] %v540_v19  ;;  %v2154_v43 = vmin.f32 %v2153_v50, 1.0  ;;  %v493_v39 = vmin.f32 %v437_v20, 1.0  ;;  %v446_v4 = vmul.f32 %v690_v35, %v1724_v41  ;;  %v2162_v42 = vld [vmem:[#allocation18_spill] sm:$0xff]  ;;  %v2164_v59 = vld [vmem:[#allocation7_spill] sm:$0xff] }
  0x76   :  { %v543_v32 = vmul.f32 %v2145_v5, %v1148_v29  ;;  %v544_v33 = vmul.f32 %v2146_v22, %v1165_v34  ;;  %v545_v25 = vmul.f32 %v2148_v52, %v1180_v44  ;;  %605 = vst [vmem:[%s2064_s2 + $0x158] sm:$0xff] %v541_v53  ;;  %606 = vst [vmem:[%s2064_s2 + $0x160] sm:$0xff] %v542_v55  ;;  %v2149_v29 = vld [vmem:[#allocation2_spill] sm:$0xff]  ;;  %v2150_v34 = vld [vmem:[#allocation11_spill] sm:$0xff]  ;;  %v2160_v38 = vmin.f32 %v2159_v36, 1.0  ;;  %v692_v53 = vpop.eup %691 }
  0x77   :  { %v2151_v44 = vmin.f32 %v2150_v34, 1.0  ;;  %v547_v6 = vmul.f32 %v2154_v43, %v2152_v18  ;;  %v548_v3 = vmul.f32 %v2157_v16, %v2155_v9  ;;  %v441_v51 = vsel %vm440_vm8, %v1721_v8, %v439_v63  ;;  %v2168_v15 = vld [vmem:[#allocation19_spill] sm:$0xff]  ;;  %v2175_v35 = vld [vmem:[#allocation16_spill] sm:$0xff] }
  0x78   :  { %607 = vst [vmem:[%s2064_s2 + $0x168] sm:$0xff] %v543_v32  ;;  %608 = vst [vmem:[%s2064_s2 + $0x170] sm:$0xff] %v544_v33  ;;  %v549_v2 = vmul.f32 %v2160_v38, %v2158_v23  ;;  %v2163_v46 = vmin.f32 %v2162_v42, 1.0  ;;  %v2165_v60 = vmin.f32 %v1642_v13, 1.0  ;;  %v2167_v19 = vmin.f32 %v1689_v49, 1.0  ;;  %v2169_v13 = vld [vmem:[#allocation10_spill] sm:$0xff] }
  0x79   :  { %v546_v30 = vmul.f32 %v2151_v44, %v2149_v29  ;;  %609 = vst [vmem:[%s2064_s2 + $0x178] sm:$0xff] %v545_v25  ;;  %611 = vst [vmem:[%s2064_s2 + $0x188] sm:$0xff] %v547_v6  ;;  %v525_v55 = vmul.f32 %v493_v39, %v2168_v15  ;;  %v444_v62 = vsel %vm442_vm9, %v443_v56, %v441_v51  ;;  %v2170_v49 = vmin.f32 %v1718_v21, 1.0  ;;  %v2172_v21 = vld [vmem:[#allocation13_spill] sm:$0xff]  ;;  %v2174_v52 = vld [vmem:[#allocation15_spill] sm:$0xff] }
  0x7a   :  { %v550_v61 = vmul.f32 %v2163_v46, %v2161_v31  ;;  %v551_v45 = vmul.f32 %v2165_v60, %v2164_v59  ;;  %v552_v26 = vmul.f32 %v2167_v19, %v2166_v47  ;;  %v448_v11 = vsel %vm447_vm10, %v1724_v41, %v446_v4  ;;  %612 = vst [vmem:[%s2064_s2 + $0x190] sm:$0xff] %v548_v3  ;;  %v2176_v63 = vld [vmem:[#allocation20_spill] sm:$0xff] }
  0x7b   :  { %610 = vst [vmem:[%s2064_s2 + $0x180] sm:$0xff] %v546_v30  ;;  %613 = vst [vmem:[%s2064_s2 + $0x198] sm:$0xff] %v549_v2  ;;  %v553_v5 = vmul.f32 %v2170_v49, %v2169_v13  ;;  %v494_v32 = vmin.f32 %v444_v62, 1.0  ;;  %v2171_v8 = vand.u32 2147483648, %v1724_v41  ;;  %v453_v22 = vmul.f32 %v692_v53, %v1754_v37 }
  0x7c   :  { %614 = vst [vmem:[%s2064_s2 + $0x1a0] sm:$0xff] %v550_v61  ;;  %615 = vst [vmem:[%s2064_s2 + $0x1a8] sm:$0xff] %v551_v45  ;;  %v2173_v33 = vmin.f32 %v1761_v57, 1.0  ;;  %v555_v25 = vmul.f32 %v491_v58, %v2174_v52  ;;  %v556_v20 = vmul.f32 %v492_v1, %v2175_v35  ;;  %v557_v57 = vmul.f32 %v493_v39, %v2176_v63  ;;  %v694_v14 = vpop.eup %693 }
  0x7d   :  { %v451_v56 = vsel %vm449_vm11, %v2171_v8, %v448_v11  ;;  %616 = vst [vmem:[%s2064_s2 + $0x1b0] sm:$0xff] %v552_v26  ;;  %589 = vst [vmem:[%s2064_s2 + $0xd8] sm:$0xff] %v525_v55  ;;  %v526_v29 = vmul.f32 %v494_v32, %v1660_v17  ;;  %v455_v34 = vsel %vm454_vm12, %v1754_v37, %v453_v22  ;;  %vm461_vm14 = vcmp.eq.f32.partialorder %v1813_v54, inf }
  0x7e   :  { %v554_v7 = vmul.f32 %v2173_v33, %v2172_v21  ;;  %v495_v41 = vmin.f32 %v451_v56, 1.0  ;;  %617 = vst [vmem:[%s2064_s2 + $0x1b8] sm:$0xff] %v553_v5  ;;  %v558_v44 = vmul.f32 %v494_v32, %v1665_v28  ;;  %v458_v1 = vsel %vm456_vm13, %v457_v40, %v455_v34  ;;  %619 = vst [vmem:[%s2064_s2 + $0x1c8] sm:$0xff] %v555_v25  ;;  %v2178_v28 = vld [vmem:[#allocation22_spill] sm:$0xff] }
  0x7f   :  { %620 = vst [vmem:[%s2064_s2 + $0x1d0] sm:$0xff] %v556_v20  ;;  %621 = vst [vmem:[%s2064_s2 + $0x1d8] sm:$0xff] %v557_v57  ;;  %v496_v37 = vmin.f32 %v458_v1, 1.0  ;;  %v464_v40 = vand.u32 2147483648, %v1813_v54  ;;  %v460_v18 = vmul.f32 %v694_v14, %v1813_v54  ;;  %vm463_vm15 = vcmp.eq.f32.partialorder %v1813_v54, 0.0 }
  0x80   :  { %618 = vst [vmem:[%s2064_s2 + $0x1c0] sm:$0xff] %v554_v7  ;;  %v527_v58 = vmul.f32 %v495_v41, %v2177_v10  ;;  %v559_v17 = vmul.f32 %v495_v41, %v2178_v28  ;;  %590 = vst [vmem:[%s2064_s2 + $0xe0] sm:$0xff] %v526_v29 }
  0x81   :  { %622 = vst [vmem:[%s2064_s2 + $0x1e0] sm:$0xff] %v558_v44  ;;  %v528_v30 = vmul.f32 %v496_v37, %v1685_v27  ;;  %v560_v50 = vmul.f32 %v496_v37, %v1705_v48  ;;  %v462_v43 = vsel %vm461_vm14, %v1813_v54, %v460_v18 }
  0x82   :  { %591 = vst [vmem:[%s2064_s2 + $0xe8] sm:$0xff] %v527_v58  ;;  %623 = vst [vmem:[%s2064_s2 + $0x1e8] sm:$0xff] %v559_v17  ;;  %v465_v6 = vsel %vm463_vm15, %v464_v40, %v462_v43 }
  0x83   :  { %592 = vst [vmem:[%s2064_s2 + $0xf0] sm:$0xff] %v528_v30  ;;  %624 = vst [vmem:[%s2064_s2 + $0x1f0] sm:$0xff] %v560_v50  ;;  %v497_v39 = vmin.f32 %v465_v6, 1.0 }
  0x85   :  { %v529_v27 = vmul.f32 %v497_v39, %v1766_v12  ;;  %v561_v4 = vmul.f32 %v497_v39, %v1769_v0 }
  0x87   :  { %593 = vst [vmem:[%s2064_s2 + $0xf8] sm:$0xff] %v529_v27  ;;  %625 = vst [vmem:[%s2064_s2 + $0x1f8] sm:$0xff] %v561_v4 }

// kernel: our_basic_block.4
= control target key start
LH: loop header
LB: loop body
LE: loop exit
PB: predicated region body
PF: predicated region fallthrough
CT: control target
= control target key end

     0   :  { %s4674_s12 = smov 0   ;;  %s5814_s0 = inlined_call_operand.vmem [shape: f32[2,18,18,128], index: 0, kind: input, shape index: {}]   ;;  %s5815_s1 = inlined_call_operand.vmem [shape: bf16[1152,128], index: 1, kind: input, shape index: {}]   ;;  %s5816_s2 = inlined_call_operand.vmem [shape: f32[512,128], index: 2, kind: output, shape index: {0}]   ;;  %s5817_s3 = inlined_call_operand.vmem [shape: f32[2,8,128], index: 3, kind: output, shape index: {1}]  }
   0x1 LB: > { %s4680_s13 = sadd.s32 4294967295, %s4652_s12   ;;  %p3630_p0 = scmp.ge.s32.totalorder %s4652_s12, 1  ;;  %s4652_s12 = sphi %s4674_s12, %s14_s12  }
   0x2   : > { %p140_p1 = scmp.lt.s32.totalorder %s4652_s12, 3 }
   0x4   : > { %p141_p2 = pnand %p3630_p0, %p140_p1 }
   0x6   : > { %144 = sbr.rel (%p141_p2) target bundleno = 536 (0x218), region = 28 }
   0xb   : > { %v4574_v0 = vld [vmem:[%s5815_s1 + $0x38] sm:$0xff]   ;;  %p168_p3 = scmp.lt.s32.totalorder %s4680_s13, 1  ;;  %v4575_v1 = vld [vmem:[%s5815_s1 + $0x30] sm:$0xff]   ;;  %v4576_v2 = vld [vmem:[%s5815_s1 + $0x28] sm:$0xff]  }
   0xc   : > { %4549 = vmatprep.subr.bf16.mxu1 %v4574_v0  ;;  %4117 = vmatprep.subr.bf16.mxu0 %v4574_v0  ;;  %v4577_v3 = vld [vmem:[%s5815_s1 + $0x20] sm:$0xff]   ;;  %v4578_v10 = vld [vmem:[%s5815_s1 + $0x18] sm:$0xff]   ;;  %v4579_v11 = vld [vmem:[%s5815_s1 + $0x10] sm:$0xff]  }
   0xd   : > { %s4692_s18 = scalar_select %p168_p3, %s4680_s13, 1  ;;  %4557 = vmatpush3.bf16.msra.mxu1 %v4574_v0  ;;  %4118 = vmatpush3.bf16.msra.mxu0 %v4574_v0  ;;  %v4580_v12 = vld [vmem:[%s5815_s1 + $0x8] sm:$0xff]   ;;  %v4581_v13 = vld [vmem:[%s5815_s1] sm:$0xff]   ;;  %v4582_v16 = vld [vmem:[%s5815_s1 + $0x78] sm:$0xff]  }
   0xe   : > { %4550 = vmatprep.subr.bf16.mxu1 %v4575_v1  ;;  %4119 = vmatprep.subr.bf16.mxu0 %v4575_v1  ;;  %v4584_v19 = vld [vmem:[%s5815_s1 + $0xb8] sm:$0xff]   ;;  %v4583_v26 = vld [vmem:[%s5815_s1 + $0x70] sm:$0xff]   ;;  %v4585_v32 = vld [vmem:[%s5815_s1 + $0x68] sm:$0xff]  }
   0xf   : > { %s4565_s21 = smul.u32 432, %s4692_s18  ;;  %v4586_v29 = vld [vmem:[%s5815_s1 + $0xb0] sm:$0xff]   ;;  %v4588_v35 = vld [vmem:[%s5815_s1 + $0xa8] sm:$0xff]   ;;  %v4587_v42 = vld [vmem:[%s5815_s1 + $0x60] sm:$0xff]   ;;  %s3634_s28 = sshll.u32 %s4692_s18, 3 }
  0x10   : > { %v4590_v44 = vld [vmem:[%s5815_s1 + $0xa0] sm:$0xff]   ;;  %v4589_v48 = vld [vmem:[%s5815_s1 + $0x58] sm:$0xff]   ;;  %v4591_v58 = vld [vmem:[%s5815_s1 + $0x50] sm:$0xff]   ;;  %s182_s4 = scalar_lea.vmem %s5817_s3, %s3634_s28 }
  0x11   : > { %s4701_s24 = scalar_lea.vmem %s5814_s0, %s4565_s21  ;;  %4558 = vmatpush3.bf16.msra.mxu1 %v4575_v1  ;;  %4120 = vmatpush3.bf16.msra.mxu0 %v4575_v1  ;;  %v4592_v51 = vld [vmem:[%s5815_s1 + $0x98] sm:$0xff]   ;;  %v4594_v60 = vld [vmem:[%s5815_s1 + $0x90] sm:$0xff]  }
  0x12   : > { %4551 = vmatprep.subr.bf16.mxu1 %v4576_v2  ;;  %4121 = vmatprep.subr.bf16.mxu0 %v4576_v2  ;;  %v200_v4 = vld [vmem:[%s4701_s24 + $0xc0] sm:$0xff]  ;;  %v201_v5 = vld [vmem:[%s4701_s24 + $0xc8] sm:$0xff]  ;;  %v202_v14 = vld [vmem:[%s4701_s24 + $0xd8] sm:$0xff] }
  0x13   : > { %v4708_v6 = vpack.c.bf16 %v201_v5, %v200_v4  ;;  %v184_v7 = vld [vmem:[%s4701_s24] sm:$0xff]  ;;  %v185_v8 = vld [vmem:[%s4701_s24 + $0x8] sm:$0xff]  ;;  %v186_v17 = vld [vmem:[%s4701_s24 + $0x18] sm:$0xff] }
  0x14   : > { %v216_v9 = vpack.c.bf16 %v185_v8, %v184_v7  ;;  %v203_v15 = vld [vmem:[%s4701_s24 + $0xe0] sm:$0xff]  ;;  %v204_v20 = vld [vmem:[%s4701_s24 + $0xf0] sm:$0xff]  ;;  %v205_v21 = vld [vmem:[%s4701_s24 + $0xf8] sm:$0xff] }
  0x15   : > { %4559 = vmatpush3.bf16.msra.mxu1 %v4576_v2  ;;  %4122 = vmatpush3.bf16.msra.mxu0 %v4576_v2  ;;  %v187_v18 = vld [vmem:[%s4701_s24 + $0x20] sm:$0xff]  ;;  %v4737_v22 = vpack.c.bf16 %v203_v15, %v202_v14  ;;  %v188_v24 = vld [vmem:[%s4701_s24 + $0x30] sm:$0xff]  ;;  %v189_v25 = vld [vmem:[%s4701_s24 + $0x38] sm:$0xff]  ;;  %v4746_v27 = vpack.c.bf16 %v205_v21, %v204_v20 }
  0x16   : > { %4552 = vmatprep.subr.bf16.mxu1 %v4577_v3  ;;  %4123 = vmatprep.subr.bf16.mxu0 %v4577_v3  ;;  %v4739_v23 = vpack.c.bf16 %v187_v18, %v186_v17  ;;  %v206_v28 = vld [vmem:[%s4701_s24 + $0x108] sm:$0xff]  ;;  %v4752_v30 = vpack.c.bf16 %v189_v25, %v188_v24  ;;  %v207_v31 = vld [vmem:[%s4701_s24 + $0x110] sm:$0xff]  ;;  %v208_v36 = vld [vmem:[%s4701_s24 + $0x120] sm:$0xff] }
  0x17   : > { %4149 = vmatprep.mubr.bf16.mxu1 %v4708_v6  ;;  %4133 = vmatprep.mubr.bf16.mxu0 %v216_v9  ;;  %v190_v33 = vld [vmem:[%s4701_s24 + $0x48] sm:$0xff]  ;;  %v191_v34 = vld [vmem:[%s4701_s24 + $0x50] sm:$0xff]  ;;  %v4769_v38 = vpack.c.bf16 %v207_v31, %v206_v28  ;;  %v192_v40 = vld [vmem:[%s4701_s24 + $0x60] sm:$0xff] }
  0x18   : > { %v209_v37 = vld [vmem:[%s4701_s24 + $0x128] sm:$0xff]  ;;  %v4771_v39 = vpack.c.bf16 %v191_v34, %v190_v33  ;;  %v210_v46 = vld [vmem:[%s4701_s24 + $0x138] sm:$0xff]  ;;  %v211_v47 = vld [vmem:[%s4701_s24 + $0x140] sm:$0xff] }
  0x19   : > { %4560 = vmatpush3.bf16.msra.mxu1 %v4577_v3  ;;  %4124 = vmatpush3.bf16.msra.mxu0 %v4577_v3  ;;  %v193_v41 = vld [vmem:[%s4701_s24 + $0x68] sm:$0xff]  ;;  %v4778_v43 = vpack.c.bf16 %v209_v37, %v208_v36  ;;  %v194_v49 = vld [vmem:[%s4701_s24 + $0x78] sm:$0xff]  ;;  %v195_v50 = vld [vmem:[%s4701_s24 + $0x80] sm:$0xff]  ;;  %v4801_v54 = vpack.c.bf16 %v211_v47, %v210_v46 }
  0x1a   : > { %4553 = vmatprep.subr.bf16.mxu1 %v4578_v10  ;;  %4125 = vmatprep.subr.bf16.mxu0 %v4578_v10  ;;  %v4783_v45 = vpack.c.bf16 %v193_v41, %v192_v40  ;;  %v212_v52 = vld [vmem:[%s4701_s24 + $0x150] sm:$0xff]  ;;  %v213_v53 = vld [vmem:[%s4701_s24 + $0x158] sm:$0xff]  ;;  %v4803_v55 = vpack.c.bf16 %v195_v50, %v194_v49  ;;  %v214_v62 = vld [vmem:[%s4701_s24 + $0x168] sm:$0xff] }
  0x1b   : > { %v196_v56 = vld [vmem:[%s4701_s24 + $0x90] sm:$0xff]  ;;  %v197_v57 = vld [vmem:[%s4701_s24 + $0x98] sm:$0xff]  ;;  %v4810_v59 = vpack.c.bf16 %v213_v53, %v212_v52  ;;  %v198_v0 = vld [vmem:[%s4701_s24 + $0xa8] sm:$0xff] }
  0x1c   : > { %v4815_v61 = vpack.c.bf16 %v197_v57, %v196_v56  ;;  %v215_v63 = vld [vmem:[%s4701_s24 + $0x170] sm:$0xff]  ;;  %v4593_v2 = vld [vmem:[%s5815_s1 + $0x48] sm:$0xff]   ;;  %v4598_v15 = vld [vmem:[%s5815_s1 + $0x80] sm:$0xff]  }
  0x1d   : > { %4561 = vmatpush3.bf16.msra.mxu1 %v4578_v10  ;;  %4126 = vmatpush3.bf16.msra.mxu0 %v4578_v10  ;;  %v199_v1 = vld [vmem:[%s4701_s24 + $0xb0] sm:$0xff]  ;;  %v4596_v3 = vld [vmem:[%s5815_s1 + $0x88] sm:$0xff]   ;;  %v4834_v8 = vpack.c.bf16 %v215_v63, %v214_v62  ;;  %v4597_v17 = vld [vmem:[%s5815_s1 + $0xf8] sm:$0xff]  }
  0x1e   : > { %4554 = vmatprep.subr.bf16.mxu1 %v4579_v11  ;;  %4127 = vmatprep.subr.bf16.mxu0 %v4579_v11  ;;  %v489_v4 = vld [vmem:[%s4701_s24 + $0x1] sm:$0xff]  ;;  %v490_v5 = vld [vmem:[%s4701_s24 + $0x9] sm:$0xff]  ;;  %v4836_v9 = vpack.c.bf16 %v199_v1, %v198_v0  ;;  %v493_v20 = vld [vmem:[%s4701_s24 + $0x31] sm:$0xff] }
  0x1f   : > { %v858_v7 = vld [vmem:[%s4701_s24 + $0x2] sm:$0xff]  ;;  %v859_v10 = vld [vmem:[%s4701_s24 + $0xa] sm:$0xff]  ;;  %v860_v18 = vld [vmem:[%s4701_s24 + $0x1a] sm:$0xff] }
  0x20   : > { %v492_v14 = vld [vmem:[%s4701_s24 + $0x21] sm:$0xff]  ;;  %v494_v21 = vld [vmem:[%s4701_s24 + $0x39] sm:$0xff]  ;;  %v495_v33 = vld [vmem:[%s4701_s24 + $0x49] sm:$0xff] }
  0x21   : > { %4562 = vmatpush3.bf16.msra.mxu1 %v4579_v11  ;;  %4128 = vmatpush3.bf16.msra.mxu0 %v4579_v11  ;;  %v4595_v11 = vld [vmem:[%s5815_s1 + $0x40] sm:$0xff]   ;;  %v4600_v24 = vld [vmem:[%s5815_s1 + $0x138] sm:$0xff]   ;;  %v4865_v31 = vpack.c.bf16 %v494_v21, %v493_v20  ;;  %v4602_v36 = vld [vmem:[%s5815_s1 + $0x130] sm:$0xff]  }
  0x22   : > { %4555 = vmatprep.subr.bf16.mxu1 %v4580_v12  ;;  %4129 = vmatprep.subr.bf16.mxu0 %v4580_v12  ;;  %v862_v28 = vld [vmem:[%s4701_s24 + $0x32] sm:$0xff]  ;;  %v864_v37 = vld [vmem:[%s4701_s24 + $0x4a] sm:$0xff]  ;;  %v497_v41 = vld [vmem:[%s4701_s24 + $0x61] sm:$0xff] }
  0x23   : > { %v496_v34 = vld [vmem:[%s4701_s24 + $0x51] sm:$0xff]  ;;  %v866_v46 = vld [vmem:[%s4701_s24 + $0x62] sm:$0xff]  ;;  %v499_v56 = vld [vmem:[%s4701_s24 + $0x79] sm:$0xff] }
  0x24   : > { %v865_v40 = vld [vmem:[%s4701_s24 + $0x52] sm:$0xff]  ;;  %v867_v47 = vld [vmem:[%s4701_s24 + $0x6a] sm:$0xff]  ;;  %v4893_v49 = vpack.c.bf16 %v496_v34, %v495_v33  ;;  %v4603_v53 = vld [vmem:[%s5815_s1 + $0xe0] sm:$0xff]  }
  0x25   : > { %4563 = vmatpush3.bf16.msra.mxu1 %v4580_v12  ;;  %4130 = vmatpush3.bf16.msra.mxu0 %v4580_v12  ;;  %v521_v12 = vpack.c.bf16 %v490_v5, %v489_v4  ;;  %v4895_v50 = vpack.c.bf16 %v865_v40, %v864_v37  ;;  %v4899_v52 = vpack.c.bf16 %v867_v47, %v866_v46  ;;  %v500_v57 = vld [vmem:[%s4701_s24 + $0x81] sm:$0xff]  ;;  %v501_v62 = vld [vmem:[%s4701_s24 + $0x91] sm:$0xff]  ;;  %v502_v63 = vld [vmem:[%s4701_s24 + $0x99] sm:$0xff] }
  0x26   : > { %4556 = vmatprep.subr.bf16.mxu1 %v4581_v13  ;;  %4131 = vmatprep.subr.bf16.mxu0 %v4581_v13  ;;  %v870_v0 = vld [vmem:[%s4701_s24 + $0x92] sm:$0xff]  ;;  %v4606_v1 = vld [vmem:[%s5815_s1 + $0x120] sm:$0xff]   ;;  %v4922_v4 = vpack.c.bf16 %v500_v57, %v499_v56  ;;  %v875_v21 = vld [vmem:[%s4701_s24 + $0xca] sm:$0xff] }
  0x27   : > { %v874_v20 = vld [vmem:[%s4701_s24 + $0xc2] sm:$0xff]  ;;  %v876_v40 = vld [vmem:[%s4701_s24 + $0xda] sm:$0xff] }
  0x28   : > { %v4960_v33 = vpack.c.bf16 %v875_v21, %v874_v20  ;;  %v4612_v34 = vld [vmem:[%s5815_s1 + $0x108] sm:$0xff]   ;;  %v4614_v46 = vld [vmem:[%s5815_s1 + $0x100] sm:$0xff]   ;;  %v4613_v56 = vld [vmem:[%s5815_s1 + $0x178] sm:$0xff]  }
  0x29   : > { %4564 = vmatpush3.bf16.msra.mxu1 %v4581_v13  ;;  %4132 = vmatpush3.bf16.msra.mxu0 %v4581_v13  ;;  %v491_v13 = vld [vmem:[%s4701_s24 + $0x19] sm:$0xff]  ;;  %v508_v37 = vld [vmem:[%s4701_s24 + $0xe1] sm:$0xff] }
  0x2a   : > { %4165 = vmatprep.subr.bf16.mxu1 %v4582_v16  ;;  %4213 = vmatprep.subr.bf16.mxu0 %v4584_v19  ;;  %v4859_v25 = vpack.c.bf16 %v492_v14, %v491_v13  ;;  %v504_v13 = vld [vmem:[%s4701_s24 + $0xb1] sm:$0xff]  ;;  %v510_v47 = vld [vmem:[%s4701_s24 + $0xf9] sm:$0xff]  ;;  %v516_v20 = vld [vmem:[%s4701_s24 + $0x141] sm:$0xff] }
  0x2b   : > { %v872_v14 = vld [vmem:[%s4701_s24 + $0xaa] sm:$0xff]  ;;  %v884_v21 = vld [vmem:[%s4701_s24 + $0x13a] sm:$0xff] }
  0x2c   : > { %4150 = vmatmul.mubr.bf16.vlgmr.msra.gmra.mxu1 %v4737_v22  ;;  %4134 = vmatmul.mubr.bf16.vlgmr.msra.gmra.mxu0 %v4739_v23 }
  0x2d   : > { %4166 = vmatpush3.bf16.msra.mxu1 %v4582_v16  ;;  %4214 = vmatpush3.bf16.msra.mxu0 %v4584_v19  ;;  %v890_v16 = vpack.c.bf16 %v859_v10, %v858_v7  ;;  %v861_v19 = vld [vmem:[%s4701_s24 + $0x22] sm:$0xff]  ;;  %v4926_v7 = vpack.c.bf16 %v502_v63, %v501_v62  ;;  %v4616_v63 = vld [vmem:[%s5815_s1 + $0x1b8] sm:$0xff]  }
  0x2e   : > { %4167 = vmatprep.subr.bf16.mxu1 %v4583_v26  ;;  %4153 = vmatprep.mubr.bf16.mxu1 %v4746_v27 }
  0x2f   : > { %4215 = vmatprep.subr.bf16.mxu0 %v4586_v29  ;;  %4137 = vmatprep.mubr.bf16.mxu0 %v4752_v30 }
  0x31   : > { %4168 = vmatpush3.bf16.msra.mxu1 %v4583_v26  ;;  %4216 = vmatpush3.bf16.msra.mxu0 %v4586_v29  ;;  %v4861_v26 = vpack.c.bf16 %v861_v19, %v860_v18  ;;  %v863_v29 = vld [vmem:[%s4701_s24 + $0x3a] sm:$0xff]  ;;  %v506_v18 = vld [vmem:[%s4701_s24 + $0xc9] sm:$0xff] }
  0x32   : > { %4169 = vmatprep.subr.bf16.mxu1 %v4585_v32  ;;  %4217 = vmatprep.subr.bf16.mxu0 %v4588_v35  ;;  %v4610_v19 = vld [vmem:[%s5815_s1 + $0x110] sm:$0xff]  }
  0x34   : > { %4154 = vmatmul.mubr.bf16.gmra.mxu1 %v4769_v38  ;;  %4138 = vmatmul.mubr.bf16.gmra.mxu0 %v4771_v39 }
  0x35   : > { %4170 = vmatpush3.bf16.msra.mxu1 %v4585_v32  ;;  %4218 = vmatpush3.bf16.msra.mxu0 %v4588_v35  ;;  %v4599_v32 = vld [vmem:[%s5815_s1 + $0xf0] sm:$0xff]   ;;  %v4872_v35 = vpack.c.bf16 %v863_v29, %v862_v28 }
  0x36   : > { %4171 = vmatprep.subr.bf16.mxu1 %v4587_v42  ;;  %4157 = vmatprep.mubr.bf16.mxu1 %v4778_v43 }
  0x37   : > { %4219 = vmatprep.subr.bf16.mxu0 %v4590_v44  ;;  %4141 = vmatprep.mubr.bf16.mxu0 %v4783_v45 }
  0x39   : > { %4172 = vmatpush3.bf16.msra.mxu1 %v4587_v42  ;;  %4220 = vmatpush3.bf16.msra.mxu0 %v4590_v44  ;;  %v498_v42 = vld [vmem:[%s4701_s24 + $0x69] sm:$0xff] }
  0x3a   : > { %4173 = vmatprep.subr.bf16.mxu1 %v4589_v48  ;;  %4221 = vmatprep.subr.bf16.mxu0 %v4592_v51  ;;  %v4601_v44 = vld [vmem:[%s5815_s1 + $0xe8] sm:$0xff]  }
  0x3c   : > { %4158 = vmatmul.mubr.bf16.gmra.mxu1 %v4801_v54  ;;  %4142 = vmatmul.mubr.bf16.gmra.mxu0 %v4803_v55 }
  0x3d   : > { %4174 = vmatpush3.bf16.msra.mxu1 %v4589_v48  ;;  %4222 = vmatpush3.bf16.msra.mxu0 %v4592_v51  ;;  %v4604_v48 = vld [vmem:[%s5815_s1 + $0x128] sm:$0xff]   ;;  %v4897_v51 = vpack.c.bf16 %v498_v42, %v497_v41  ;;  %v4611_v41 = vld [vmem:[%s5815_s1 + $0xc0] sm:$0xff]  }
  0x3e   : > { %4175 = vmatprep.subr.bf16.mxu1 %v4591_v58  ;;  %4161 = vmatprep.mubr.bf16.mxu1 %v4810_v59  ;;  %v877_v42 = vld [vmem:[%s4701_s24 + $0xe2] sm:$0xff] }
  0x3f   : > { %4223 = vmatprep.subr.bf16.mxu0 %v4594_v60  ;;  %4145 = vmatprep.mubr.bf16.mxu0 %v4815_v61 }
  0x41   : > { %4176 = vmatpush3.bf16.msra.mxu1 %v4591_v58  ;;  %4224 = vmatpush3.bf16.msra.mxu0 %v4594_v60  ;;  %v868_v58 = vld [vmem:[%s4701_s24 + $0x7a] sm:$0xff]  ;;  %v869_v60 = vld [vmem:[%s4701_s24 + $0x82] sm:$0xff] }
  0x42   : > { %4177 = vmatprep.subr.bf16.mxu1 %v4593_v2  ;;  %4225 = vmatprep.subr.bf16.mxu0 %v4596_v3  ;;  %v4924_v5 = vpack.c.bf16 %v869_v60, %v868_v58  ;;  %v4988_v58 = vpack.c.bf16 %v877_v42, %v876_v40  ;;  %v887_v40 = vld [vmem:[%s4701_s24 + $0x15a] sm:$0xff] }
  0x44   : > { %4162 = vmatmul.mubr.bf16.gmra.mxu1 %v4834_v8  ;;  %4146 = vmatmul.mubr.bf16.gmra.mxu0 %v4836_v9 }
  0x45   : > { %4178 = vmatpush3.bf16.msra.mxu1 %v4593_v2  ;;  %4226 = vmatpush3.bf16.msra.mxu0 %v4596_v3  ;;  %v871_v2 = vld [vmem:[%s4701_s24 + $0x9a] sm:$0xff] }
  0x46   : > { %4179 = vmatprep.subr.bf16.mxu1 %v4595_v11  ;;  %4181 = vmatprep.mubr.bf16.mxu1 %v521_v12  ;;  %v4605_v3 = vld [vmem:[%s5815_s1 + $0xd8] sm:$0xff]   ;;  %v4928_v10 = vpack.c.bf16 %v871_v2, %v870_v0  ;;  %v503_v12 = vld [vmem:[%s4701_s24 + $0xa9] sm:$0xff] }
  0x47   : > { %4227 = vmatprep.subr.bf16.mxu0 %v4598_v15  ;;  %4229 = vmatprep.mubr.bf16.mxu0 %v890_v16  ;;  %v4607_v16 = vld [vmem:[%s5815_s1 + $0xd0] sm:$0xff]   ;;  %v4954_v28 = vpack.c.bf16 %v504_v13, %v503_v12  ;;  %v882_v13 = vld [vmem:[%s4701_s24 + $0x122] sm:$0xff] }
  0x48   : > { %v511_v0 = vld [vmem:[%s4701_s24 + $0x109] sm:$0xff] }
  0x49   : > { %4180 = vmatpush3.bf16.msra.mxu1 %v4595_v11  ;;  %4228 = vmatpush3.bf16.msra.mxu0 %v4598_v15  ;;  %v4608_v11 = vld [vmem:[%s5815_s1 + $0x118] sm:$0xff]   ;;  %v880_v2 = vld [vmem:[%s4701_s24 + $0x10a] sm:$0xff] }
  0x4a   : > { %4261 = vmatprep.subr.bf16.mxu1 %v4597_v17  ;;  %4309 = vmatprep.subr.bf16.mxu0 %v4600_v24  ;;  %v873_v15 = vld [vmem:[%s4701_s24 + $0xb2] sm:$0xff]  ;;  %v514_v12 = vld [vmem:[%s4701_s24 + $0x129] sm:$0xff] }
  0x4b   : > { %v4956_v29 = vpack.c.bf16 %v873_v15, %v872_v14  ;;  %v883_v14 = vld [vmem:[%s4701_s24 + $0x12a] sm:$0xff] }
  0x4c   : > { %4182 = vmatmul.mubr.bf16.vlgmr.msra.gmra.mxu1 %v4859_v25  ;;  %4230 = vmatmul.mubr.bf16.vlgmr.msra.gmra.mxu0 %v4861_v26 }
  0x4d   : > { %4262 = vmatpush3.bf16.msra.mxu1 %v4597_v17  ;;  %4185 = vmatprep.mubr.bf16.mxu1 %v4865_v31  ;;  %v505_v17 = vld [vmem:[%s4701_s24 + $0xc1] sm:$0xff] }
  0x4e   : > { %4263 = vmatprep.subr.bf16.mxu1 %v4599_v32  ;;  %4310 = vmatpush3.bf16.msra.mxu0 %v4600_v24  ;;  %v4609_v24 = vld [vmem:[%s5815_s1 + $0xc8] sm:$0xff]  }
  0x4f   : > { %4233 = vmatprep.mubr.bf16.mxu0 %v4872_v35  ;;  %4311 = vmatprep.subr.bf16.mxu0 %v4602_v36 }
  0x51   : > { %4264 = vmatpush3.bf16.msra.mxu1 %v4599_v32  ;;  %v4958_v32 = vpack.c.bf16 %v506_v18, %v505_v17  ;;  %v5015_v18 = vpack.c.bf16 %v883_v14, %v882_v13  ;;  %v3783_v14 = vld [vmem:[%s4701_s24 + $0x60] sm:$0xff] }
  0x52   : > { %4265 = vmatprep.subr.bf16.mxu1 %v4601_v44  ;;  %4312 = vmatpush3.bf16.msra.mxu0 %v4602_v36  ;;  %v507_v36 = vld [vmem:[%s4701_s24 + $0xd9] sm:$0xff] }
  0x53   : > { %4313 = vmatprep.subr.bf16.mxu0 %v4604_v48  ;;  %v4986_v57 = vpack.c.bf16 %v508_v37, %v507_v36  ;;  %v518_v36 = vld [vmem:[%s4701_s24 + $0x159] sm:$0xff] }
  0x54   : > { %4186 = vmatmul.mubr.bf16.gmra.mxu1 %v4893_v49  ;;  %4234 = vmatmul.mubr.bf16.gmra.mxu0 %v4895_v50  ;;  %v886_v37 = vld [vmem:[%s4701_s24 + $0x152] sm:$0xff] }
  0x55   : > { %4189 = vmatprep.mubr.bf16.mxu1 %v4897_v51  ;;  %4266 = vmatpush3.bf16.msra.mxu1 %v4601_v44  ;;  %v509_v44 = vld [vmem:[%s4701_s24 + $0xf1] sm:$0xff] }
  0x56   : > { %4237 = vmatprep.mubr.bf16.mxu0 %v4899_v52  ;;  %4267 = vmatprep.subr.bf16.mxu1 %v4603_v53  ;;  %v4990_v60 = vpack.c.bf16 %v510_v47, %v509_v44  ;;  %v519_v47 = vld [vmem:[%s4701_s24 + $0x169] sm:$0xff] }
  0x57   : > { %4314 = vmatpush3.bf16.msra.mxu0 %v4604_v48  ;;  %v878_v48 = vld [vmem:[%s4701_s24 + $0xf2] sm:$0xff] }
  0x58   : > { %4315 = vmatprep.subr.bf16.mxu0 %v4606_v1 }
  0x59   : > { %4268 = vmatpush3.bf16.msra.mxu1 %v4603_v53  ;;  %v879_v53 = vld [vmem:[%s4701_s24 + $0xfa] sm:$0xff] }
  0x5a   : > { %4269 = vmatprep.subr.bf16.mxu1 %v4605_v3  ;;  %v4992_v62 = vpack.c.bf16 %v879_v53, %v878_v48  ;;  %v520_v48 = vld [vmem:[%s4701_s24 + $0x171] sm:$0xff] }
  0x5b   : > { %4316 = vmatpush3.bf16.msra.mxu0 %v4606_v1  ;;  %v512_v1 = vld [vmem:[%s4701_s24 + $0x111] sm:$0xff] }
  0x5c   : > { %4190 = vmatmul.mubr.bf16.gmra.mxu1 %v4922_v4  ;;  %4238 = vmatmul.mubr.bf16.gmra.mxu0 %v4924_v5  ;;  %v5009_v15 = vpack.c.bf16 %v512_v1, %v511_v0  ;;  %v888_v53 = vld [vmem:[%s4701_s24 + $0x16a] sm:$0xff]  ;;  %v889_v0 = vld [vmem:[%s4701_s24 + $0x172] sm:$0xff]  ;;  %v5045_v1 = vpack.c.bf16 %v520_v48, %v519_v47  ;;  %v4643_v48 = vld [vmem:[%s5815_s1 + $0x1c0] sm:$0xff]  }
  0x5d   : > { %4193 = vmatprep.mubr.bf16.mxu1 %v4926_v7  ;;  %4241 = vmatprep.mubr.bf16.mxu0 %v4928_v10  ;;  %v4644_v47 = vld [vmem:[%s5815_s1 + $0x208] sm:$0xff]  }
  0x5e   : > { %4270 = vmatpush3.bf16.msra.mxu1 %v4605_v3  ;;  %4317 = vmatprep.subr.bf16.mxu0 %v4608_v11  ;;  %v881_v3 = vld [vmem:[%s4701_s24 + $0x112] sm:$0xff] }
  0x5f   : > { %4271 = vmatprep.subr.bf16.mxu1 %v4607_v16  ;;  %4318 = vmatpush3.bf16.msra.mxu0 %v4608_v11  ;;  %v513_v11 = vld [vmem:[%s4701_s24 + $0x121] sm:$0xff] }
  0x60   : > { %4319 = vmatprep.subr.bf16.mxu0 %v4610_v19  ;;  %v5013_v17 = vpack.c.bf16 %v514_v12, %v513_v11  ;;  %v4618_v11 = vld [vmem:[%s5815_s1 + $0x1b0] sm:$0xff]  }
  0x61   : > { %v3782_v12 = vld [vmem:[%s4701_s24 + $0x50] sm:$0xff] }
  0x62   : > { %4272 = vmatpush3.bf16.msra.mxu1 %v4607_v16  ;;  %v5011_v16 = vpack.c.bf16 %v881_v3, %v880_v2  ;;  %v5047_v2 = vpack.c.bf16 %v889_v0, %v888_v53  ;;  %v4615_v3 = vld [vmem:[%s5815_s1 + $0x170] sm:$0xff]   ;;  %v4645_v53 = vld [vmem:[%s5815_s1 + $0x200] sm:$0xff]   ;;  %v3797_v0 = vld [vmem:[%s4701_s24 + $0x108] sm:$0xff] }
  0x63   : > { %4273 = vmatprep.subr.bf16.mxu1 %v4609_v24  ;;  %4320 = vmatpush3.bf16.msra.mxu0 %v4610_v19  ;;  %v515_v19 = vld [vmem:[%s4701_s24 + $0x139] sm:$0xff] }
  0x64   : > { %4194 = vmatmul.mubr.bf16.gmra.mxu1 %v4954_v28  ;;  %4242 = vmatmul.mubr.bf16.gmra.mxu0 %v4956_v29 }
  0x65   : > { %4197 = vmatprep.mubr.bf16.mxu1 %v4958_v32  ;;  %4245 = vmatprep.mubr.bf16.mxu0 %v4960_v33 }
  0x66   : > { %4274 = vmatpush3.bf16.msra.mxu1 %v4609_v24  ;;  %4321 = vmatprep.subr.bf16.mxu0 %v4612_v34  ;;  %v885_v24 = vld [vmem:[%s4701_s24 + $0x142] sm:$0xff] }
  0x67   : > { %4275 = vmatprep.subr.bf16.mxu1 %v4611_v41  ;;  %4322 = vmatpush3.bf16.msra.mxu0 %v4612_v34  ;;  %v517_v34 = vld [vmem:[%s4701_s24 + $0x151] sm:$0xff]  ;;  %v5031_v42 = vpack.c.bf16 %v885_v24, %v884_v21  ;;  %v4636_v21 = vld [vmem:[%s5815_s1 + $0x228] sm:$0xff]   ;;  %v3791_v24 = vld [vmem:[%s4701_s24 + $0xc0] sm:$0xff] }
  0x68   : > { %4323 = vmatprep.subr.bf16.mxu0 %v4614_v46  ;;  %v5033_v44 = vpack.c.bf16 %v518_v36, %v517_v34  ;;  %v3792_v34 = vld [vmem:[%s4701_s24 + $0xc8] sm:$0xff]  ;;  %v4642_v36 = vld [vmem:[%s5815_s1 + $0x210] sm:$0xff]  }
  0x6a   : > { %4276 = vmatpush3.bf16.msra.mxu1 %v4611_v41  ;;  %v5029_v41 = vpack.c.bf16 %v516_v20, %v515_v19  ;;  %v4634_v20 = vld [vmem:[%s5815_s1 + $0x230] sm:$0xff]  }
  0x6b   : > { %4357 = vmatprep.subr.bf16.mxu1 %v4613_v56  ;;  %4324 = vmatpush3.bf16.msra.mxu0 %v4614_v46  ;;  %v5035_v46 = vpack.c.bf16 %v887_v40, %v886_v37  ;;  %v3793_v37 = vld [vmem:[%s4701_s24 + $0xd8] sm:$0xff]  ;;  %v3794_v40 = vld [vmem:[%s4701_s24 + $0xe0] sm:$0xff] }
  0x6c   : > { %4198 = vmatmul.mubr.bf16.gmra.mxu1 %v4986_v57  ;;  %4246 = vmatmul.mubr.bf16.gmra.mxu0 %v4988_v58 }
  0x6d   : > { %4201 = vmatprep.mubr.bf16.mxu1 %v4990_v60  ;;  %4249 = vmatprep.mubr.bf16.mxu0 %v4992_v62 }
  0x6e   : > { %4405 = vmatprep.subr.bf16.mxu0 %v4616_v63 }
  0x74   : > { %4202 = vmatmul.mubr.bf16.gmra.mxu1 %v5009_v15  ;;  %4250 = vmatmul.mubr.bf16.gmra.mxu0 %v5011_v16 }
  0x75   : > { %4205 = vmatprep.mubr.bf16.mxu1 %v5013_v17  ;;  %4253 = vmatprep.mubr.bf16.mxu0 %v5015_v18 }
  0x7c   : > { %4206 = vmatmul.mubr.bf16.gmra.mxu1 %v5029_v41  ;;  %4254 = vmatmul.mubr.bf16.gmra.mxu0 %v5031_v42 }
  0x7d   : > { %4209 = vmatprep.mubr.bf16.mxu1 %v5033_v44  ;;  %4257 = vmatprep.mubr.bf16.mxu0 %v5035_v46 }
  0x84   : > { %4210 = vmatmul.mubr.bf16.gmra.mxu1 %v5045_v1  ;;  %4258 = vmatmul.mubr.bf16.gmra.mxu0 %v5047_v2 }
  0x85   : > { %4277 = vmatprep.mubr.bf16.mxu1 %v4739_v23  ;;  %4325 = vmatprep.mubr.bf16.mxu0 %v4859_v25  ;;  %v4617_v23 = vld [vmem:[%s5815_s1 + $0x168] sm:$0xff]  }
  0x86   : > { %v4620_v25 = vld [vmem:[%s5815_s1 + $0x1a8] sm:$0xff]  }
  0x8c   : > { %4278 = vmatmul.mubr.bf16.vlgmr.msra.gmra.mxu1 %v4752_v30  ;;  %4326 = vmatmul.mubr.bf16.vlgmr.msra.gmra.mxu0 %v4865_v31  ;;  %v4619_v30 = vld [vmem:[%s5815_s1 + $0x160] sm:$0xff]   ;;  %v4621_v31 = vld [vmem:[%s5815_s1 + $0x158] sm:$0xff]  }
  0x8d   : > { %4358 = vmatpush3.bf16.msra.mxu1 %v4613_v56  ;;  %4281 = vmatprep.mubr.bf16.mxu1 %v4771_v39  ;;  %v4622_v39 = vld [vmem:[%s5815_s1 + $0x1a0] sm:$0xff]  }
  0x8e   : > { %4359 = vmatprep.subr.bf16.mxu1 %v4615_v3  ;;  %4406 = vmatpush3.bf16.msra.mxu0 %v4616_v63  ;;  %v4630_v56 = vld [vmem:[%s5815_s1 + $0x180] sm:$0xff]   ;;  %v4629_v63 = vld [vmem:[%s5815_s1 + $0x1f8] sm:$0xff]  }
  0x8f   : > { %4329 = vmatprep.mubr.bf16.mxu0 %v4893_v49  ;;  %4407 = vmatprep.subr.bf16.mxu0 %v4618_v11  ;;  %v4623_v49 = vld [vmem:[%s5815_s1 + $0x150] sm:$0xff]  }
  0x91   : > { %4360 = vmatpush3.bf16.msra.mxu1 %v4615_v3  ;;  %v3799_v3 = vld [vmem:[%s4701_s24 + $0x120] sm:$0xff] }
  0x92   : > { %4361 = vmatprep.subr.bf16.mxu1 %v4617_v23  ;;  %4408 = vmatpush3.bf16.msra.mxu0 %v4618_v11  ;;  %v3800_v11 = vld [vmem:[%s4701_s24 + $0x128] sm:$0xff] }
  0x93   : > { %4409 = vmatprep.subr.bf16.mxu0 %v4620_v25 }
  0x94   : > { %4282 = vmatmul.mubr.bf16.gmra.mxu1 %v4783_v45  ;;  %4330 = vmatmul.mubr.bf16.gmra.mxu0 %v4897_v51  ;;  %v4624_v45 = vld [vmem:[%s5815_s1 + $0x198] sm:$0xff]   ;;  %v4626_v51 = vld [vmem:[%s5815_s1 + $0x190] sm:$0xff]  }
  0x95   : > { %4285 = vmatprep.mubr.bf16.mxu1 %v4803_v55  ;;  %4362 = vmatpush3.bf16.msra.mxu1 %v4617_v23  ;;  %v2378_v23 = vpack.c.bf16 %v3800_v11, %v3799_v3 }
  0x96   : > { %4333 = vmatprep.mubr.bf16.mxu0 %v4922_v4  ;;  %4363 = vmatprep.subr.bf16.mxu1 %v4619_v30  ;;  %v4625_v4 = vld [vmem:[%s5815_s1 + $0x148] sm:$0xff]  }
  0x97   : > { %4410 = vmatpush3.bf16.msra.mxu0 %v4620_v25 }
  0x98   : > { %4411 = vmatprep.subr.bf16.mxu0 %v4622_v39 }
  0x99   : > { %4364 = vmatpush3.bf16.msra.mxu1 %v4619_v30  ;;  %v3801_v30 = vld [vmem:[%s4701_s24 + $0x138] sm:$0xff] }
  0x9a   : > { %4365 = vmatprep.subr.bf16.mxu1 %v4621_v31 }
  0x9b   : > { %4412 = vmatpush3.bf16.msra.mxu0 %v4622_v39  ;;  %v3802_v39 = vld [vmem:[%s4701_s24 + $0x140] sm:$0xff] }
  0x9c   : > { %4286 = vmatmul.mubr.bf16.gmra.mxu1 %v4815_v61  ;;  %4334 = vmatmul.mubr.bf16.gmra.mxu0 %v4926_v7  ;;  %v4628_v7 = vld [vmem:[%s5815_s1 + $0x188] sm:$0xff]  }
  0x9d   : > { %4289 = vmatprep.mubr.bf16.mxu1 %v4836_v9  ;;  %4337 = vmatprep.mubr.bf16.mxu0 %v4954_v28  ;;  %v4627_v28 = vld [vmem:[%s5815_s1 + $0x140] sm:$0xff]  }
  0x9e   : > { %4366 = vmatpush3.bf16.msra.mxu1 %v4621_v31  ;;  %4413 = vmatprep.subr.bf16.mxu0 %v4624_v45 }
  0x9f   : > { %4367 = vmatprep.subr.bf16.mxu1 %v4623_v49  ;;  %4414 = vmatpush3.bf16.msra.mxu0 %v4624_v45 }
  0xa0   : > { %4415 = vmatprep.subr.bf16.mxu0 %v4626_v51 }
  0xa2   : > { %4368 = vmatpush3.bf16.msra.mxu1 %v4623_v49  ;;  %v3803_v49 = vld [vmem:[%s4701_s24 + $0x150] sm:$0xff] }
  0xa3   : > { %4369 = vmatprep.subr.bf16.mxu1 %v4625_v4  ;;  %4416 = vmatpush3.bf16.msra.mxu0 %v4626_v51  ;;  %v3804_v51 = vld [vmem:[%s4701_s24 + $0x158] sm:$0xff] }
  0xa4   : > { %4290 = vmatmul.mubr.bf16.gmra.mxu1 %v4708_v6  ;;  %4338 = vmatmul.mubr.bf16.gmra.mxu0 %v4958_v32  ;;  %v4632_v6 = vld [vmem:[%s5815_s1 + $0x238] sm:$0xff]   ;;  %v3779_v32 = vld [vmem:[%s4701_s24 + $0x30] sm:$0xff] }
  0xa5   : > { %4293 = vmatprep.mubr.bf16.mxu1 %v4737_v22  ;;  %4341 = vmatprep.mubr.bf16.mxu0 %v4986_v57  ;;  %v3689_v22 = vld [vmem:[%s4701_s24 + $0x180] sm:$0xff] }
  0xa6   : > { %4370 = vmatpush3.bf16.msra.mxu1 %v4625_v4  ;;  %4417 = vmatprep.subr.bf16.mxu0 %v4628_v7 }
  0xa7   : > { %4371 = vmatprep.subr.bf16.mxu1 %v4627_v28  ;;  %4418 = vmatpush3.bf16.msra.mxu0 %v4628_v7 }
  0xa8   : > { %4419 = vmatprep.subr.bf16.mxu0 %v4630_v56 }
  0xaa   : > { %4372 = vmatpush3.bf16.msra.mxu1 %v4627_v28  ;;  %v2380_v28 = vpack.c.bf16 %v3804_v51, %v3803_v49  ;;  %v3825_v51 = vld [vmem:[%s4701_s24 + $0x79] sm:$0xff] }
  0xab   : > { %4453 = vmatprep.subr.bf16.mxu1 %v4629_v63  ;;  %4420 = vmatpush3.bf16.msra.mxu0 %v4630_v56 }
  0xac   : > { %4294 = vmatmul.mubr.bf16.gmra.mxu1 %v4746_v27  ;;  %4342 = vmatmul.mubr.bf16.gmra.mxu0 %v4990_v60  ;;  %v3690_v27 = vld [vmem:[%s4701_s24 + $0x188] sm:$0xff] }
  0xad   : > { %4297 = vmatprep.mubr.bf16.mxu1 %v4769_v38  ;;  %4345 = vmatprep.mubr.bf16.mxu0 %v5009_v15  ;;  %v3729_v38 = vld [vmem:[%s4701_s24 + $0x181] sm:$0xff]  ;;  %v5135_v57 = vpack.c.bf16 %v3690_v27, %v3689_v22  ;;  %v3806_v27 = vld [vmem:[%s4701_s24 + $0x170] sm:$0xff] }
  0xae   : > { %4501 = vmatprep.subr.bf16.mxu0 %v4632_v6  ;;  %v3784_v15 = vld [vmem:[%s4701_s24 + $0x68] sm:$0xff] }
  0xaf   : > { %v2370_v19 = vpack.c.bf16 %v3784_v15, %v3783_v14  ;;  %v3805_v22 = vld [vmem:[%s4701_s24 + $0x168] sm:$0xff]  ;;  %v3809_v14 = vld [vmem:[%s4701_s24 + $0x198] sm:$0xff]  ;;  %v3810_v15 = vld [vmem:[%s4701_s24 + $0x1a0] sm:$0xff] }
  0xb4   : > { %4298 = vmatmul.mubr.bf16.gmra.mxu1 %v4778_v43  ;;  %4346 = vmatmul.mubr.bf16.gmra.mxu0 %v5013_v17  ;;  %v3730_v43 = vld [vmem:[%s4701_s24 + $0x189] sm:$0xff] }
  0xb5   : > { %4301 = vmatprep.mubr.bf16.mxu1 %v4801_v54  ;;  %4349 = vmatprep.mubr.bf16.mxu0 %v5029_v41  ;;  %v3780_v54 = vld [vmem:[%s4701_s24 + $0x38] sm:$0xff]  ;;  %v1644_v60 = vpack.c.bf16 %v3730_v43, %v3729_v38  ;;  %v4631_v17 = vld [vmem:[%s5815_s1 + $0x1f0] sm:$0xff]  }
  0xb6   : > { %v3795_v41 = vld [vmem:[%s4701_s24 + $0xf0] sm:$0xff] }
  0xbc   : > { %4302 = vmatmul.mubr.bf16.gmra.mxu1 %v4810_v59  ;;  %4350 = vmatmul.mubr.bf16.gmra.mxu0 %v5033_v44  ;;  %v2368_v59 = vpack.c.bf16 %v3780_v54, %v3779_v32  ;;  %v3796_v44 = vld [vmem:[%s4701_s24 + $0xf8] sm:$0xff]  ;;  %v2381_v54 = vpack.c.bf16 %v3806_v27, %v3805_v22  ;;  %v3866_v27 = vld [vmem:[%s4701_s24 + $0x82] sm:$0xff] }
  0xbd   : > { %4305 = vmatprep.mubr.bf16.mxu1 %v4834_v8  ;;  %4353 = vmatprep.mubr.bf16.mxu0 %v5045_v1  ;;  %v3781_v8 = vld [vmem:[%s4701_s24 + $0x48] sm:$0xff]  ;;  %v3798_v1 = vld [vmem:[%s4701_s24 + $0x110] sm:$0xff]  ;;  %v3865_v22 = vld [vmem:[%s4701_s24 + $0x7a] sm:$0xff] }
  0xbe   : > { %v2369_v13 = vpack.c.bf16 %v3782_v12, %v3781_v8  ;;  %v3769_v12 = vld [vmem:[%s4701_s24 + $0x182] sm:$0xff] }
  0xc4   : > { %4306 = vmatmul.mubr.bf16.gmra.mxu1 %v5135_v57  ;;  %4354 = vmatmul.mubr.bf16.gmra.mxu0 %v1644_v60 }
  0xc5   : > { %4373 = vmatprep.mubr.bf16.mxu1 %v4861_v26  ;;  %4421 = vmatprep.mubr.bf16.mxu0 %v2368_v59  ;;  %v4633_v26 = vld [vmem:[%s5815_s1 + $0x1e8] sm:$0xff]  }
  0xcc   : > { %4374 = vmatmul.mubr.bf16.vlgmr.msra.gmra.mxu1 %v4872_v35  ;;  %4422 = vmatmul.mubr.bf16.vlgmr.msra.gmra.mxu0 %v2369_v13  ;;  %v4635_v35 = vld [vmem:[%s5815_s1 + $0x1e0] sm:$0xff]   ;;  %v3770_v13 = vld [vmem:[%s4701_s24 + $0x18a] sm:$0xff] }
  0xcd   : > { %4454 = vmatpush3.bf16.msra.mxu1 %v4629_v63  ;;  %4377 = vmatprep.mubr.bf16.mxu1 %v4895_v50  ;;  %v4638_v50 = vld [vmem:[%s5815_s1 + $0x220] sm:$0xff]  }
  0xce   : > { %4455 = vmatprep.subr.bf16.mxu1 %v4631_v17  ;;  %4502 = vmatpush3.bf16.msra.mxu0 %v4632_v6 }
  0xcf   : > { %4425 = vmatprep.mubr.bf16.mxu0 %v2370_v19  ;;  %4503 = vmatprep.subr.bf16.mxu0 %v4634_v20 }
  0xd1   : > { %4456 = vmatpush3.bf16.msra.mxu1 %v4631_v17  ;;  %v3819_v17 = vld [vmem:[%s4701_s24 + $0x31] sm:$0xff] }
  0xd2   : > { %4457 = vmatprep.subr.bf16.mxu1 %v4633_v26  ;;  %4504 = vmatpush3.bf16.msra.mxu0 %v4634_v20 }
  0xd3   : > { %4505 = vmatprep.subr.bf16.mxu0 %v4636_v21 }
  0xd4   : > { %4378 = vmatmul.mubr.bf16.gmra.mxu1 %v4899_v52  ;;  %4426 = vmatmul.mubr.bf16.gmra.mxu0 %v4803_v55  ;;  %v4637_v52 = vld [vmem:[%s5815_s1 + $0x1d8] sm:$0xff]   ;;  %v2374_v55 = vpack.c.bf16 %v3792_v34, %v3791_v24 }
  0xd5   : > { %4381 = vmatprep.mubr.bf16.mxu1 %v4924_v5  ;;  %4458 = vmatpush3.bf16.msra.mxu1 %v4633_v26  ;;  %v4639_v5 = vld [vmem:[%s5815_s1 + $0x1d0] sm:$0xff]   ;;  %v3820_v26 = vld [vmem:[%s4701_s24 + $0x39] sm:$0xff] }
  0xd6   : > { %4429 = vmatprep.mubr.bf16.mxu0 %v4815_v61  ;;  %4459 = vmatprep.subr.bf16.mxu1 %v4635_v35  ;;  %v4640_v61 = vld [vmem:[%s5815_s1 + $0x218] sm:$0xff]   ;;  %v2737_v24 = vpack.c.bf16 %v3820_v26, %v3819_v17 }
  0xd7   : > { %4506 = vmatpush3.bf16.msra.mxu0 %v4636_v21  ;;  %v3860_v21 = vld [vmem:[%s4701_s24 + $0x3a] sm:$0xff] }
  0xd8   : > { %4507 = vmatprep.subr.bf16.mxu0 %v4638_v50  ;;  %v3868_v17 = vld [vmem:[%s4701_s24 + $0x9a] sm:$0xff] }
  0xd9   : > { %4460 = vmatpush3.bf16.msra.mxu1 %v4635_v35 }
  0xda   : > { %4461 = vmatprep.subr.bf16.mxu1 %v4637_v52 }
  0xdb   : > { %4508 = vmatpush3.bf16.msra.mxu0 %v4638_v50  ;;  %v5269_v50 = vpack.c.bf16 %v3770_v13, %v3769_v12 }
  0xdc   : > { %4382 = vmatmul.mubr.bf16.gmra.mxu1 %v4928_v10  ;;  %4430 = vmatmul.mubr.bf16.gmra.mxu0 %v4836_v9  ;;  %v4641_v9 = vld [vmem:[%s5815_s1 + $0x1c8] sm:$0xff]   ;;  %v2375_v10 = vpack.c.bf16 %v3794_v40, %v3793_v37  ;;  %v3822_v37 = vld [vmem:[%s4701_s24 + $0x51] sm:$0xff] }
  0xdd   : > { %4385 = vmatprep.mubr.bf16.mxu1 %v4956_v29  ;;  %4433 = vmatprep.mubr.bf16.mxu0 %v2374_v55  ;;  %v2376_v29 = vpack.c.bf16 %v3796_v44, %v3795_v41  ;;  %v3861_v40 = vld [vmem:[%s4701_s24 + $0x4a] sm:$0xff]  ;;  %v3862_v41 = vld [vmem:[%s4701_s24 + $0x52] sm:$0xff]  ;;  %v3823_v44 = vld [vmem:[%s4701_s24 + $0x61] sm:$0xff] }
  0xde   : > { %4462 = vmatpush3.bf16.msra.mxu1 %v4637_v52  ;;  %4509 = vmatprep.subr.bf16.mxu0 %v4640_v61  ;;  %v3107_v3 = vpack.c.bf16 %v3862_v41, %v3861_v40 }
  0xdf   : > { %4463 = vmatprep.subr.bf16.mxu1 %v4639_v5  ;;  %4510 = vmatpush3.bf16.msra.mxu0 %v4640_v61 }
  0xe0   : > { %4511 = vmatprep.subr.bf16.mxu0 %v4642_v36 }
  0xe2   : > { %4464 = vmatpush3.bf16.msra.mxu1 %v4639_v5 }
  0xe3   : > { %4465 = vmatprep.subr.bf16.mxu1 %v4641_v9  ;;  %4512 = vmatpush3.bf16.msra.mxu0 %v4642_v36  ;;  %v3821_v36 = vld [vmem:[%s4701_s24 + $0x49] sm:$0xff] }
  0xe4   : > { %4386 = vmatmul.mubr.bf16.gmra.mxu1 %v4960_v33  ;;  %4434 = vmatmul.mubr.bf16.gmra.mxu0 %v2375_v10  ;;  %v2377_v33 = vpack.c.bf16 %v3798_v1, %v3797_v0  ;;  %v2738_v0 = vpack.c.bf16 %v3822_v37, %v3821_v36 }
  0xe5   : > { %4389 = vmatprep.mubr.bf16.mxu1 %v4988_v58  ;;  %4437 = vmatprep.mubr.bf16.mxu0 %v2376_v29  ;;  %v3824_v29 = vld [vmem:[%s4701_s24 + $0x69] sm:$0xff] }
  0xe6   : > { %4466 = vmatpush3.bf16.msra.mxu1 %v4641_v9  ;;  %4513 = vmatprep.subr.bf16.mxu0 %v4644_v47  ;;  %v2739_v11 = vpack.c.bf16 %v3824_v29, %v3823_v44 }
  0xe7   : > { %4467 = vmatprep.subr.bf16.mxu1 %v4643_v48  ;;  %4514 = vmatpush3.bf16.msra.mxu0 %v4644_v47  ;;  %v3863_v47 = vld [vmem:[%s4701_s24 + $0x62] sm:$0xff] }
  0xe8   : > { %4515 = vmatprep.subr.bf16.mxu0 %v4645_v53 }
  0xea   : > { %4468 = vmatpush3.bf16.msra.mxu1 %v4643_v48  ;;  %v3864_v48 = vld [vmem:[%s4701_s24 + $0x6a] sm:$0xff] }
  0xeb   : > { %4516 = vmatpush3.bf16.msra.mxu0 %v4645_v53 }
  0xec   : > { %v5206_v25 = vpop.f32.mrf.mxu1  ;;  %4390 = vmatmul.mubr.bf16.gmra.mxu1 %v4992_v62  ;;  %v5209_v58 = vpop.f32.mrf.mxu0  ;;  %4438 = vmatmul.mubr.bf16.gmra.mxu0 %v2377_v33  ;;  %v2379_v62 = vpack.c.bf16 %v3802_v39, %v3801_v30  ;;  %v3108_v33 = vpack.c.bf16 %v3864_v48, %v3863_v47 }
  0xed   : > { %4393 = vmatprep.mubr.bf16.mxu1 %v5011_v16  ;;  %4441 = vmatprep.mubr.bf16.mxu0 %v2378_v23 }
  0xee   : > { %v5214_v31 = vpop.f32.mrf.mxu1  ;;  %v5216_v45 = vpop.f32.mrf.mxu0 }
  0xf0   : > { %v5220_v4 = vpop.f32.mrf.mxu1  ;;  %v5222_v7 = vpop.f32.mrf.mxu0 }
  0xf2   : > { %v5224_v56 = vpop.f32.mrf.mxu1  ;;  %v5226_v16 = vpop.f32.mrf.mxu0 }
  0xf4   : > { %v5228_v63 = vpop.f32.mrf.mxu1  ;;  %4394 = vmatmul.mubr.bf16.gmra.mxu1 %v5015_v18  ;;  %v5231_v6 = vpop.f32.mrf.mxu0  ;;  %4442 = vmatmul.mubr.bf16.gmra.mxu0 %v2379_v62  ;;  %v3826_v62 = vld [vmem:[%s4701_s24 + $0x81] sm:$0xff] }
  0xf5   : > { %4397 = vmatprep.mubr.bf16.mxu1 %v5031_v42  ;;  %4445 = vmatprep.mubr.bf16.mxu0 %v2380_v28 }
  0xf6   : > { %v5236_v38 = vpop.f32.mrf.mxu1  ;;  %v5238_v43 = vpop.f32.mrf.mxu0 }
  0xf8   : > { %v5240_v32 = vpop.f32.mrf.mxu1  ;;  %v5242_v18 = vpop.f32.mrf.mxu0 }
  0xfa   : > { %v5244_v60 = vpop.f32.mrf.mxu1  ;;  %v5246_v42 = vpop.f32.mrf.mxu0 }
  0xfc   : > { %v5248_v59 = vpop.f32.mrf.mxu1  ;;  %4398 = vmatmul.mubr.bf16.gmra.mxu1 %v5035_v46  ;;  %v5251_v8 = vpop.f32.mrf.mxu0  ;;  %4446 = vmatmul.mubr.bf16.gmra.mxu0 %v2381_v54  ;;  %v3859_v46 = vld [vmem:[%s4701_s24 + $0x32] sm:$0xff] }
  0xfd   : > { %4401 = vmatprep.mubr.bf16.mxu1 %v5047_v2  ;;  %4449 = vmatprep.mubr.bf16.mxu0 %v5135_v57  ;;  %v2383_v57 = vpack.c.bf16 %v3810_v15, %v3809_v14  ;;  %v3106_v34 = vpack.c.bf16 %v3860_v21, %v3859_v46  ;;  %v3827_v54 = vld [vmem:[%s4701_s24 + $0x91] sm:$0xff]  ;;  %v3828_v14 = vld [vmem:[%s4701_s24 + $0x99] sm:$0xff] }
  0xfe   : > { %v5260_v19 = vpop.f32.mrf.mxu1  ;;  %v5262_v20 = vpop.f32.mrf.mxu0  ;;  %v3867_v15 = vld [vmem:[%s4701_s24 + $0x92] sm:$0xff]  ;;  %v2741_v37 = vpack.c.bf16 %v3828_v14, %v3827_v54 }
  0xff   : > { %v3110_v40 = vpack.c.bf16 %v3868_v17, %v3867_v15 }
 0x100   : > { %v5267_v35 = vpop.f32.mrf.mxu1  ;;  %v5271_v2 = vpop.f32.mrf.mxu0 }
 0x102   : > { %v5273_v52 = vpop.f32.mrf.mxu1  ;;  %v5275_v55 = vpop.f32.mrf.mxu0 }
 0x104   : > { %v5277_v61 = vpop.f32.mrf.mxu1  ;;  %4402 = vmatmul.mubr.bf16.gmra.mxu1 %v5269_v50  ;;  %v5280_v5 = vpop.f32.mrf.mxu0  ;;  %4450 = vmatmul.mubr.bf16.gmra.mxu0 %v2383_v57  ;;  %v2740_v57 = vpack.c.bf16 %v3826_v62, %v3825_v51  ;;  %v3832_v62 = vld [vmem:[%s4701_s24 + $0xc9] sm:$0xff] }
 0x105   : > { %4469 = vmatprep.mubr.bf16.mxu1 %v2737_v24  ;;  %4517 = vmatprep.mubr.bf16.mxu0 %v3106_v34 }
 0x106   : > { %v5287_v9 = vpop.f32.mrf.mxu1  ;;  %v5289_v10 = vpop.f32.mrf.mxu0 }
 0x108   : > { %v5294_v53 = vpop.f32.mrf.mxu1  ;;  %v5296_v1 = vpop.f32.mrf.mxu0 }
 0x10a   : > { %v5298_v23 = vpop.f32.mrf.mxu1  ;;  %v5300_v30 = vpop.f32.mrf.mxu0 }
 0x10c   : > { %v4183_v39 = vpop.f32.mrf.mxu1  ;;  %4470 = vmatmul.mubr.bf16.vlgmr.msra.gmra.mxu1 %v2738_v0  ;;  %v4231_v49 = vpop.f32.mrf.mxu0  ;;  %4518 = vmatmul.mubr.bf16.vlgmr.msra.gmra.mxu0 %v3107_v3  ;;  %v3830_v0 = vld [vmem:[%s4701_s24 + $0xb1] sm:$0xff] }
 0x10d   : > { %v796_v28 = vadd.f32 %v4183_v39, %v5209_v58  ;;  %4473 = vmatprep.mubr.bf16.mxu1 %v2739_v11  ;;  %4521 = vmatprep.mubr.bf16.mxu0 %v3108_v33  ;;  %v3109_v58 = vpack.c.bf16 %v3866_v27, %v3865_v22  ;;  %v3869_v33 = vld [vmem:[%s4701_s24 + $0xaa] sm:$0xff]  ;;  %v3870_v39 = vld [vmem:[%s4701_s24 + $0xb2] sm:$0xff] }
 0x10e   : > { %v635_v12 = vpop.f32.mrf.mxu1  ;;  %v1004_v13 = vpop.f32.mrf.mxu0  ;;  %v3872_v22 = vld [vmem:[%s4701_s24 + $0xca] sm:$0xff]  ;;  %v3111_v14 = vpack.c.bf16 %v3870_v39, %v3869_v33  ;;  %v3876_v33 = vld [vmem:[%s4701_s24 + $0xfa] sm:$0xff] }
 0x10f   : > { %v794_v26 = vadd.f32 %v635_v12, %v5216_v45  ;;  %v5312_v46 = vadd.f32 %v4231_v49, %v796_v28  ;;  %v3871_v28 = vld [vmem:[%s4701_s24 + $0xc2] sm:$0xff] }
 0x110   : > { %v4184_v21 = vpop.f32.mrf.mxu1  ;;  %v4232_v24 = vpop.f32.mrf.mxu0 }
 0x111   : > { %v797_v34 = vadd.f32 %v4184_v21, %v5222_v7  ;;  %v5315_v36 = vadd.f32 %v1004_v13, %v794_v26  ;;  %v3829_v7 = vld [vmem:[%s4701_s24 + $0xa9] sm:$0xff]  ;;  %v3112_v21 = vpack.c.bf16 %v3872_v22, %v3871_v28 }
 0x112   : > { %v638_v41 = vpop.f32.mrf.mxu1  ;;  %v1007_v44 = vpop.f32.mrf.mxu0  ;;  %v2742_v13 = vpack.c.bf16 %v3830_v0, %v3829_v7  ;;  %v3836_v0 = vld [vmem:[%s4701_s24 + $0xf9] sm:$0xff] }
 0x113   : > { %v795_v45 = vadd.f32 %v638_v41, %v5226_v16  ;;  %v5318_v29 = vadd.f32 %v4232_v24, %v797_v34  ;;  %v3831_v16 = vld [vmem:[%s4701_s24 + $0xc1] sm:$0xff] }
 0x114   : > { %v4187_v47 = vpop.f32.mrf.mxu1  ;;  %4474 = vmatmul.mubr.bf16.gmra.mxu1 %v2740_v57  ;;  %v4235_v48 = vpop.f32.mrf.mxu0  ;;  %4522 = vmatmul.mubr.bf16.gmra.mxu0 %v3109_v58  ;;  %v2743_v26 = vpack.c.bf16 %v3832_v62, %v3831_v16 }
 0x115   : > { %v800_v3 = vadd.f32 %v4187_v47, %v5231_v6  ;;  %v5323_v11 = vadd.f32 %v1007_v44, %v795_v45  ;;  %4477 = vmatprep.mubr.bf16.mxu1 %v2741_v37  ;;  %4525 = vmatprep.mubr.bf16.mxu0 %v3110_v40  ;;  %v3834_v40 = vld [vmem:[%s4701_s24 + $0xe1] sm:$0xff] }
 0x116   : > { %v651_v49 = vpop.f32.mrf.mxu1  ;;  %v1020_v51 = vpop.f32.mrf.mxu0  ;;  %v3873_v45 = vld [vmem:[%s4701_s24 + $0xda] sm:$0xff]  ;;  %v3874_v47 = vld [vmem:[%s4701_s24 + $0xe2] sm:$0xff] }
 0x117   : > { %v798_v27 = vadd.f32 %v651_v49, %v5238_v43  ;;  %v5332_v54 = vadd.f32 %v4235_v48, %v800_v3  ;;  %v3875_v3 = vld [vmem:[%s4701_s24 + $0xf2] sm:$0xff]  ;;  %v3113_v62 = vpack.c.bf16 %v3874_v47, %v3873_v45  ;;  %v3880_v45 = vld [vmem:[%s4701_s24 + $0x12a] sm:$0xff] }
 0x118   : > { %v4188_v12 = vpop.f32.mrf.mxu1  ;;  %v4236_v6 = vpop.f32.mrf.mxu0 }
 0x119   : > { %v801_v15 = vadd.f32 %v4188_v12, %v5242_v18  ;;  %v5335_v17 = vadd.f32 %v1020_v51, %v798_v27  ;;  %v3833_v18 = vld [vmem:[%s4701_s24 + $0xd9] sm:$0xff]  ;;  %v3114_v12 = vpack.c.bf16 %v3876_v33, %v3875_v3 }
 0x11a   : > { %v654_v57 = vpop.f32.mrf.mxu1  ;;  %v1023_v24 = vpop.f32.mrf.mxu0  ;;  %v2744_v51 = vpack.c.bf16 %v3834_v40, %v3833_v18  ;;  %v3840_v40 = vld [vmem:[%s4701_s24 + $0x129] sm:$0xff] }
 0x11b   : > { %v799_v43 = vadd.f32 %v654_v57, %v5246_v42  ;;  %v5338_v58 = vadd.f32 %v4236_v6, %v801_v15  ;;  %v3835_v42 = vld [vmem:[%s4701_s24 + $0xf1] sm:$0xff] }
 0x11c   : > { %v4191_v34 = vpop.f32.mrf.mxu1  ;;  %4478 = vmatmul.mubr.bf16.gmra.mxu1 %v2742_v13  ;;  %v4239_v37 = vpop.f32.mrf.mxu0  ;;  %4526 = vmatmul.mubr.bf16.gmra.mxu0 %v3111_v14  ;;  %v2745_v27 = vpack.c.bf16 %v3836_v0, %v3835_v42 }
 0x11d   : > { %v804_v41 = vadd.f32 %v4191_v34, %v5251_v8  ;;  %v5343_v44 = vadd.f32 %v1023_v24, %v799_v43  ;;  %4481 = vmatprep.mubr.bf16.mxu1 %v2743_v26  ;;  %4529 = vmatprep.mubr.bf16.mxu0 %v3112_v21  ;;  %v3838_v21 = vld [vmem:[%s4701_s24 + $0x111] sm:$0xff] }
 0x11e   : > { %v667_v48 = vpop.f32.mrf.mxu1  ;;  %v1036_v7 = vpop.f32.mrf.mxu0  ;;  %v3877_v43 = vld [vmem:[%s4701_s24 + $0x10a] sm:$0xff]  ;;  %v3878_v34 = vld [vmem:[%s4701_s24 + $0x112] sm:$0xff] }
 0x11f   : > { %v802_v39 = vadd.f32 %v667_v48, %v5262_v20  ;;  %v5352_v16 = vadd.f32 %v4239_v37, %v804_v41  ;;  %v3879_v41 = vld [vmem:[%s4701_s24 + $0x122] sm:$0xff]  ;;  %v3115_v0 = vpack.c.bf16 %v3878_v34, %v3877_v43  ;;  %v3884_v43 = vld [vmem:[%s4701_s24 + $0x15a] sm:$0xff] }
 0x120   : > { %v4192_v49 = vpop.f32.mrf.mxu1  ;;  %v4240_v8 = vpop.f32.mrf.mxu0 }
 0x121   : > { %v805_v28 = vadd.f32 %v4192_v49, %v5271_v2  ;;  %v5355_v22 = vadd.f32 %v1036_v7, %v802_v39  ;;  %v3837_v2 = vld [vmem:[%s4701_s24 + $0x109] sm:$0xff]  ;;  %v3116_v49 = vpack.c.bf16 %v3880_v45, %v3879_v41 }
 0x122   : > { %v670_v13 = vpop.f32.mrf.mxu1  ;;  %v1039_v6 = vpop.f32.mrf.mxu0  ;;  %v2746_v7 = vpack.c.bf16 %v3838_v21, %v3837_v2  ;;  %v3844_v21 = vld [vmem:[%s4701_s24 + $0x159] sm:$0xff] }
 0x123   : > { %v803_v20 = vadd.f32 %v670_v13, %v5275_v55  ;;  %v5358_v14 = vadd.f32 %v4240_v8, %v805_v28  ;;  %v3839_v55 = vld [vmem:[%s4701_s24 + $0x121] sm:$0xff] }
 0x124   : > { %v4195_v15 = vpop.f32.mrf.mxu1  ;;  %4482 = vmatmul.mubr.bf16.gmra.mxu1 %v2744_v51  ;;  %v4243_v26 = vpop.f32.mrf.mxu0  ;;  %4530 = vmatmul.mubr.bf16.gmra.mxu0 %v3113_v62  ;;  %v2747_v39 = vpack.c.bf16 %v3840_v40, %v3839_v55 }
 0x125   : > { %v808_v57 = vadd.f32 %v4195_v15, %v5280_v5  ;;  %v5363_v24 = vadd.f32 %v1039_v6, %v803_v20  ;;  %4485 = vmatprep.mubr.bf16.mxu1 %v2745_v27  ;;  %4533 = vmatprep.mubr.bf16.mxu0 %v3114_v12  ;;  %v3842_v12 = vld [vmem:[%s4701_s24 + $0x141] sm:$0xff] }
 0x126   : > { %v683_v37 = vpop.f32.mrf.mxu1  ;;  %v1052_v18 = vpop.f32.mrf.mxu0  ;;  %v3881_v20 = vld [vmem:[%s4701_s24 + $0x13a] sm:$0xff]  ;;  %v3882_v15 = vld [vmem:[%s4701_s24 + $0x142] sm:$0xff] }
 0x127   : > { %v806_v47 = vadd.f32 %v683_v37, %v5289_v10  ;;  %v5372_v42 = vadd.f32 %v4243_v26, %v808_v57  ;;  %v3883_v57 = vld [vmem:[%s4701_s24 + $0x152] sm:$0xff]  ;;  %v3117_v40 = vpack.c.bf16 %v3882_v15, %v3881_v20 }
 0x128   : > { %v4196_v48 = vpop.f32.mrf.mxu1  ;;  %v4244_v5 = vpop.f32.mrf.mxu0 }
 0x129   : > { %v809_v3 = vadd.f32 %v4196_v48, %v5296_v1  ;;  %v5375_v33 = vadd.f32 %v1052_v18, %v806_v47  ;;  %v3841_v1 = vld [vmem:[%s4701_s24 + $0x139] sm:$0xff]  ;;  %v3118_v48 = vpack.c.bf16 %v3884_v43, %v3883_v57 }
 0x12a   : > { %v686_v51 = vpop.f32.mrf.mxu1  ;;  %v1055_v8 = vpop.f32.mrf.mxu0  ;;  %v2748_v18 = vpack.c.bf16 %v3842_v12, %v3841_v1  ;;  %v3847_v1 = vld [vmem:[%s4701_s24 + $0x181] sm:$0xff]  ;;  %v3848_v12 = vld [vmem:[%s4701_s24 + $0x189] sm:$0xff] }
 0x12b   : > { %v807_v10 = vadd.f32 %v686_v51, %v5300_v30  ;;  %v5378_v62 = vadd.f32 %v4244_v5, %v809_v3  ;;  %v3843_v30 = vld [vmem:[%s4701_s24 + $0x151] sm:$0xff]  ;;  %v2751_v57 = vpack.c.bf16 %v3848_v12, %v3847_v1 }
 0x12c   : > { %v4199_v28 = vpop.f32.mrf.mxu1  ;;  %4486 = vmatmul.mubr.bf16.gmra.mxu1 %v2746_v7  ;;  %v4247_v27 = vpop.f32.mrf.mxu0  ;;  %4534 = vmatmul.mubr.bf16.gmra.mxu0 %v3115_v0  ;;  %v2749_v47 = vpack.c.bf16 %v3844_v21, %v3843_v30 }
 0x12d   : > { %v812_v13 = vadd.f32 %v4199_v28, %v5206_v25  ;;  %v5383_v6 = vadd.f32 %v1055_v8, %v807_v10  ;;  %4489 = vmatprep.mubr.bf16.mxu1 %v2747_v39  ;;  %4537 = vmatprep.mubr.bf16.mxu0 %v3116_v49  ;;  %v3846_v8 = vld [vmem:[%s4701_s24 + $0x171] sm:$0xff] }
 0x12e   : > { %v699_v26 = vpop.f32.mrf.mxu1  ;;  %v1068_v2 = vpop.f32.mrf.mxu0  ;;  %v3885_v10 = vld [vmem:[%s4701_s24 + $0x16a] sm:$0xff]  ;;  %v3886_v28 = vld [vmem:[%s4701_s24 + $0x172] sm:$0xff] }
 0x12f   : > { %v810_v34 = vadd.f32 %v699_v26, %v5214_v31  ;;  %v5392_v55 = vadd.f32 %v4247_v27, %v812_v13 }
 0x130   : > { %v4200_v37 = vpop.f32.mrf.mxu1  ;;  %v4248_v25 = vpop.f32.mrf.mxu0 }
 0x131   : > { %v813_v41 = vadd.f32 %v4200_v37, %v5220_v4  ;;  %v5395_v45 = vadd.f32 %v1068_v2, %v810_v34  ;;  %v3845_v4 = vld [vmem:[%s4701_s24 + $0x169] sm:$0xff] }
 0x132   : > { %v702_v7 = vpop.f32.mrf.mxu1  ;;  %v1071_v5 = vpop.f32.mrf.mxu0  ;;  %v2750_v30 = vpack.c.bf16 %v3846_v8, %v3845_v4 }
 0x133   : > { %v811_v31 = vadd.f32 %v702_v7, %v5224_v56  ;;  %v5398_v0 = vadd.f32 %v4248_v25, %v813_v41  ;;  %v3890_v7 = vld [vmem:[%s4701_s24 + $0x1a2] sm:$0xff] }
 0x134   : > { %v4203_v3 = vpop.f32.mrf.mxu1  ;;  %4490 = vmatmul.mubr.bf16.gmra.mxu1 %v2748_v18  ;;  %v4251_v39 = vpop.f32.mrf.mxu0  ;;  %4538 = vmatmul.mubr.bf16.gmra.mxu0 %v3117_v40  ;;  %v3849_v40 = vld [vmem:[%s4701_s24 + $0x199] sm:$0xff] }
 0x135   : > { %v816_v49 = vadd.f32 %v4203_v3, %v5228_v63  ;;  %v5402_v51 = vadd.f32 %v1071_v5, %v811_v31  ;;  %4493 = vmatprep.mubr.bf16.mxu1 %v2749_v47  ;;  %4541 = vmatprep.mubr.bf16.mxu0 %v3118_v48  ;;  %v3119_v63 = vpack.c.bf16 %v3886_v28, %v3885_v10  ;;  %v3889_v48 = vld [vmem:[%s4701_s24 + $0x19a] sm:$0xff] }
 0x136   : > { %v715_v27 = vpop.f32.mrf.mxu1  ;;  %v1084_v56 = vpop.f32.mrf.mxu0  ;;  %v3121_v8 = vpack.c.bf16 %v3890_v7, %v3889_v48 }
 0x137   : > { %v814_v13 = vadd.f32 %v715_v27, %v5236_v38  ;;  %v5410_v20 = vadd.f32 %v4251_v39, %v816_v49 }
 0x138   : > { %v4204_v15 = vpop.f32.mrf.mxu1  ;;  %v4252_v26 = vpop.f32.mrf.mxu0 }
 0x139   : > { %v817_v2 = vadd.f32 %v4204_v15, %v5240_v32  ;;  %v5413_v21 = vadd.f32 %v1084_v56, %v814_v13  ;;  %v3850_v32 = vld [vmem:[%s4701_s24 + $0x1a1] sm:$0xff]  ;;  %s3632_s24 = sshll.u32 %s4680_s13, 5 }
 0x13a   : > { %v718_v43 = vpop.f32.mrf.mxu1  ;;  %v1087_v34 = vpop.f32.mrf.mxu0  ;;  %v2752_v4 = vpack.c.bf16 %v3850_v32, %v3849_v40  ;;  %p174_p4 = scmp.lt.s32.totalorder %s3632_s24, 63 }
 0x13b   : > { %v815_v37 = vadd.f32 %v718_v43, %v5244_v60  ;;  %v5416_v38 = vadd.f32 %v4252_v26, %v817_v2 }
 0x13c   : > { %v4207_v18 = vpop.f32.mrf.mxu1  ;;  %4494 = vmatmul.mubr.bf16.gmra.mxu1 %v2750_v30  ;;  %v4255_v25 = vpop.f32.mrf.mxu0  ;;  %4542 = vmatmul.mubr.bf16.gmra.mxu0 %v3119_v63  ;;  %s5899_s24 = smov (!%p174_p4, %s3632_s24), 63 }
 0x13d   : > { %v820_v41 = vadd.f32 %v4207_v18, %v5248_v59  ;;  %v5420_v47 = vadd.f32 %v1087_v34, %v815_v37  ;;  %4497 = vmatprep.mubr.bf16.mxu1 %v2751_v57  ;;  %4545 = vmatprep.mubr.bf16.mxu0 %v5269_v50  ;;  %s3633_s13 = sshll.u32 %s5899_s24, 3 }
 0x13e   : > { %v731_v5 = vpop.f32.mrf.mxu1  ;;  %v1100_v31 = vpop.f32.mrf.mxu0  ;;  %s5687_s27 = scalar_lea.vmem %s5816_s2, %s3633_s13 }
 0x13f   : > { %v818_v60 = vadd.f32 %v731_v5, %v5260_v19  ;;  %v5427_v3 = vadd.f32 %v4255_v25, %v820_v41 }
 0x140   : > { %v4208_v39 = vpop.f32.mrf.mxu1  ;;  %v4256_v49 = vpop.f32.mrf.mxu0 }
 0x141   : > { %v821_v59 = vadd.f32 %v4208_v39, %v5267_v35  ;;  %v5430_v10 = vadd.f32 %v1100_v31, %v818_v60 }
 0x142   : > { %v734_v28 = vpop.f32.mrf.mxu1  ;;  %v1103_v27 = vpop.f32.mrf.mxu0 }
 0x143   : > { %v819_v50 = vadd.f32 %v734_v28, %v5273_v52  ;;  %v5433_v56 = vadd.f32 %v4256_v49, %v821_v59 }
 0x144   : > { %v4211_v1 = vpop.f32.mrf.mxu1  ;;  %4498 = vmatmul.mubr.bf16.gmra.mxu1 %v2752_v4  ;;  %v4259_v12 = vpop.f32.mrf.mxu0  ;;  %4546 = vmatmul.mubr.bf16.gmra.mxu0 %v3121_v8 }
 0x145   : > { %v824_v19 = vadd.f32 %v4211_v1, %v5277_v61  ;;  %v5436_v13 = vadd.f32 %v1103_v27, %v819_v50 }
 0x146   : > { %v747_v15 = vpop.f32.mrf.mxu1  ;;  %v1116_v30 = vpop.f32.mrf.mxu0 }
 0x147   : > { %v822_v35 = vadd.f32 %v747_v15, %v5287_v9  ;;  %v5439_v26 = vadd.f32 %v4259_v12, %v824_v19 }
 0x148   : > { %v4212_v63 = vpop.f32.mrf.mxu1  ;;  %v4260_v2 = vpop.f32.mrf.mxu0 }
 0x149   : > { %v825_v52 = vadd.f32 %v4212_v63, %v5294_v53  ;;  %v5442_v57 = vadd.f32 %v1116_v30, %v822_v35 }
 0x14a   : > { %v750_v43 = vpop.f32.mrf.mxu1  ;;  %v1119_v34 = vpop.f32.mrf.mxu0 }
 0x14b   : > { %v823_v37 = vadd.f32 %v750_v43, %v5298_v23  ;;  %v5445_v18 = vadd.f32 %v4260_v2, %v825_v52 }
 0x14c   : > { %v4279_v61 = vpop.f32.mrf.mxu1  ;;  %v4327_v25 = vpop.f32.mrf.mxu0 }
 0x14d   : > { %v1535_v40 = vadd.f32 %v4279_v61, %v5312_v46  ;;  %v5448_v41 = vadd.f32 %v1119_v34, %v823_v37 }
 0x14e   : > { %v1374_v9 = vpop.f32.mrf.mxu1  ;;  %v1743_v32 = vpop.f32.mrf.mxu0 }
 0x14f   : > { %v1533_v48 = vadd.f32 %v1374_v9, %v5315_v36  ;;  %v5451_v7 = vadd.f32 %v4327_v25, %v1535_v40 }
 0x150   : > { %v4280_v53 = vpop.f32.mrf.mxu1  ;;  %v4328_v5 = vpop.f32.mrf.mxu0 }
 0x151   : > { %v1536_v31 = vadd.f32 %v4280_v53, %v5318_v29  ;;  %v5454_v60 = vadd.f32 %v1743_v32, %v1533_v48 }
 0x152   : > { %v1377_v23 = vpop.f32.mrf.mxu1  ;;  %v1746_v39 = vpop.f32.mrf.mxu0 }
 0x153   : > { %v1534_v4 = vadd.f32 %v1377_v23, %v5323_v11  ;;  %v5457_v49 = vadd.f32 %v4328_v5, %v1536_v31 }
 0x154   : > { %v4283_v46 = vpop.f32.mrf.mxu1  ;;  %v4331_v8 = vpop.f32.mrf.mxu0 }
 0x155   : > { %v1539_v59 = vadd.f32 %v4283_v46, %v5332_v54  ;;  %v5460_v28 = vadd.f32 %v1746_v39, %v1534_v4 }
 0x156   : > { %v1390_v36 = vpop.f32.mrf.mxu1  ;;  %v1759_v27 = vpop.f32.mrf.mxu0 }
 0x157   : > { %v1537_v50 = vadd.f32 %v1390_v36, %v5335_v17  ;;  %v5463_v1 = vadd.f32 %v4331_v8, %v1539_v59 }
 0x158   : > { %v4284_v29 = vpop.f32.mrf.mxu1  ;;  %v4332_v12 = vpop.f32.mrf.mxu0 }
 0x159   : > { %v1540_v19 = vadd.f32 %v4284_v29, %v5338_v58  ;;  %v5466_v15 = vadd.f32 %v1759_v27, %v1537_v50 }
 0x15a   : > { %v1393_v11 = vpop.f32.mrf.mxu1  ;;  %v1762_v30 = vpop.f32.mrf.mxu0 }
 0x15b   : > { %v1538_v35 = vadd.f32 %v1393_v11, %v5343_v44  ;;  %v5469_v63 = vadd.f32 %v4332_v12, %v1540_v19 }
 0x15c   : > { %v4287_v54 = vpop.f32.mrf.mxu1  ;;  %v4335_v2 = vpop.f32.mrf.mxu0 }
 0x15d   : > { %v1543_v52 = vadd.f32 %v4287_v54, %v5352_v16  ;;  %v5472_v43 = vadd.f32 %v1762_v30, %v1538_v35 }
 0x15e   : > { %v1406_v17 = vpop.f32.mrf.mxu1  ;;  %v1775_v34 = vpop.f32.mrf.mxu0 }
 0x15f   : > { %v1541_v37 = vadd.f32 %v1406_v17, %v5355_v22  ;;  %v5475_v61 = vadd.f32 %v4335_v2, %v1543_v52 }
 0x160   : > { %v4288_v58 = vpop.f32.mrf.mxu1  ;;  %v4336_v25 = vpop.f32.mrf.mxu0 }
 0x161   : > { %v1544_v40 = vadd.f32 %v4288_v58, %v5358_v14  ;;  %v5478_v9 = vadd.f32 %v1775_v34, %v1541_v37 }
 0x162   : > { %v1409_v44 = vpop.f32.mrf.mxu1  ;;  %v1778_v32 = vpop.f32.mrf.mxu0 }
 0x163   : > { %v1542_v48 = vadd.f32 %v1409_v44, %v5363_v24  ;;  %v5481_v53 = vadd.f32 %v4336_v25, %v1544_v40 }
 0x164   : > { %v4291_v16 = vpop.f32.mrf.mxu1  ;;  %v4339_v5 = vpop.f32.mrf.mxu0 }
 0x165   : > { %v1547_v31 = vadd.f32 %v4291_v16, %v5372_v42  ;;  %v5484_v23 = vadd.f32 %v1778_v32, %v1542_v48 }
 0x166   : > { %v1422_v22 = vpop.f32.mrf.mxu1  ;;  %v1791_v39 = vpop.f32.mrf.mxu0 }
 0x167   : > { %v1545_v4 = vadd.f32 %v1422_v22, %v5375_v33  ;;  %v5487_v46 = vadd.f32 %v4339_v5, %v1547_v31 }
 0x168   : > { %v4292_v14 = vpop.f32.mrf.mxu1  ;;  %v4340_v8 = vpop.f32.mrf.mxu0 }
 0x169   : > { %v1548_v59 = vadd.f32 %v4292_v14, %v5378_v62  ;;  %v5490_v36 = vadd.f32 %v1791_v39, %v1545_v4 }
 0x16a   : > { %v1425_v24 = vpop.f32.mrf.mxu1  ;;  %v1794_v27 = vpop.f32.mrf.mxu0 }
 0x16b   : > { %v1546_v50 = vadd.f32 %v1425_v24, %v5383_v6  ;;  %v5493_v29 = vadd.f32 %v4340_v8, %v1548_v59 }
 0x16c   : > { %v4295_v42 = vpop.f32.mrf.mxu1  ;;  %v4343_v12 = vpop.f32.mrf.mxu0 }
 0x16d   : > { %v1551_v19 = vadd.f32 %v4295_v42, %v5392_v55  ;;  %v5496_v11 = vadd.f32 %v1794_v27, %v1546_v50 }
 0x16e   : > { %v1438_v33 = vpop.f32.mrf.mxu1  ;;  %v1807_v30 = vpop.f32.mrf.mxu0 }
 0x16f   : > { %v1549_v35 = vadd.f32 %v1438_v33, %v5395_v45  ;;  %v5499_v54 = vadd.f32 %v4343_v12, %v1551_v19 }
 0x170   : > { %v4296_v62 = vpop.f32.mrf.mxu1  ;;  %v4344_v2 = vpop.f32.mrf.mxu0 }
 0x171   : > { %v1552_v52 = vadd.f32 %v4296_v62, %v5398_v0  ;;  %v5502_v17 = vadd.f32 %v1807_v30, %v1549_v35 }
 0x172   : > { %v1441_v6 = vpop.f32.mrf.mxu1  ;;  %v1810_v34 = vpop.f32.mrf.mxu0 }
 0x173   : > { %v1550_v37 = vadd.f32 %v1441_v6, %v5402_v51  ;;  %v5505_v58 = vadd.f32 %v4344_v2, %v1552_v52 }
 0x174   : > { %v4299_v55 = vpop.f32.mrf.mxu1  ;;  %v4347_v25 = vpop.f32.mrf.mxu0 }
 0x175   : > { %v1555_v40 = vadd.f32 %v4299_v55, %v5410_v20  ;;  %v5508_v44 = vadd.f32 %v1810_v34, %v1550_v37 }
 0x176   : > { %v1454_v45 = vpop.f32.mrf.mxu1  ;;  %v1823_v32 = vpop.f32.mrf.mxu0 }
 0x177   : > { %5818 = vst [vmem:[#allocation2_spill] sm:$0xff] %v5508_v44  ;;  %v1553_v48 = vadd.f32 %v1454_v45, %v5413_v21  ;;  %v5511_v16 = vadd.f32 %v4347_v25, %v1555_v40 }
 0x178   : > { %v4300_v0 = vpop.f32.mrf.mxu1  ;;  %v4348_v5 = vpop.f32.mrf.mxu0 }
 0x179   : > { %5819 = vst [vmem:[#allocation3_spill] sm:$0xff] %v5511_v16  ;;  %v1556_v31 = vadd.f32 %v4300_v0, %v5416_v38  ;;  %v5514_v22 = vadd.f32 %v1823_v32, %v1553_v48 }
 0x17a   : > { %v1457_v51 = vpop.f32.mrf.mxu1  ;;  %v1826_v39 = vpop.f32.mrf.mxu0 }
 0x17b   : > { %5820 = vst [vmem:[#allocation4_spill] sm:$0xff] %v5514_v22  ;;  %v1554_v4 = vadd.f32 %v1457_v51, %v5420_v47  ;;  %v5517_v14 = vadd.f32 %v4348_v5, %v1556_v31 }
 0x17c   : > { %v4303_v20 = vpop.f32.mrf.mxu1  ;;  %v4351_v8 = vpop.f32.mrf.mxu0 }
 0x17d   : > { %5821 = vst [vmem:[#allocation5_spill] sm:$0xff] %v5517_v14  ;;  %v1559_v59 = vadd.f32 %v4303_v20, %v5427_v3  ;;  %v5520_v24 = vadd.f32 %v1826_v39, %v1554_v4 }
 0x17e   : > { %v1470_v21 = vpop.f32.mrf.mxu1  ;;  %v1839_v27 = vpop.f32.mrf.mxu0 }
 0x17f   : > { %5822 = vst [vmem:[#allocation6_spill] sm:$0xff] %v5520_v24  ;;  %v1557_v50 = vadd.f32 %v1470_v21, %v5430_v10  ;;  %v5523_v42 = vadd.f32 %v4351_v8, %v1559_v59 }
 0x180   : > { %v4304_v38 = vpop.f32.mrf.mxu1  ;;  %v4352_v12 = vpop.f32.mrf.mxu0 }
 0x181   : > { %5823 = vst [vmem:[#allocation7_spill] sm:$0xff] %v5523_v42  ;;  %v1560_v19 = vadd.f32 %v4304_v38, %v5433_v56  ;;  %v5526_v33 = vadd.f32 %v1839_v27, %v1557_v50 }
 0x182   : > { %v1473_v47 = vpop.f32.mrf.mxu1  ;;  %v1842_v30 = vpop.f32.mrf.mxu0 }
 0x183   : > { %5824 = vst [vmem:[#allocation8_spill] sm:$0xff] %v5526_v33  ;;  %v1558_v35 = vadd.f32 %v1473_v47, %v5436_v13  ;;  %v5529_v62 = vadd.f32 %v4352_v12, %v1560_v19 }
 0x184   : > { %v4307_v3 = vpop.f32.mrf.mxu1  ;;  %v4355_v2 = vpop.f32.mrf.mxu0 }
 0x185   : > { %5825 = vst [vmem:[#allocation9_spill] sm:$0xff] %v5529_v62  ;;  %v1563_v52 = vadd.f32 %v4307_v3, %v5439_v26  ;;  %v5532_v6 = vadd.f32 %v1842_v30, %v1558_v35 }
 0x186   : > { %v1486_v10 = vpop.f32.mrf.mxu1  ;;  %v1855_v34 = vpop.f32.mrf.mxu0 }
 0x187   : > { %5826 = vst [vmem:[#allocation10_spill] sm:$0xff] %v5532_v6  ;;  %v1561_v37 = vadd.f32 %v1486_v10, %v5442_v57  ;;  %v5535_v55 = vadd.f32 %v4355_v2, %v1563_v52 }
 0x188   : > { %v4308_v56 = vpop.f32.mrf.mxu1  ;;  %v4356_v25 = vpop.f32.mrf.mxu0 }
 0x189   : > { %5827 = vst [vmem:[#allocation11_spill] sm:$0xff] %v5535_v55  ;;  %v1564_v40 = vadd.f32 %v4308_v56, %v5445_v18  ;;  %v5538_v45 = vadd.f32 %v1855_v34, %v1561_v37 }
 0x18a   : > { %v1489_v13 = vpop.f32.mrf.mxu1  ;;  %v1858_v32 = vpop.f32.mrf.mxu0 }
 0x18b   : > { %5828 = vst [vmem:[#allocation12_spill] sm:$0xff] %v5538_v45  ;;  %v1562_v48 = vadd.f32 %v1489_v13, %v5448_v41  ;;  %v5541_v0 = vadd.f32 %v4356_v25, %v1564_v40 }
 0x18c   : > { %v5543_v26 = vpop.f32.mrf.mxu1  ;;  %v5545_v5 = vpop.f32.mrf.mxu0 }
 0x18d   : > { %5829 = vst [vmem:[#allocation13_spill] sm:$0xff] %v5541_v0  ;;  %v5547_v31 = vadd.f32 %v1858_v32, %v1562_v48 }
 0x18e   : > { %v5549_v57 = vpop.f32.mrf.mxu1  ;;  %v5551_v51 = vpop.f32.mrf.mxu0 }
 0x18f   : > { %5830 = vst [vmem:[#allocation14_spill] sm:$0xff] %v5547_v31 }
 0x190   : > { %v5553_v39 = vpop.f32.mrf.mxu1  ;;  %v5555_v18 = vpop.f32.mrf.mxu0 }
 0x192   : > { %v5557_v4 = vpop.f32.mrf.mxu1  ;;  %v5559_v20 = vpop.f32.mrf.mxu0 }
 0x194   : > { %v5561_v41 = vpop.f32.mrf.mxu1  ;;  %v5563_v8 = vpop.f32.mrf.mxu0 }
 0x196   : > { %v5565_v59 = vpop.f32.mrf.mxu1  ;;  %v5567_v21 = vpop.f32.mrf.mxu0 }
 0x198   : > { %v5569_v27 = vpop.f32.mrf.mxu1  ;;  %v5571_v50 = vpop.f32.mrf.mxu0 }
 0x19a   : > { %v5573_v38 = vpop.f32.mrf.mxu1  ;;  %v5575_v12 = vpop.f32.mrf.mxu0 }
 0x19c   : > { %v5577_v19 = vpop.f32.mrf.mxu1  ;;  %v5579_v47 = vpop.f32.mrf.mxu0 }
 0x19e   : > { %v5581_v30 = vpop.f32.mrf.mxu1  ;;  %v5583_v35 = vpop.f32.mrf.mxu0 }
 0x1a0   : > { %v5585_v3 = vpop.f32.mrf.mxu1  ;;  %v5587_v2 = vpop.f32.mrf.mxu0 }
 0x1a2   : > { %v5589_v52 = vpop.f32.mrf.mxu1  ;;  %v5591_v10 = vpop.f32.mrf.mxu0 }
 0x1a4   : > { %v5593_v34 = vpop.f32.mrf.mxu1  ;;  %v5595_v37 = vpop.f32.mrf.mxu0 }
 0x1a6   : > { %v5597_v56 = vpop.f32.mrf.mxu1  ;;  %v5599_v25 = vpop.f32.mrf.mxu0 }
 0x1a8   : > { %v5601_v40 = vpop.f32.mrf.mxu1  ;;  %v5603_v13 = vpop.f32.mrf.mxu0 }
 0x1aa   : > { %v5605_v32 = vpop.f32.mrf.mxu1  ;;  %v5607_v48 = vpop.f32.mrf.mxu0 }
 0x1ac   : > { %v5609_v31 = vpop.f32.mrf.mxu1  ;;  %v5611_v0 = vpop.f32.mrf.mxu0 }
 0x1ad   : > { %5831 = vst [vmem:[#allocation15_spill] sm:$0xff] %v5611_v0 }
 0x1ae   : > { %v5613_v45 = vpop.f32.mrf.mxu1  ;;  %v5615_v55 = vpop.f32.mrf.mxu0 }
 0x1af   : > { %5832 = vst [vmem:[#allocation16_spill] sm:$0xff] %v5615_v55 }
 0x1b0   : > { %v5617_v6 = vpop.f32.mrf.mxu1  ;;  %v5619_v62 = vpop.f32.mrf.mxu0 }
 0x1b1   : > { %5833 = vst [vmem:[#allocation17_spill] sm:$0xff] %v5617_v6  ;;  %5834 = vst [vmem:[#allocation18_spill] sm:$0xff] %v5619_v62 }
 0x1b2   : > { %v5621_v33 = vpop.f32.mrf.mxu1  ;;  %v5623_v42 = vpop.f32.mrf.mxu0 }
 0x1b3   : > { %5835 = vst [vmem:[#allocation19_spill] sm:$0xff] %v5621_v33  ;;  %5836 = vst [vmem:[#allocation20_spill] sm:$0xff] %v5623_v42 }
 0x1b4   : > { %v5625_v24 = vpop.f32.mrf.mxu1  ;;  %v5627_v14 = vpop.f32.mrf.mxu0 }
 0x1b5   : > { %5837 = vst [vmem:[#allocation21_spill] sm:$0xff] %v5625_v24  ;;  %5838 = vst [vmem:[#allocation22_spill] sm:$0xff] %v5627_v14 }
 0x1b6   : > { %v5629_v22 = vpop.f32.mrf.mxu1  ;;  %v5631_v16 = vpop.f32.mrf.mxu0 }
 0x1b7   : > { %5839 = vst [vmem:[#allocation23_spill] sm:$0xff] %v5631_v16 }
 0x1b8   : > { %v5633_v44 = vpop.f32.mrf.mxu1  ;;  %v5635_v55 = vpop.f32.mrf.mxu0 }
 0x1b9   : > { %5840 = vst [vmem:[#allocation24_spill] sm:$0xff] %v5633_v44  ;;  %5841 = vst [vmem:[#allocation25_spill] sm:$0xff] %v5635_v55 }
 0x1ba   : > { %v5637_v0 = vpop.f32.mrf.mxu1  ;;  %v5639_v6 = vpop.f32.mrf.mxu0 }
 0x1bb   : > { %5842 = vst [vmem:[#allocation26_spill] sm:$0xff] %v5637_v0  ;;  %5843 = vst [vmem:[#allocation27_spill] sm:$0xff] %v5639_v6 }
 0x1bc   : > { %v5641_v62 = vpop.f32.mrf.mxu1  ;;  %v5643_v33 = vpop.f32.mrf.mxu0 }
 0x1bd   : > { %5844 = vst [vmem:[#allocation28_spill] sm:$0xff] %v5641_v62  ;;  %5845 = vst [vmem:[#allocation29_spill] sm:$0xff] %v5643_v33 }
 0x1be   : > { %v5645_v42 = vpop.f32.mrf.mxu1  ;;  %v5647_v24 = vpop.f32.mrf.mxu0 }
 0x1bf   : > { %5846 = vst [vmem:[#allocation30_spill] sm:$0xff] %v5645_v42  ;;  %5847 = vst [vmem:[#allocation31_spill] sm:$0xff] %v5647_v24  ;;  %v2273_v24 = vadd.f32 %v5543_v26, %v5451_v7  ;;  %v2272_v7 = vadd.f32 %v5557_v4, %v5460_v28 }
 0x1c0   : > { %v5650_v14 = vpop.f32.mrf.mxu1  ;;  %v5652_v16 = vpop.f32.mrf.mxu0 }
 0x1c1   : > { %5848 = vst [vmem:[#allocation32_spill] sm:$0xff] %v5650_v14  ;;  %5849 = vst [vmem:[#allocation33_spill] sm:$0xff] %v5652_v16 }
 0x1c2   : > { %v5654_v44 = vpop.f32.mrf.mxu1  ;;  %v5656_v55 = vpop.f32.mrf.mxu0 }
 0x1c3   : > { %5850 = vst [vmem:[#allocation34_spill] sm:$0xff] %v5654_v44  ;;  %5851 = vst [vmem:[#allocation35_spill] sm:$0xff] %v5656_v55  ;;  %v2271_v55 = vadd.f32 %v5549_v57, %v5454_v60 }
 0x1c4   : > { %v5658_v0 = vpop.f32.mrf.mxu1  ;;  %v5660_v6 = vpop.f32.mrf.mxu0 }
 0x1c5   : > { %5852 = vst [vmem:[#allocation36_spill] sm:$0xff] %v5658_v0  ;;  %5853 = vst [vmem:[#allocation37_spill] sm:$0xff] %v5660_v6  ;;  %v2274_v6 = vadd.f32 %v5553_v39, %v5457_v49  ;;  %v2641_v26 = vadd.f32 %v5551_v51, %v2271_v55  ;;  %v2277_v49 = vadd.f32 %v5561_v41, %v5463_v1 }
 0x1c6   : > { %v5662_v62 = vpop.f32.mrf.mxu1  ;;  %v5664_v33 = vpop.f32.mrf.mxu0 }
 0x1c7   : > { %5854 = vst [vmem:[#allocation38_spill] sm:$0xff] %v5662_v62  ;;  %5855 = vst [vmem:[#allocation39_spill] sm:$0xff] %v5664_v33  ;;  %v2643_v33 = vadd.f32 %v5545_v5, %v2273_v24  ;;  %v2644_v24 = vadd.f32 %v5555_v18, %v2274_v6  ;;  %v2647_v6 = vadd.f32 %v5563_v8, %v2277_v49 }
 0x1c8   : > { %v5668_v14 = vpop.f32.mrf.mxu1  ;;  %v5670_v16 = vpop.f32.mrf.mxu0 }
 0x1c9   : > { %5856 = vst [vmem:[#allocation40_spill] sm:$0xff] %v5670_v16 }
 0x1ca   : > { %v5674_v44 = vpop.f32.mrf.mxu1  ;;  %v5676_v0 = vpop.f32.mrf.mxu0 }
 0x1cb   : > { %5857 = vst [vmem:[#allocation41_spill] sm:$0xff] %v5676_v0  ;;  %v2278_v0 = vadd.f32 %v5569_v27, %v5469_v63  ;;  %v2281_v63 = vadd.f32 %v5577_v19, %v5475_v61 }
 0x1cc   : > { %v4471_v62 = vpop.f32.mrf.mxu1  ;;  %v4519_v42 = vpop.f32.mrf.mxu0 }
 0x1cd   : > { %v3012_v16 = vadd.f32 %v4471_v62, %v2643_v33  ;;  %v2275_v33 = vadd.f32 %v5565_v59, %v5466_v15  ;;  %v2642_v62 = vadd.f32 %v5559_v20, %v2272_v7  ;;  %v2276_v15 = vadd.f32 %v5573_v38, %v5472_v43 }
 0x1ce   : > { %v2851_v60 = vpop.f32.mrf.mxu1  ;;  %v3220_v57 = vpop.f32.mrf.mxu0  ;;  %v2648_v8 = vadd.f32 %v5571_v50, %v2278_v0  ;;  %v2279_v38 = vadd.f32 %v5581_v30, %v5478_v9  ;;  %v2282_v50 = vadd.f32 %v5585_v3, %v5481_v53 }
 0x1cf   : > { %v3010_v5 = vadd.f32 %v2851_v60, %v2641_v26  ;;  %v3381_v39 = vadd.f32 %v4519_v42, %v3012_v16  ;;  %v2645_v59 = vadd.f32 %v5567_v21, %v2275_v33  ;;  %v2646_v21 = vadd.f32 %v5575_v12, %v2276_v15 }
 0x1d0   : > { %v4472_v28 = vpop.f32.mrf.mxu1  ;;  %v4520_v4 = vpop.f32.mrf.mxu0  ;;  %v2651_v33 = vadd.f32 %v5579_v47, %v2281_v63  ;;  %v2652_v15 = vadd.f32 %v5587_v2, %v2282_v50 }
 0x1d1   : > { %v3013_v55 = vadd.f32 %v4472_v28, %v2644_v24  ;;  %3413 = vst [vmem:[%s5687_s27 + $0x10] sm:$0xff] %v3381_v39  ;;  %v3379_v51 = vadd.f32 %v3220_v57, %v3010_v5 }
 0x1d2   : > { %v2854_v1 = vpop.f32.mrf.mxu1  ;;  %v3223_v41 = vpop.f32.mrf.mxu0 }
 0x1d3   : > { %v3011_v18 = vadd.f32 %v2854_v1, %v2642_v62  ;;  %3411 = vst [vmem:[%s5687_s27] sm:$0xff] %v3379_v51  ;;  %v3382_v16 = vadd.f32 %v4520_v4, %v3013_v55  ;;  %v3475_v57 = vmul.f32 %v3379_v51, %v3379_v51  ;;  %v3477_v4 = vmul.f32 %v3381_v39, %v3381_v39 }
 0x1d4   : > { %v4475_v42 = vpop.f32.mrf.mxu1  ;;  %v4523_v20 = vpop.f32.mrf.mxu0  ;;  %v2280_v39 = vadd.f32 %v5589_v52, %v5484_v23  ;;  %v2649_v1 = vadd.f32 %v5583_v35, %v2279_v38  ;;  %v2283_v52 = vadd.f32 %v5597_v56, %v5490_v36 }
 0x1d5   : > { %v3016_v7 = vadd.f32 %v4475_v42, %v2647_v6  ;;  %3414 = vst [vmem:[%s5687_s27 + $0x18] sm:$0xff] %v3382_v16  ;;  %v3380_v26 = vadd.f32 %v3223_v41, %v3011_v18  ;;  %v3478_v51 = vmul.f32 %v3382_v16, %v3382_v16  ;;  %v2285_v16 = vadd.f32 %v5593_v34, %v5487_v46 }
 0x1d6   : > { %v2867_v27 = vpop.f32.mrf.mxu1  ;;  %v3236_v60 = vpop.f32.mrf.mxu0 }
 0x1d7   : > { %v3014_v49 = vadd.f32 %v2867_v27, %v2645_v59  ;;  %3412 = vst [vmem:[%s5687_s27 + $0x8] sm:$0xff] %v3380_v26  ;;  %v3476_v24 = vmul.f32 %v3380_v26, %v3380_v26  ;;  %v3385_v43 = vadd.f32 %v4523_v20, %v3016_v7  ;;  %v2650_v26 = vadd.f32 %v5591_v10, %v2280_v39 }
 0x1d8   : > { %v4476_v5 = vpop.f32.mrf.mxu1  ;;  %v4524_v28 = vpop.f32.mrf.mxu0 }
 0x1d9   : > { %v3507_v61 = vadd.f32 %v3476_v24, %v3475_v57  ;;  %v3017_v19 = vadd.f32 %v4476_v5, %v2648_v8  ;;  %3417 = vst [vmem:[%s5687_s27 + $0x30] sm:$0xff] %v3385_v43  ;;  %v3383_v0 = vadd.f32 %v3236_v60, %v3014_v49  ;;  %v3481_v27 = vmul.f32 %v3385_v43, %v3385_v43 }
 0x1da   : > { %v2870_v62 = vpop.f32.mrf.mxu1  ;;  %v3239_v55 = vpop.f32.mrf.mxu0  ;;  %v2286_v60 = vadd.f32 %v5601_v40, %v5493_v29  ;;  %v2655_v57 = vadd.f32 %v5595_v37, %v2285_v16  ;;  %v2284_v43 = vadd.f32 %v5605_v32, %v5496_v11  ;;  %v2287_v32 = vadd.f32 %v5613_v45, %v5502_v17 }
 0x1db   : > { %v3508_v9 = vadd.f32 %v3507_v61, %v3477_v4  ;;  %v3015_v30 = vadd.f32 %v2870_v62, %v2646_v21  ;;  %3415 = vst [vmem:[%s5687_s27 + $0x20] sm:$0xff] %v3383_v0  ;;  %v3386_v12 = vadd.f32 %v4524_v28, %v3017_v19  ;;  %v3479_v18 = vmul.f32 %v3383_v0, %v3383_v0 }
 0x1dc   : > { %v4479_v41 = vpop.f32.mrf.mxu1  ;;  %v4527_v6 = vpop.f32.mrf.mxu0  ;;  %v2653_v21 = vadd.f32 %v5599_v25, %v2283_v52  ;;  %v2289_v61 = vadd.f32 %v5609_v31, %v5499_v54  ;;  %v2656_v19 = vadd.f32 %v5603_v13, %v2286_v60  ;;  %v5863_v52 = vld [vmem:[#allocation3_spill] sm:$0xff] }
 0x1dd   : > { %v3509_v53 = vadd.f32 %v3508_v9, %v3478_v51  ;;  %v3020_v3 = vadd.f32 %v4479_v41, %v2651_v33  ;;  %3418 = vst [vmem:[%s5687_s27 + $0x38] sm:$0xff] %v3386_v12  ;;  %v3384_v47 = vadd.f32 %v3239_v55, %v3015_v30  ;;  %v3482_v38 = vmul.f32 %v3386_v12, %v3386_v12  ;;  %v5858_v12 = vld [vmem:[#allocation17_spill] sm:$0xff] }
 0x1de   : > { %v2883_v42 = vpop.f32.mrf.mxu1  ;;  %v3252_v20 = vpop.f32.mrf.mxu0  ;;  %v2654_v55 = vadd.f32 %v5607_v48, %v2284_v43  ;;  %v2290_v39 = vadd.f32 %v5858_v12, %v5505_v58 }
 0x1df   : > { %v3510_v59 = vadd.f32 %v3509_v53, %v3479_v18  ;;  %v3018_v7 = vadd.f32 %v2883_v42, %v2649_v1  ;;  %3416 = vst [vmem:[%s5687_s27 + $0x28] sm:$0xff] %v3384_v47  ;;  %v3480_v23 = vmul.f32 %v3384_v47, %v3384_v47  ;;  %v3389_v35 = vadd.f32 %v4527_v6, %v3020_v3  ;;  %v5859_v1 = vld [vmem:[#allocation15_spill] sm:$0xff]  ;;  %v5860_v3 = vld [vmem:[#allocation2_spill] sm:$0xff] }
 0x1e0   : > { %v4480_v63 = vpop.f32.mrf.mxu1  ;;  %v4528_v8 = vpop.f32.mrf.mxu0  ;;  %v2659_v41 = vadd.f32 %v5859_v1, %v2289_v61  ;;  %v5861_v47 = vld [vmem:[#allocation19_spill] sm:$0xff]  ;;  %v5870_v61 = vld [vmem:[#allocation22_spill] sm:$0xff] }
 0x1e1   : > { %v3511_v46 = vadd.f32 %v3510_v59, %v3480_v23  ;;  %v3021_v34 = vadd.f32 %v4480_v63, %v2652_v15  ;;  %3421 = vst [vmem:[%s5687_s27 + $0x50] sm:$0xff] %v3389_v35  ;;  %v3387_v2 = vadd.f32 %v3252_v20, %v3018_v7  ;;  %v3485_v30 = vmul.f32 %v3389_v35, %v3389_v35  ;;  %v5862_v15 = vld [vmem:[#allocation16_spill] sm:$0xff]  ;;  %v5874_v1 = vld [vmem:[#allocation7_spill] sm:$0xff] }
 0x1e2   : > { %v2886_v49 = vpop.f32.mrf.mxu1  ;;  %v3255_v24 = vpop.f32.mrf.mxu0  ;;  %v2288_v16 = vadd.f32 %v5861_v47, %v5860_v3  ;;  %v2657_v42 = vadd.f32 %v5862_v15, %v2287_v32  ;;  %v5871_v32 = vld [vmem:[#allocation6_spill] sm:$0xff]  ;;  %v5877_v15 = vld [vmem:[#allocation8_spill] sm:$0xff] }
 0x1e3   : > { %v3512_v36 = vadd.f32 %v3511_v46, %v3481_v27  ;;  %v3019_v56 = vadd.f32 %v2886_v49, %v2650_v26  ;;  %3419 = vst [vmem:[%s5687_s27 + $0x40] sm:$0xff] %v3387_v2  ;;  %v3390_v10 = vadd.f32 %v4528_v8, %v3021_v34  ;;  %v3483_v4 = vmul.f32 %v3387_v2, %v3387_v2  ;;  %v5864_v26 = vld [vmem:[#allocation21_spill] sm:$0xff]  ;;  %v5865_v8 = vld [vmem:[#allocation18_spill] sm:$0xff] }
 0x1e4   : > { %v4483_v5 = vpop.f32.mrf.mxu1  ;;  %v4531_v28 = vpop.f32.mrf.mxu0  ;;  %v2293_v63 = vadd.f32 %v5864_v26, %v5863_v52  ;;  %v2660_v27 = vadd.f32 %v5865_v8, %v2290_v39  ;;  %v5880_v8 = vld [vmem:[#allocation9_spill] sm:$0xff] }
 0x1e5   : > { %v3513_v29 = vadd.f32 %v3512_v36, %v3482_v38  ;;  %v3024_v40 = vadd.f32 %v4483_v5, %v2655_v57  ;;  %3422 = vst [vmem:[%s5687_s27 + $0x58] sm:$0xff] %v3390_v10  ;;  %v3388_v37 = vadd.f32 %v3255_v24, %v3019_v56  ;;  %v3486_v53 = vmul.f32 %v3390_v10, %v3390_v10  ;;  %v5866_v24 = vld [vmem:[#allocation4_spill] sm:$0xff] }
 0x1e6   : > { %v2899_v0 = vpop.f32.mrf.mxu1  ;;  %v3268_v50 = vpop.f32.mrf.mxu0  ;;  %v2291_v38 = vadd.f32 %v5629_v22, %v5866_v24  ;;  %v5867_v36 = vld [vmem:[#allocation20_spill] sm:$0xff] }
 0x1e7   : > { %v3514_v33 = vadd.f32 %v3513_v29, %v3483_v4  ;;  %v3022_v62 = vadd.f32 %v2899_v0, %v2653_v21  ;;  %3420 = vst [vmem:[%s5687_s27 + $0x48] sm:$0xff] %v3388_v37  ;;  %v3484_v11 = vmul.f32 %v3388_v37, %v3388_v37  ;;  %v3393_v25 = vadd.f32 %v4531_v28, %v3024_v40  ;;  %v5868_v29 = vld [vmem:[#allocation5_spill] sm:$0xff]  ;;  %v5869_v40 = vld [vmem:[#allocation24_spill] sm:$0xff] }
 0x1e8   : > { %v4484_v51 = vpop.f32.mrf.mxu1  ;;  %v4532_v9 = vpop.f32.mrf.mxu0  ;;  %v2658_v56 = vadd.f32 %v5867_v36, %v2288_v16  ;;  %v2294_v37 = vadd.f32 %v5869_v40, %v5868_v29 }
 0x1e9   : > { %v3515_v54 = vadd.f32 %v3514_v33, %v3484_v11  ;;  %v3025_v31 = vadd.f32 %v4484_v51, %v2656_v19  ;;  %3425 = vst [vmem:[%s5687_s27 + $0x70] sm:$0xff] %v3393_v25  ;;  %v3391_v13 = vadd.f32 %v3268_v50, %v3022_v62  ;;  %v3489_v21 = vmul.f32 %v3393_v25, %v3393_v25  ;;  %v5873_v51 = vld [vmem:[#allocation23_spill] sm:$0xff] }
 0x1ea   : > { %v2902_v6 = vpop.f32.mrf.mxu1  ;;  %v3271_v18 = vpop.f32.mrf.mxu0  ;;  %v2663_v19 = vadd.f32 %v5870_v61, %v2293_v63 }
 0x1eb   : > { %v3516_v17 = vadd.f32 %v3515_v54, %v3485_v30  ;;  %v3023_v45 = vadd.f32 %v2902_v6, %v2654_v55  ;;  %3423 = vst [vmem:[%s5687_s27 + $0x60] sm:$0xff] %v3391_v13  ;;  %v3394_v48 = vadd.f32 %v4532_v9, %v3025_v31  ;;  %v3487_v7 = vmul.f32 %v3391_v13, %v3391_v13  ;;  %v5872_v55 = vld [vmem:[#allocation26_spill] sm:$0xff] }
 0x1ec   : > { %v4487_v20 = vpop.f32.mrf.mxu1  ;;  %v4535_v59 = vpop.f32.mrf.mxu0  ;;  %v2292_v25 = vadd.f32 %v5872_v55, %v5871_v32  ;;  %v2661_v9 = vadd.f32 %v5873_v51, %v2291_v38 }
 0x1ed   : > { %v3517_v58 = vadd.f32 %v3516_v17, %v3486_v53  ;;  %v3028_v23 = vadd.f32 %v4487_v20, %v2659_v41  ;;  %3426 = vst [vmem:[%s5687_s27 + $0x78] sm:$0xff] %v3394_v48  ;;  %v3392_v35 = vadd.f32 %v3271_v18, %v3023_v45  ;;  %v3490_v33 = vmul.f32 %v3394_v48, %v3394_v48  ;;  %v5875_v41 = vld [vmem:[#allocation28_spill] sm:$0xff]  ;;  %v5876_v18 = vld [vmem:[#allocation25_spill] sm:$0xff] }
 0x1ee   : > { %v2915_v46 = vpop.f32.mrf.mxu1  ;;  %v3284_v34 = vpop.f32.mrf.mxu0  ;;  %v2297_v6 = vadd.f32 %v5875_v41, %v5874_v1  ;;  %v2664_v53 = vadd.f32 %v5876_v18, %v2294_v37 }
 0x1ef   : > { %v3518_v2 = vadd.f32 %v3517_v58, %v3487_v7  ;;  %v3026_v60 = vadd.f32 %v2915_v46, %v2657_v42  ;;  %3424 = vst [vmem:[%s5687_s27 + $0x68] sm:$0xff] %v3392_v35  ;;  %v3488_v57 = vmul.f32 %v3392_v35, %v3392_v35  ;;  %v3397_v49 = vadd.f32 %v4535_v59, %v3028_v23  ;;  %v5878_v42 = vld [vmem:[#allocation30_spill] sm:$0xff]  ;;  %v5879_v59 = vld [vmem:[#allocation27_spill] sm:$0xff] }
 0x1f0   : > { %v4488_v10 = vpop.f32.mrf.mxu1  ;;  %v4536_v43 = vpop.f32.mrf.mxu0  ;;  %v2295_v20 = vadd.f32 %v5878_v42, %v5877_v15  ;;  %v2662_v7 = vadd.f32 %v5879_v59, %v2292_v25 }
 0x1f1   : > { %v3519_v5 = vadd.f32 %v3518_v2, %v3488_v57  ;;  %v3029_v28 = vadd.f32 %v4488_v10, %v2660_v27  ;;  %3429 = vst [vmem:[%s5687_s27 + $0x90] sm:$0xff] %v3397_v49  ;;  %v3395_v4 = vadd.f32 %v3284_v34, %v3026_v60  ;;  %v3493_v35 = vmul.f32 %v3397_v49, %v3397_v49  ;;  %v5881_v27 = vld [vmem:[#allocation32_spill] sm:$0xff]  ;;  %v5882_v34 = vld [vmem:[#allocation29_spill] sm:$0xff]  ;;  %v5883_v10 = vld [vmem:[#allocation10_spill] sm:$0xff] }
 0x1f2   : > { %v2918_v0 = vpop.f32.mrf.mxu1  ;;  %v3287_v50 = vpop.f32.mrf.mxu0  ;;  %v2298_v46 = vadd.f32 %v5881_v27, %v5880_v8  ;;  %v2667_v2 = vadd.f32 %v5882_v34, %v2297_v6  ;;  %v5896_v27 = vld [vmem:[#allocation40_spill] sm:$0xff] }
 0x1f3   : > { %v3520_v22 = vadd.f32 %v3519_v5, %v3489_v21  ;;  %v3027_v62 = vadd.f32 %v2918_v0, %v2658_v56  ;;  %3427 = vst [vmem:[%s5687_s27 + $0x80] sm:$0xff] %v3395_v4  ;;  %v3398_v11 = vadd.f32 %v4536_v43, %v3029_v28  ;;  %v3491_v31 = vmul.f32 %v3395_v4, %v3395_v4  ;;  %v5884_v43 = vld [vmem:[#allocation34_spill] sm:$0xff]  ;;  %v5885_v21 = vld [vmem:[#allocation31_spill] sm:$0xff]  ;;  %v5887_v0 = vld [vmem:[#allocation36_spill] sm:$0xff] }
 0x1f4   : > { %v4491_v30 = vpop.f32.mrf.mxu1  ;;  %v4539_v54 = vpop.f32.mrf.mxu0  ;;  %v2296_v49 = vadd.f32 %v5884_v43, %v5883_v10  ;;  %v2665_v5 = vadd.f32 %v5885_v21, %v2295_v20 }
 0x1f5   : > { %v3521_v13 = vadd.f32 %v3520_v22, %v3490_v33  ;;  %v3032_v12 = vadd.f32 %v4491_v30, %v2663_v19  ;;  %3430 = vst [vmem:[%s5687_s27 + $0x98] sm:$0xff] %v3398_v11  ;;  %v3396_v39 = vadd.f32 %v3287_v50, %v3027_v62  ;;  %v3494_v24 = vmul.f32 %v3398_v11, %v3398_v11  ;;  %v5886_v19 = vld [vmem:[#allocation11_spill] sm:$0xff]  ;;  %v5888_v33 = vld [vmem:[#allocation33_spill] sm:$0xff]  ;;  %v5890_v30 = vld [vmem:[#allocation38_spill] sm:$0xff] }
 0x1f6   : > { %v2931_v17 = vpop.f32.mrf.mxu1  ;;  %v3300_v45 = vpop.f32.mrf.mxu0  ;;  %v2301_v50 = vadd.f32 %v5887_v0, %v5886_v19  ;;  %v2668_v22 = vadd.f32 %v5888_v33, %v2298_v46 }
 0x1f7   : > { %v3522_v48 = vadd.f32 %v3521_v13, %v3491_v31  ;;  %v3030_v3 = vadd.f32 %v2931_v17, %v2661_v9  ;;  %3428 = vst [vmem:[%s5687_s27 + $0x88] sm:$0xff] %v3396_v39  ;;  %v3492_v47 = vmul.f32 %v3396_v39, %v3396_v39  ;;  %v3401_v16 = vadd.f32 %v4539_v54, %v3032_v12  ;;  %v5889_v9 = vld [vmem:[#allocation12_spill] sm:$0xff]  ;;  %v5891_v31 = vld [vmem:[#allocation35_spill] sm:$0xff] }
 0x1f8   : > { %v4492_v58 = vpop.f32.mrf.mxu1  ;;  %v4540_v23 = vpop.f32.mrf.mxu0  ;;  %v2299_v54 = vadd.f32 %v5890_v30, %v5889_v9  ;;  %v2666_v13 = vadd.f32 %v5891_v31, %v2296_v49 }
 0x1f9   : > { %v3523_v52 = vadd.f32 %v3522_v48, %v3492_v47  ;;  %v3033_v26 = vadd.f32 %v4492_v58, %v2664_v53  ;;  %3433 = vst [vmem:[%s5687_s27 + $0xb0] sm:$0xff] %v3401_v16  ;;  %v3399_v63 = vadd.f32 %v3300_v45, %v3030_v3  ;;  %v3497_v1 = vmul.f32 %v3401_v16, %v3401_v16  ;;  %v5892_v53 = vld [vmem:[#allocation13_spill] sm:$0xff]  ;;  %v5895_v58 = vld [vmem:[#allocation39_spill] sm:$0xff] }
 0x1fa   : > { %v2934_v60 = vpop.f32.mrf.mxu1  ;;  %v3303_v57 = vpop.f32.mrf.mxu0  ;;  %v2302_v17 = vadd.f32 %v5668_v14, %v5892_v53  ;;  %v5893_v45 = vld [vmem:[#allocation37_spill] sm:$0xff] }
 0x1fb   : > { %v3524_v38 = vadd.f32 %v3523_v52, %v3493_v35  ;;  %v3031_v36 = vadd.f32 %v2934_v60, %v2662_v7  ;;  %3431 = vst [vmem:[%s5687_s27 + $0xa0] sm:$0xff] %v3399_v63  ;;  %v3402_v56 = vadd.f32 %v4540_v23, %v3033_v26  ;;  %v3495_v29 = vmul.f32 %v3399_v63, %v3399_v63  ;;  %v5894_v7 = vld [vmem:[#allocation14_spill] sm:$0xff] }
 0x1fc   : > { %v4495_v28 = vpop.f32.mrf.mxu1  ;;  %v4543_v4 = vpop.f32.mrf.mxu0  ;;  %v2671_v48 = vadd.f32 %v5893_v45, %v2301_v50  ;;  %v2300_v16 = vadd.f32 %v5674_v44, %v5894_v7  ;;  %v2669_v23 = vadd.f32 %v5895_v58, %v2299_v54  ;;  %v2672_v46 = vadd.f32 %v5896_v27, %v2302_v17 }
 0x1fd   : > { %v3525_v40 = vadd.f32 %v3524_v38, %v3494_v24  ;;  %v3036_v37 = vadd.f32 %v4495_v28, %v2667_v2  ;;  %3434 = vst [vmem:[%s5687_s27 + $0xb8] sm:$0xff] %v3402_v56  ;;  %v3400_v61 = vadd.f32 %v3303_v57, %v3031_v36  ;;  %v3498_v15 = vmul.f32 %v3402_v56, %v3402_v56  ;;  %v5897_v38 = vld [vmem:[#allocation41_spill] sm:$0xff] }
 0x1fe   : > { %v2947_v62 = vpop.f32.mrf.mxu1  ;;  %v3316_v11 = vpop.f32.mrf.mxu0  ;;  %v2670_v36 = vadd.f32 %v5897_v38, %v2300_v16 }
 0x1ff   : > { %v3526_v32 = vadd.f32 %v3525_v40, %v3495_v29  ;;  %v3034_v55 = vadd.f32 %v2947_v62, %v2665_v5  ;;  %3432 = vst [vmem:[%s5687_s27 + $0xa8] sm:$0xff] %v3400_v61  ;;  %v3496_v25 = vmul.f32 %v3400_v61, %v3400_v61  ;;  %v3405_v51 = vadd.f32 %v4543_v4, %v3036_v37 }
 0x200   : > { %v4496_v12 = vpop.f32.mrf.mxu1  ;;  %v4544_v39 = vpop.f32.mrf.mxu0 }
 0x201   : > { %v3527_v41 = vadd.f32 %v3526_v32, %v3496_v25  ;;  %v3037_v6 = vadd.f32 %v4496_v12, %v2668_v22  ;;  %3437 = vst [vmem:[%s5687_s27 + $0xd0] sm:$0xff] %v3405_v51  ;;  %v3403_v18 = vadd.f32 %v3316_v11, %v3034_v55  ;;  %v3501_v43 = vmul.f32 %v3405_v51, %v3405_v51 }
 0x202   : > { %v2950_v3 = vpop.f32.mrf.mxu1  ;;  %v3319_v47 = vpop.f32.mrf.mxu0 }
 0x203   : > { %v3528_v42 = vadd.f32 %v3527_v41, %v3497_v1  ;;  %v3035_v20 = vadd.f32 %v2950_v3, %v2666_v13  ;;  %3435 = vst [vmem:[%s5687_s27 + $0xc0] sm:$0xff] %v3403_v18  ;;  %v3406_v59 = vadd.f32 %v4544_v39, %v3037_v6  ;;  %v3499_v26 = vmul.f32 %v3403_v18, %v3403_v18 }
 0x204   : > { %v4499_v35 = vpop.f32.mrf.mxu1  ;;  %v4547_v52 = vpop.f32.mrf.mxu0 }
 0x205   : > { %v3529_v14 = vadd.f32 %v3528_v42, %v3498_v15  ;;  %v3040_v63 = vadd.f32 %v4499_v35, %v2671_v48  ;;  %3438 = vst [vmem:[%s5687_s27 + $0xd8] sm:$0xff] %v3406_v59  ;;  %v3404_v8 = vadd.f32 %v3319_v47, %v3035_v20  ;;  %v3502_v4 = vmul.f32 %v3406_v59, %v3406_v59 }
 0x206   : > { %v2963_v34 = vpop.f32.mrf.mxu1  ;;  %v3332_v2 = vpop.f32.mrf.mxu0 }
 0x207   : > { %v3530_v60 = vadd.f32 %v3529_v14, %v3499_v26  ;;  %v3038_v57 = vadd.f32 %v2963_v34, %v2669_v23  ;;  %3436 = vst [vmem:[%s5687_s27 + $0xc8] sm:$0xff] %v3404_v8  ;;  %v3500_v24 = vmul.f32 %v3404_v8, %v3404_v8  ;;  %v3409_v44 = vadd.f32 %v4547_v52, %v3040_v63 }
 0x208   : > { %v4500_v56 = vpop.f32.mrf.mxu1  ;;  %v4548_v10 = vpop.f32.mrf.mxu0 }
 0x209   : > { %v3531_v49 = vadd.f32 %v3530_v60, %v3500_v24  ;;  %v3041_v21 = vadd.f32 %v4500_v56, %v2672_v46  ;;  %3441 = vst [vmem:[%s5687_s27 + $0xf0] sm:$0xff] %v3409_v44  ;;  %v3407_v5 = vadd.f32 %v3332_v2, %v3038_v57  ;;  %v3505_v62 = vmul.f32 %v3409_v44, %v3409_v44 }
 0x20a   : > { %v2966_v28 = vpop.f32.mrf.mxu1  ;;  %v3335_v61 = vpop.f32.mrf.mxu0 }
 0x20b   : > { %v3532_v29 = vadd.f32 %v3531_v49, %v3501_v43  ;;  %v3039_v40 = vadd.f32 %v2966_v28, %v2670_v36  ;;  %3439 = vst [vmem:[%s5687_s27 + $0xe0] sm:$0xff] %v3407_v5  ;;  %v3410_v37 = vadd.f32 %v4548_v10, %v3041_v21  ;;  %v3503_v19 = vmul.f32 %v3407_v5, %v3407_v5 }
 0x20d   : > { %v3533_v0 = vadd.f32 %v3532_v29, %v3502_v4  ;;  %3442 = vst [vmem:[%s5687_s27 + $0xf8] sm:$0xff] %v3410_v37  ;;  %v3408_v50 = vadd.f32 %v3335_v61, %v3039_v40  ;;  %v3506_v32 = vmul.f32 %v3410_v37, %v3410_v37 }
 0x20f   : > { %v3534_v33 = vadd.f32 %v3533_v0, %v3503_v19  ;;  %3440 = vst [vmem:[%s5687_s27 + $0xe8] sm:$0xff] %v3408_v50  ;;  %v3504_v22 = vmul.f32 %v3408_v50, %v3408_v50 }
 0x211   : > { %v3535_v11 = vadd.f32 %v3534_v33, %v3504_v22 }
 0x213   : > { %v3536_v55 = vadd.f32 %v3535_v11, %v3505_v62 }
 0x215   : > { %v3537_v25 = vadd.f32 %v3536_v55, %v3506_v32 }
 0x217   : > { %3538 = vst [vmem:[%s182_s4] sm:$0xff] %v3537_v25 }
 0x218 PF: > { %s14_s12 = sadd.s32 1, %s4652_s12  }
 0x219   : > { %p11_p5 = scmp.ge.s32.totalorder %s14_s12, 4  }
 0x21b   :  { %13 = sbr.rel (!%p11_p5) target bundleno = 1 (0x1), region = 72 }

</bundles_post_ra>
